<compile_context>
chip_gen: v5e
topology: v5e:2x2
jax: 0.10.0
libtpu: 0.0.40
codegen_flags: <defaults>
</compile_context>

<pallas_src>
import functools

import jax
import jax.numpy as jnp
import numpy as np
from jax import lax
from jax.experimental import pallas as pl
from jax.experimental.pallas import tpu as pltpu

BN_EPS = 1e-5


def _default_vmem_limit():
    # v7x: 64 MiB physical VMEM; v5e/v6e: 128 MiB.  Use <= 3/4 of physical, cap 96 MiB.
    try:
        cap = int(pltpu.get_tpu_info().vmem_capacity_bytes)
        return min((cap * 3) // 4, 96 * 1024 * 1024)
    except Exception:
        return 48 * 1024 * 1024


_VMEM_LIMIT = _default_vmem_limit()


def _compiler_params(grid_axes):
    return pltpu.CompilerParams(
        dimension_semantics=("parallel",) * grid_axes,
        vmem_limit_bytes=_VMEM_LIMIT)


def _round_up(x, m):
    return (x + m - 1) // m * m


def _row_tiling(m, want):
    """Row tile + padded row count for the flat (rows, channels) stages.

    Prefers a tile in [want/2, want] that divides m exactly (no padding); otherwise
    pads m up to a tile multiple.  Never falls back to a single giant block.
    """
    want8 = max(8, want - want % 8)
    m8 = _round_up(m, 8)
    if m8 <= want8:
        return m8, m8
    t, lo = want8, max(8, want8 // 2)
    while t >= lo:
        if m % t == 0:
            return t, m
        t -= 8
    return want8, _round_up(m, want8)


def _strip_rows(h, want):
    t = max(1, min(want, h))
    while t > 1 and h % t != 0:
        t -= 1
    return t


def _pad_rows(a, m_pad):
    m = a.shape[0]
    if m == m_pad:
        return a
    return jnp.pad(a, ((0, m_pad - m),) + ((0, 0),) * (a.ndim - 1))


# --------------------------------------------------------------------------------------
# Kernels
# --------------------------------------------------------------------------------------
def _conv1x1_stats_kernel(x_ref, w_ref, h_ref, ps_ref, *, cdt):
    """h = x @ w on the MXU (f32 accumulate) + per-tile (sum, sumsq) for the next BN."""
    h = jnp.dot(x_ref[...].astype(cdt), w_ref[...],
                preferred_element_type=jnp.float32)                  # (tm, C) f32
    h_ref[...] = h.astype(h_ref.dtype)                               # bf16 storage opt.
    c = h.shape[-1]
    ps_ref[...] = jnp.concatenate(                                   # one stacked store
        [jnp.sum(h, axis=0).reshape(1, 1, c),
         jnp.sum(h * h, axis=0).reshape(1, 1, c)], axis=1)


def _bn_conv3x3_stats_kernel(h1_ref, top_ref, bot_ref, sc_ref, sh_ref, w2_ref,
                             h2_ref, ps_ref, pad_ref, acc_ref, *, cdt):
    """relu(bn1(h1 strip)) -> 3x3 conv via 9 shift-and-accumulate matmuls + bn2 stats.

    h1_ref: (1, th, W, P) strip; top_ref/bot_ref: (1, 1, W, P) halo rows from the
    neighbouring strips (zeroed at the image borders).
    """
    s = pl.program_id(1)
    ns = pl.num_programs(1)
    _, th, W, P = h1_ref.shape
    sc = sc_ref[...]
    sh = sh_ref[...]

    def bn_relu(v):
        return jnp.maximum(v.astype(jnp.float32) * sc + sh, 0.0)

    # Rebuild the halo-padded strip every step (scratch persists across grid steps).
    zcol = jnp.zeros((th + 2, 1, P), jnp.float32)
    pad_ref[:, 0:1, :] = zcol
    pad_ref[:, W + 1:W + 2, :] = zcol
    top = bn_relu(top_ref[...][0, 0]) * (s != 0).astype(jnp.float32)          # (W, P)
    bot = bn_relu(bot_ref[...][0, 0]) * (s != ns - 1).astype(jnp.float32)
    pad_ref[0:1, 1:W + 1, :] = top.reshape(1, W, P)
    pad_ref[th + 1:th + 2, 1:W + 1, :] = bot.reshape(1, W, P)
    pad_ref[1:th + 1, 1:W + 1, :] = bn_relu(h1_ref[...][0])

    # 3x3 conv: 9 shift-and-accumulate MXU matmuls into one f32 accumulator
    # (no materialized im2col buffer, no non-128-multiple K axis).
    for t in range(9):
        dy, dx = t // 3, t % 3
        win = pad_ref[dy:dy + th, dx:dx + W, :].reshape(th * W, P).astype(cdt)
        contrib = jnp.dot(win, w2_ref[t], preferred_element_type=jnp.float32)
        if t == 0:
            acc_ref[...] = contrib
        else:
            acc_ref[...] += contrib

    h2 = acc_ref[...]                                               # (th*W, P) f32
    ps_ref[...] = jnp.concatenate(
        [jnp.sum(h2, axis=0).reshape(1, 1, 1, P),
         jnp.sum(h2 * h2, axis=0).reshape(1, 1, 1, P)], axis=2)
    h2_ref[...] = h2.reshape(1, th, W, P).astype(h2_ref.dtype)


def _bn_conv1x1_stats_kernel(h_ref, sc_ref, sh_ref, w_ref, o_ref, ps_ref,
                             *, cdt, rows_valid):
    """relu(bn2(h2)) -> 1x1 conv (channel matmul) + bn3 partial stats."""
    a = jnp.maximum(h_ref[...].astype(jnp.float32) * sc_ref[...] + sh_ref[...], 0.0)
    o = jnp.dot(a.astype(cdt), w_ref[...], preferred_element_type=jnp.float32)
    o_ref[...] = o
    c = o.shape[-1]
    if rows_valid is not None:
        # Exclude zero-padded tail rows from the BN statistics (bn2 shift makes them
        # non-zero after the conv).
        tm = o.shape[0]
        row = pl.program_id(0) * tm + lax.broadcasted_iota(jnp.int32, (tm, 1), 0)
        o = jnp.where(row < rows_valid, o, 0.0)
    ps_ref[...] = jnp.concatenate(
        [jnp.sum(o, axis=0).reshape(1, 1, c),
         jnp.sum(o * o, axis=0).reshape(1, 1, c)], axis=1)


def _bn_add_relu_kernel(h_ref, sc_ref, sh_ref, x_ref, o_ref):
    """bn3(h3) + residual (re-read from its HBM tile) -> relu.  h3 aliases the output."""
    o_ref[...] = jnp.maximum(h_ref[...] * sc_ref[...] + sh_ref[...] + x_ref[...], 0.0)


# --------------------------------------------------------------------------------------
# Wrapper
# --------------------------------------------------------------------------------------
def _bn_fold(partial_stats, gamma, beta, count):
    """Fold one-pass batch statistics into a fused per-channel (scale, shift)."""
    stats = jnp.sum(partial_stats.astype(jnp.float32), axis=0)      # (2, C)
    mean = stats[0] / count
    var = jnp.maximum(stats[1] / count - mean * mean, 0.0)
    scale = gamma.reshape(-1) * lax.rsqrt(var + BN_EPS)
    shift = beta.reshape(-1) - mean * scale
    return scale.reshape(1, -1), shift.reshape(1, -1)


def bottleneck_forward_nhwc(x_nhwc, params, *, compute_dtype=jnp.float32,
                            block_rows=1024, strip_rows=16):
    """Bottleneck forward on NHWC activations (preferred entry point: no transposes).

    compute_dtype: matmul-operand dtype (bf16 gives the native MXU rate on all of
    v5e/v6e/v7x; accumulation and BN/ReLU math stay f32).  With bf16, the inter-stage
    activations h1/h2 are also stored bf16 to halve stage-boundary HBM traffic.
    NOTE: at real ResNet channel counts (64/256) the lane dim is dense; the toy P=4
    config under-fills vregs but is kept small for the self-test.
    """
    w1, g1, b1, w2, g2, b2, w3, g3, b3 = params
    N, H, W, Cin = x_nhwc.shape
    P = w1.shape[1]
    Cout = w3.shape[1]
    assert Cout == Cin, "downsample=None requires inplanes == planes * 4"

    cdt = compute_dtype
    store_bf16 = jnp.dtype(cdt) == jnp.dtype(jnp.bfloat16)
    act_dtype = jnp.bfloat16 if store_bf16 else jnp.float32
    dsz = jnp.dtype(cdt).itemsize
    asz = jnp.dtype(act_dtype).itemsize

    M = N * H * W
    tm, m_pad = _row_tiling(M, block_rows)
    gm = m_pad // tm
    th = _strip_rows(H, strip_rows)
    n_strips = H // th
    fcount = float(M)

    xf = x_nhwc.reshape(M, Cin).astype(jnp.float32)
    xf_p = _pad_rows(xf, m_pad)
    w1c = w1.astype(cdt)
    w2c = w2.reshape(9, P, P).astype(cdt)          # tap t = 3*dy+dx, (cin, cout) HWIO
    w3c = w3.astype(cdt)

    # ---- stage 1: conv1 (1x1) + bn1 partial stats -------------------------------------
    h1, ps1 = pl.pallas_call(
        functools.partial(_conv1x1_stats_kernel, cdt=cdt),
        grid=(gm,),
        in_specs=[pl.BlockSpec((tm, Cin), lambda i: (i, 0)),
                  pl.BlockSpec((Cin, P), lambda i: (0, 0))],
        out_specs=(pl.BlockSpec((tm, P), lambda i: (i, 0)),
                   pl.BlockSpec((1, 2, P), lambda i: (i, 0, 0))),
        out_shape=(jax.ShapeDtypeStruct((m_pad, P), act_dtype),
                   jax.ShapeDtypeStruct((gm, 2, P), jnp.float32)),
        compiler_params=_compiler_params(1),
        cost_estimate=pl.CostEstimate(
            flops=2 * M * Cin * P, transcendentals=0,
            bytes_accessed=int(4 * m_pad * Cin + dsz * Cin * P
                               + asz * m_pad * P + 4 * 2 * gm * P)),
    )(xf_p, w1c)
    sc1, sh1 = _bn_fold(ps1, g1, b1, fcount)

    # ---- stage 2: bn1+relu -> conv2 (3x3, strip-tiled shift&accumulate) + bn2 stats ----
    h1_4d = (h1 if m_pad == M else h1[:M]).reshape(N, H, W, P)
    h2_4d, ps2 = pl.pallas_call(
        functools.partial(_bn_conv3x3_stats_kernel, cdt=cdt),
        grid=(N, n_strips),
        in_specs=[
            pl.BlockSpec((1, th, W, P), lambda n, s: (n, s, 0, 0)),
            pl.BlockSpec((1, 1, W, P),
                         lambda n, s: (n, jnp.maximum(s * th - 1, 0), 0, 0)),
            pl.BlockSpec((1, 1, W, P),
                         lambda n, s: (n, jnp.minimum(s * th + th, H - 1), 0, 0)),
            pl.BlockSpec((1, P), lambda n, s: (0, 0)),
            pl.BlockSpec((1, P), lambda n, s: (0, 0)),
            pl.BlockSpec((9, P, P), lambda n, s: (0, 0, 0)),
        ],
        out_specs=(pl.BlockSpec((1, th, W, P), lambda n, s: (n, s, 0, 0)),
                   pl.BlockSpec((1, 1, 2, P), lambda n, s: (n, s, 0, 0))),
        out_shape=(jax.ShapeDtypeStruct((N, H, W, P), act_dtype),
                   jax.ShapeDtypeStruct((N, n_strips, 2, P), jnp.float32)),
        scratch_shapes=[pltpu.VMEM((th + 2, W + 2, P), jnp.float32),
                        pltpu.VMEM((th * W, P), jnp.float32)],
        compiler_params=_compiler_params(2),
        cost_estimate=pl.CostEstimate(
            flops=2 * M * 9 * P * P, transcendentals=0,
            bytes_accessed=int(asz * (M + 2 * N * n_strips * W) * P
                               + dsz * 9 * P * P + asz * M * P
                               + 4 * 2 * N * n_strips * P)),
    )(h1_4d, h1_4d, h1_4d, sc1, sh1, w2c)
    sc2, sh2 = _bn_fold(ps2.reshape(N * n_strips, 2, P), g2, b2, fcount)

    # ---- stage 3: bn2+relu -> conv3 (1x1) + bn3 partial stats --------------------------
    h2f = _pad_rows(h2_4d.reshape(M, P), m_pad)
    rows_valid = None if m_pad == M else M
    h3, ps3 = pl.pallas_call(
        functools.partial(_bn_conv1x1_stats_kernel, cdt=cdt, rows_valid=rows_valid),
        grid=(gm,),
        in_specs=[pl.BlockSpec((tm, P), lambda i: (i, 0)),
                  pl.BlockSpec((1, P), lambda i: (0, 0)),
                  pl.BlockSpec((1, P), lambda i: (0, 0)),
                  pl.BlockSpec((P, Cout), lambda i: (0, 0))],
        out_specs=(pl.BlockSpec((tm, Cout), lambda i: (i, 0)),
                   pl.BlockSpec((1, 2, Cout), lambda i: (i, 0, 0))),
        out_shape=(jax.ShapeDtypeStruct((m_pad, Cout), jnp.float32),
                   jax.ShapeDtypeStruct((gm, 2, Cout), jnp.float32)),
        compiler_params=_compiler_params(1),
        cost_estimate=pl.CostEstimate(
            flops=2 * M * P * Cout, transcendentals=0,
            bytes_accessed=int(asz * m_pad * P + dsz * P * Cout
                               + 4 * m_pad * Cout + 4 * 2 * gm * Cout)),
    )(h2f, sc2, sh2, w3c)
    sc3, sh3 = _bn_fold(ps3, g3, b3, fcount)

    # ---- stage 4: bn3 -> + residual -> relu (h3 aliased to the output) ----------------
    out_flat = pl.pallas_call(
        _bn_add_relu_kernel,
        grid=(gm,),
        in_specs=[pl.BlockSpec((tm, Cout), lambda i: (i, 0)),
                  pl.BlockSpec((1, Cout), lambda i: (0, 0)),
                  pl.BlockSpec((1, Cout), lambda i: (0, 0)),
                  pl.BlockSpec((tm, Cin), lambda i: (i, 0))],
        out_specs=pl.BlockSpec((tm, Cout), lambda i: (i, 0)),
        out_shape=jax.ShapeDtypeStruct((m_pad, Cout), jnp.float32),
        input_output_aliases={0: 0},
        compiler_params=_compiler_params(1),
        cost_estimate=pl.CostEstimate(
            flops=3 * M * Cout, transcendentals=0,
            bytes_accessed=int(4 * 3 * m_pad * Cout)),
    )(h3, sc3, sh3, xf_p)

    out_flat = out_flat if m_pad == M else out_flat[:M]
    return out_flat.reshape(N, H, W, Cout)


def bottleneck_forward(x_nchw, params, *, compute_dtype=jnp.float32,
                       block_rows=1024, strip_rows=16):
    """NCHW wrapper for PyTorch parity.  Prefer bottleneck_forward_nhwc in real
    pipelines: each boundary transpose is a full HBM read+write pass."""
    x = jnp.transpose(x_nchw, (0, 2, 3, 1))            # NCHW -> NHWC
    out = bottleneck_forward_nhwc(x, params, compute_dtype=compute_dtype,
                                  block_rows=block_rows, strip_rows=strip_rows)
    return jnp.transpose(out, (0, 3, 1, 2))            # NHWC -> NCHW


# --------------------------------------------------------------------------------------
# Parameters / reference
# --------------------------------------------------------------------------------------
def init_params(key, inplanes, planes):
    """Deterministic synthetic parameters (shapes follow Bottleneck.__init__)."""
    expansion = 4
    ks = jax.random.split(key, 9)
    w1 = 0.1 * jax.random.normal(ks[0], (inplanes, planes), jnp.float32)
    w2 = 0.1 * jax.random.normal(ks[1], (3, 3, planes, planes), jnp.float32)
    w3 = 0.1 * jax.random.normal(ks[2], (planes, planes * expansion), jnp.float32)
    g1 = (1.0 + 0.1 * jax.random.normal(ks[3], (1, planes))).astype(jnp.float32)
    b1 = (0.1 * jax.random.normal(ks[4], (1, planes))).astype(jnp.float32)
    g2 = (1.0 + 0.1 * jax.random.normal(ks[5], (1, planes))).astype(jnp.float32)
    b2 = (0.1 * jax.random.normal(ks[6], (1, planes))).astype(jnp.float32)
    g3 = (1.0 + 0.1 * jax.random.normal(ks[7], (1, planes * expansion))).astype(jnp.float32)
    b3 = (0.1 * jax.random.normal(ks[8], (1, planes * expansion))).astype(jnp.float32)
    return (w1, g1, b1, w2, g2, b2, w3, g3, b3)


def reference_forward(x_nchw, params, matmul_dtype=jnp.float32):
    """Pure-JAX reference.  For bf16 it rounds the post-conv activations at the same
    boundaries where the Pallas pipeline stores them as bf16 (f32 accumulation)."""
    w1, g1, b1, w2, g2, b2, w3, g3, b3 = params
    x = jnp.transpose(x_nchw, (0, 2, 3, 1)).astype(jnp.float32)
    md = matmul_dtype

    def rnd(h):   # emulate the kernel's inter-stage storage dtype
        return h.astype(md).astype(jnp.float32) if md == jnp.bfloat16 else h

    def bn(h, g, b, relu=True):
        m = jnp.mean(h, axis=(0, 1, 2), keepdims=True)
        v = jnp.mean((h - m) ** 2, axis=(0, 1, 2), keepdims=True)
        y = (h - m) * lax.rsqrt(v + BN_EPS) * g.reshape(1, 1, 1, -1) + b.reshape(1, 1, 1, -1)
        return jnp.maximum(y, 0.0) if relu else y

    h = jnp.einsum('nhwc,cd->nhwd', x.astype(md), w1.astype(md),
                   precision='highest', preferred_element_type=jnp.float32)
    h = bn(rnd(h), g1, b1)
    h = lax.conv_general_dilated(h.astype(md), w2.astype(md), (1, 1), 'SAME',
                                 dimension_numbers=('NHWC', 'HWIO', 'NHWC'),
                                 precision='highest',
                                 preferred_element_type=jnp.float32)
    h = bn(rnd(h), g2, b2)
    h = jnp.einsum('nhwc,cd->nhwd', h.astype(md), w3.astype(md),
                   precision='highest', preferred_element_type=jnp.float32)
    h = bn(h, g3, b3, relu=False)
    out = jnp.maximum(h + x, 0.0)
    return jnp.transpose(out, (0, 3, 1, 2))


if __name__ == "__main__":
    key = jax.random.PRNGKey(0)
    k_x, k_p = jax.random.split(key)

    inplanes, planes = 16, 4                  # expansion*planes == inplanes (no downsample)
    N, H, W = 2, 16, 16
    x = jax.random.normal(k_x, (N, inplanes, H, W), jnp.float32)   # NCHW like PyTorch
    params = init_params(k_p, inplanes, planes)

    fwd = jax.jit(bottleneck_forward,
                  static_argnames=("compute_dtype", "block_rows", "strip_rows"))

    # f32 matmul path: exact module semantics.  strip_rows=8 exercises the conv2 halo
    # exchange between spatial strips.
    out_f32 = jax.block_until_ready(fwd(x, params, compute_dtype=jnp.float32,
                                        strip_rows=8))
    ref_f32 = jax.block_until_ready(reference_forward(x, params, jnp.float32))
    err_f32 = float(jnp.max(jnp.abs(out_f32 - ref_f32)))
    if not np.isfinite(err_f32) or err_f32 > 1e-2:
        raise AssertionError(f"f32 Pallas output mismatch vs reference, max abs err = {err_f32}")

    # bf16 matmul path: bf16 operands + bf16 inter-stage storage, f32 accumulate and
    # f32 BN math.  Compared against a reference rounded at the same boundaries.
    out_b16 = jax.block_until_ready(fwd(x, params, compute_dtype=jnp.bfloat16,
                                        strip_rows=8))
    ref_b16 = jax.block_until_ready(reference_forward(x, params, jnp.bfloat16))
    err_b16 = float(jnp.max(jnp.abs(out_b16 - ref_b16)))
    if not np.isfinite(err_b16) or err_b16 > 7.5e-2:
        raise AssertionError(f"bf16 Pallas output mismatch vs reference, max abs err = {err_b16}")

    print("KERNEL_OK")
</pallas_src>

<mosaic_0001>
module attributes {stable_mosaic.version = 11 : i64} {
  func.func @_conv1x1_stats_kernel(%arg0: i32, %arg1: memref<512x16xf32, #tpu.memory_space<vmem>>, %arg2: memref<16x4xf32, #tpu.memory_space<vmem>>, %arg3: memref<512x4xf32, #tpu.memory_space<vmem>>, %arg4: memref<1x2x4xf32, #tpu.memory_space<vmem>>) attributes {dimension_semantics = [#tpu.dimension_semantics<parallel>], iteration_bounds = array<i64: 1>, scalar_prefetch = 0 : i64, scratch_operands = 0 : i64, tpu.core_type = #tpu.core_type<tc>, window_params = [{transform_indices = @transform_0, window_bounds = array<i64: 512, 16>}, {pipeline_mode = #tpu.pipeline_mode<synchronous>, transform_indices = @transform_1, window_bounds = array<i64: 16, 4>}, {transform_indices = @transform_2, window_bounds = array<i64: 512, 4>}, {transform_indices = @transform_3, window_bounds = array<i64: 1, 2, 4>}]} {
    %c0 = arith.constant 0 : index
    %c0_0 = arith.constant 0 : index
    %0 = vector.load %arg1[%c0, %c0_0] : memref<512x16xf32, #tpu.memory_space<vmem>>, vector<512x16xf32>
    %c0_1 = arith.constant 0 : index
    %c0_2 = arith.constant 0 : index
    %1 = vector.load %arg2[%c0_1, %c0_2] : memref<16x4xf32, #tpu.memory_space<vmem>>, vector<16x4xf32>
    %cst = arith.constant dense<0.000000e+00> : vector<512x4xf32>
    %2 = tpu.matmul %0, %1, %cst {dimension_numbers = #tpu.dot_dimension_numbers<[1], [0], [0], [1], [0, 0, 1, 1], [], []>} : vector<512x16xf32>, vector<16x4xf32>, vector<512x4xf32> -> vector<512x4xf32>
    %c0_3 = arith.constant 0 : index
    %c0_4 = arith.constant 0 : index
    %3 = vector.load %arg3[%c0_3, %c0_4] : memref<512x4xf32, #tpu.memory_space<vmem>>, vector<512x4xf32>
    tpu.vector_store %arg3[%c0_3, %c0_4], %2 {strides = array<i32>} : memref<512x4xf32, #tpu.memory_space<vmem>>, vector<512x4xf32>,
    %cst_5 = arith.constant dense<0.000000e+00> : vector<4xf32>
    %4 = vector.multi_reduction <add>, %2, %cst_5 [0] : vector<512x4xf32> to vector<4xf32>
    %5 = vector.shape_cast %4 : vector<4xf32> to vector<1x1x4xf32>
    %6 = arith.mulf %2, %2 : vector<512x4xf32>
    %cst_6 = arith.constant dense<0.000000e+00> : vector<4xf32>
    %7 = vector.multi_reduction <add>, %6, %cst_6 [0] : vector<512x4xf32> to vector<4xf32>
    %8 = vector.shape_cast %7 : vector<4xf32> to vector<1x1x4xf32>
    %9 = tpu.concatenate %5, %8 in 1 : vector<1x1x4xf32>, vector<1x1x4xf32> -> vector<1x2x4xf32>
    %c0_7 = arith.constant 0 : index
    %c0_8 = arith.constant 0 : index
    %c0_9 = arith.constant 0 : index
    %10 = vector.load %arg4[%c0_7, %c0_8, %c0_9] : memref<1x2x4xf32, #tpu.memory_space<vmem>>, vector<1x2x4xf32>
    tpu.vector_store %arg4[%c0_7, %c0_8, %c0_9], %9 {strides = array<i32>} : memref<1x2x4xf32, #tpu.memory_space<vmem>>, vector<1x2x4xf32>,
    return
  }
  func.func @transform_0(%arg0: i32) -> (i32, i32) {
    %c0_i32 = arith.constant 0 : i32
    %c0_i32_0 = arith.constant 0 : i32
    return %arg0, %c0_i32 : i32, i32
  }
  func.func @transform_1(%arg0: i32) -> (i32, i32) {
    %c0_i32 = arith.constant 0 : i32
    %c0_i32_0 = arith.constant 0 : i32
    %c0_i32_1 = arith.constant 0 : i32
    return %c0_i32, %c0_i32_0 : i32, i32
  }
  func.func @transform_2(%arg0: i32) -> (i32, i32) {
    %c0_i32 = arith.constant 0 : i32
    %c0_i32_0 = arith.constant 0 : i32
    return %arg0, %c0_i32 : i32, i32
  }
  func.func @transform_3(%arg0: i32) -> (i32, i32, i32) {
    %c0_i32 = arith.constant 0 : i32
    %c0_i32_0 = arith.constant 0 : i32
    %c0_i32_1 = arith.constant 0 : i32
    return %arg0, %c0_i32, %c0_i32_0 : i32, i32, i32
  }
}

module attributes {stable_mosaic.version = 11 : i64} {
  func.func @_bn_conv3x3_stats_kernel(%arg0: i32, %arg1: i32, %arg2: memref<1x8x16x4xf32, #tpu.memory_space<vmem>>, %arg3: memref<1x1x16x4xf32, #tpu.memory_space<vmem>>, %arg4: memref<1x1x16x4xf32, #tpu.memory_space<vmem>>, %arg5: memref<1x4xf32, #tpu.memory_space<vmem>>, %arg6: memref<1x4xf32, #tpu.memory_space<vmem>>, %arg7: memref<9x4x4xf32, #tpu.memory_space<vmem>>, %arg8: memref<1x8x16x4xf32, #tpu.memory_space<vmem>>, %arg9: memref<1x1x2x4xf32, #tpu.memory_space<vmem>>, %arg10: memref<10x18x4xf32, #tpu.memory_space<vmem>>, %arg11: memref<128x4xf32, #tpu.memory_space<vmem>>) attributes {dimension_semantics = [#tpu.dimension_semantics<parallel>, #tpu.dimension_semantics<parallel>], iteration_bounds = array<i64: 2, 2>, scalar_prefetch = 0 : i64, scratch_operands = 2 : i64, tpu.core_type = #tpu.core_type<tc>, window_params = [{transform_indices = @transform_0, window_bounds = array<i64: 1, 8, 16, 4>}, {transform_indices = @transform_1, window_bounds = array<i64: 1, 1, 16, 4>}, {transform_indices = @transform_2, window_bounds = array<i64: 1, 1, 16, 4>}, {pipeline_mode = #tpu.pipeline_mode<synchronous>, transform_indices = @transform_3, window_bounds = array<i64: 1, 4>}, {pipeline_mode = #tpu.pipeline_mode<synchronous>, transform_indices = @transform_4, window_bounds = array<i64: 1, 4>}, {pipeline_mode = #tpu.pipeline_mode<synchronous>, transform_indices = @transform_5, window_bounds = array<i64: 9, 4, 4>}, {transform_indices = @transform_6, window_bounds = array<i64: 1, 8, 16, 4>}, {transform_indices = @transform_7, window_bounds = array<i64: 1, 1, 2, 4>}]} {
    %c0 = arith.constant 0 : index
    %c0_0 = arith.constant 0 : index
    %0 = vector.load %arg5[%c0, %c0_0] : memref<1x4xf32, #tpu.memory_space<vmem>>, vector<1x4xf32>
    %c0_1 = arith.constant 0 : index
    %c0_2 = arith.constant 0 : index
    %1 = vector.load %arg6[%c0_1, %c0_2] : memref<1x4xf32, #tpu.memory_space<vmem>>, vector<1x4xf32>
    %cst = arith.constant 0.000000e+00 : f32
    %2 = vector.broadcast %cst : f32 to vector<10x1x4xf32>
    %c0_3 = arith.constant 0 : index
    %c0_4 = arith.constant 0 : index
    %c0_5 = arith.constant 0 : index
    %3 = vector.load %arg10[%c0_3, %c0_4, %c0_5] : memref<10x18x4xf32, #tpu.memory_space<vmem>>, vector<10x1x4xf32>
    tpu.vector_store %arg10[%c0_3, %c0_4, %c0_5], %2 {strides = array<i32>} : memref<10x18x4xf32, #tpu.memory_space<vmem>>, vector<10x1x4xf32>,
    %c0_6 = arith.constant 0 : index
    %c17 = arith.constant 17 : index
    %c0_7 = arith.constant 0 : index
    %4 = vector.load %arg10[%c0_6, %c17, %c0_7] : memref<10x18x4xf32, #tpu.memory_space<vmem>>, vector<10x1x4xf32>
    tpu.vector_store %arg10[%c0_6, %c17, %c0_7], %2 {strides = array<i32>} : memref<10x18x4xf32, #tpu.memory_space<vmem>>, vector<10x1x4xf32>,
    %c0_8 = arith.constant 0 : index
    %c0_9 = arith.constant 0 : index
    %c0_10 = arith.constant 0 : index
    %c0_11 = arith.constant 0 : index
    %5 = vector.load %arg3[%c0_8, %c0_9, %c0_10, %c0_11] : memref<1x1x16x4xf32, #tpu.memory_space<vmem>>, vector<1x1x16x4xf32>
    %6 = vector.shape_cast %5 : vector<1x1x16x4xf32> to vector<16x4xf32>
    %7 = vector.broadcast %0 : vector<1x4xf32> to vector<16x4xf32>
    %8 = arith.mulf %6, %7 : vector<16x4xf32>
    %9 = vector.broadcast %1 : vector<1x4xf32> to vector<16x4xf32>
    %10 = arith.addf %8, %9 : vector<16x4xf32>
    %cst_12 = arith.constant 0.000000e+00 : f32
    %11 = vector.broadcast %cst_12 : f32 to vector<16x4xf32>
    %12 = arith.maximumf %10, %11 : vector<16x4xf32>
    %c0_i32 = arith.constant 0 : i32
    %13 = arith.cmpi ne, %arg1, %c0_i32 : i32
    %14 = arith.extui %13 : i1 to i32
    %15 = arith.sitofp %14 : i32 to f32
    %16 = vector.broadcast %15 : f32 to vector<16x4xf32>
    %17 = arith.mulf %12, %16 : vector<16x4xf32>
    %c0_13 = arith.constant 0 : index
    %c0_14 = arith.constant 0 : index
    %c0_15 = arith.constant 0 : index
    %c0_16 = arith.constant 0 : index
    %18 = vector.load %arg4[%c0_13, %c0_14, %c0_15, %c0_16] : memref<1x1x16x4xf32, #tpu.memory_space<vmem>>, vector<1x1x16x4xf32>
    %19 = vector.shape_cast %18 : vector<1x1x16x4xf32> to vector<16x4xf32>
    %20 = vector.broadcast %0 : vector<1x4xf32> to vector<16x4xf32>
    %21 = arith.mulf %19, %20 : vector<16x4xf32>
    %22 = vector.broadcast %1 : vector<1x4xf32> to vector<16x4xf32>
    %23 = arith.addf %21, %22 : vector<16x4xf32>
    %cst_17 = arith.constant 0.000000e+00 : f32
    %24 = vector.broadcast %cst_17 : f32 to vector<16x4xf32>
    %25 = arith.maximumf %23, %24 : vector<16x4xf32>
    %c1_i32 = arith.constant 1 : i32
    %26 = arith.cmpi ne, %arg1, %c1_i32 : i32
    %27 = arith.extui %26 : i1 to i32
    %28 = arith.sitofp %27 : i32 to f32
    %29 = vector.broadcast %28 : f32 to vector<16x4xf32>
    %30 = arith.mulf %25, %29 : vector<16x4xf32>
    %31 = vector.shape_cast %17 : vector<16x4xf32> to vector<1x16x4xf32>
    %c0_18 = arith.constant 0 : index
    %c1 = arith.constant 1 : index
    %c0_19 = arith.constant 0 : index
    %32 = vector.load %arg10[%c0_18, %c1, %c0_19] : memref<10x18x4xf32, #tpu.memory_space<vmem>>, vector<1x16x4xf32>
    tpu.vector_store %arg10[%c0_18, %c1, %c0_19], %31 {strides = array<i32>} : memref<10x18x4xf32, #tpu.memory_space<vmem>>, vector<1x16x4xf32>,
    %33 = vector.shape_cast %30 : vector<16x4xf32> to vector<1x16x4xf32>
    %c9 = arith.constant 9 : index
    %c1_20 = arith.constant 1 : index
    %c0_21 = arith.constant 0 : index
    %34 = vector.load %arg10[%c9, %c1_20, %c0_21] : memref<10x18x4xf32, #tpu.memory_space<vmem>>, vector<1x16x4xf32>
    tpu.vector_store %arg10[%c9, %c1_20, %c0_21], %33 {strides = array<i32>} : memref<10x18x4xf32, #tpu.memory_space<vmem>>, vector<1x16x4xf32>,
    %c0_22 = arith.constant 0 : index
    %c0_23 = arith.constant 0 : index
    %c0_24 = arith.constant 0 : index
    %c0_25 = arith.constant 0 : index
    %35 = vector.load %arg2[%c0_22, %c0_23, %c0_24, %c0_25] : memref<1x8x16x4xf32, #tpu.memory_space<vmem>>, vector<1x8x16x4xf32>
    %36 = vector.shape_cast %35 : vector<1x8x16x4xf32> to vector<8x16x4xf32>
    %37 = vector.shape_cast %0 : vector<1x4xf32> to vector<1x1x4xf32>
    %38 = vector.broadcast %37 : vector<1x1x4xf32> to vector<8x16x4xf32>
    %39 = arith.mulf %36, %38 : vector<8x16x4xf32>
    %40 = vector.shape_cast %1 : vector<1x4xf32> to vector<1x1x4xf32>
    %41 = vector.broadcast %40 : vector<1x1x4xf32> to vector<8x16x4xf32>
    %42 = arith.addf %39, %41 : vector<8x16x4xf32>
    %cst_26 = arith.constant 0.000000e+00 : f32
    %43 = vector.broadcast %cst_26 : f32 to vector<8x16x4xf32>
    %44 = arith.maximumf %42, %43 : vector<8x16x4xf32>
    %c1_27 = arith.constant 1 : index
    %c1_28 = arith.constant 1 : index
    %c0_29 = arith.constant 0 : index
    %45 = vector.load %arg10[%c1_27, %c1_28, %c0_29] : memref<10x18x4xf32, #tpu.memory_space<vmem>>, vector<8x16x4xf32>
    tpu.vector_store %arg10[%c1_27, %c1_28, %c0_29], %44 {strides = array<i32>} : memref<10x18x4xf32, #tpu.memory_space<vmem>>, vector<8x16x4xf32>,
    %c0_30 = arith.constant 0 : index
    %c0_31 = arith.constant 0 : index
    %c0_32 = arith.constant 0 : index
    %46 = vector.load %arg10[%c0_30, %c0_31, %c0_32] : memref<10x18x4xf32, #tpu.memory_space<vmem>>, vector<8x16x4xf32>
    %47 = vector.shape_cast %46 : vector<8x16x4xf32> to vector<128x4xf32>
    %c0_33 = arith.constant 0 : index
    %c0_34 = arith.constant 0 : index
    %c0_35 = arith.constant 0 : index
    %48 = vector.load %arg7[%c0_33, %c0_34, %c0_35] : memref<9x4x4xf32, #tpu.memory_space<vmem>>, vector<1x4x4xf32>
    %49 = vector.shape_cast %48 : vector<1x4x4xf32> to vector<4x4xf32>
    %cst_36 = arith.constant dense<0.000000e+00> : vector<128x4xf32>
    %50 = tpu.matmul %47, %49, %cst_36 {dimension_numbers = #tpu.dot_dimension_numbers<[1], [0], [0], [1], [0, 0, 1, 1], [], []>} : vector<128x4xf32>, vector<4x4xf32>, vector<128x4xf32> -> vector<128x4xf32>
    %c0_37 = arith.constant 0 : index
    %c0_38 = arith.constant 0 : index
    %51 = vector.load %arg11[%c0_37, %c0_38] : memref<128x4xf32, #tpu.memory_space<vmem>>, vector<128x4xf32>
    tpu.vector_store %arg11[%c0_37, %c0_38], %50 {strides = array<i32>} : memref<128x4xf32, #tpu.memory_space<vmem>>, vector<128x4xf32>,
    %c0_39 = arith.constant 0 : index
    %c1_40 = arith.constant 1 : index
    %c0_41 = arith.constant 0 : index
    %52 = vector.load %arg10[%c0_39, %c1_40, %c0_41] : memref<10x18x4xf32, #tpu.memory_space<vmem>>, vector<8x16x4xf32>
    %53 = vector.shape_cast %52 : vector<8x16x4xf32> to vector<128x4xf32>
    %c1_42 = arith.constant 1 : index
    %c0_43 = arith.constant 0 : index
    %c0_44 = arith.constant 0 : index
    %54 = vector.load %arg7[%c1_42, %c0_43, %c0_44] : memref<9x4x4xf32, #tpu.memory_space<vmem>>, vector<1x4x4xf32>
    %55 = vector.shape_cast %54 : vector<1x4x4xf32> to vector<4x4xf32>
    %cst_45 = arith.constant dense<0.000000e+00> : vector<128x4xf32>
    %56 = tpu.matmul %53, %55, %cst_45 {dimension_numbers = #tpu.dot_dimension_numbers<[1], [0], [0], [1], [0, 0, 1, 1], [], []>} : vector<128x4xf32>, vector<4x4xf32>, vector<128x4xf32> -> vector<128x4xf32>
    %c0_46 = arith.constant 0 : index
    %c0_47 = arith.constant 0 : index
    %57 = vector.load %arg11[%c0_46, %c0_47] : memref<128x4xf32, #tpu.memory_space<vmem>>, vector<128x4xf32>
    %58 = arith.addf %57, %56 : vector<128x4xf32>
    %c0_48 = arith.constant 0 : index
    %c0_49 = arith.constant 0 : index
    %59 = vector.load %arg11[%c0_48, %c0_49] : memref<128x4xf32, #tpu.memory_space<vmem>>, vector<128x4xf32>
    tpu.vector_store %arg11[%c0_48, %c0_49], %58 {strides = array<i32>} : memref<128x4xf32, #tpu.memory_space<vmem>>, vector<128x4xf32>,
    %c0_50 = arith.constant 0 : index
    %c2 = arith.constant 2 : index
    %c0_51 = arith.constant 0 : index
    %60 = vector.load %arg10[%c0_50, %c2, %c0_51] : memref<10x18x4xf32, #tpu.memory_space<vmem>>, vector<8x16x4xf32>
    %61 = vector.shape_cast %60 : vector<8x16x4xf32> to vector<128x4xf32>
    %c2_52 = arith.constant 2 : index
    %c0_53 = arith.constant 0 : index
    %c0_54 = arith.constant 0 : index
    %62 = vector.load %arg7[%c2_52, %c0_53, %c0_54] : memref<9x4x4xf32, #tpu.memory_space<vmem>>, vector<1x4x4xf32>
    %63 = vector.shape_cast %62 : vector<1x4x4xf32> to vector<4x4xf32>
    %cst_55 = arith.constant dense<0.000000e+00> : vector<128x4xf32>
    %64 = tpu.matmul %61, %63, %cst_55 {dimension_numbers = #tpu.dot_dimension_numbers<[1], [0], [0], [1], [0, 0, 1, 1], [], []>} : vector<128x4xf32>, vector<4x4xf32>, vector<128x4xf32> -> vector<128x4xf32>
    %c0_56 = arith.constant 0 : index
    %c0_57 = arith.constant 0 : index
    %65 = vector.load %arg11[%c0_56, %c0_57] : memref<128x4xf32, #tpu.memory_space<vmem>>, vector<128x4xf32>
    %66 = arith.addf %65, %64 : vector<128x4xf32>
    %c0_58 = arith.constant 0 : index
    %c0_59 = arith.constant 0 : index
    %67 = vector.load %arg11[%c0_58, %c0_59] : memref<128x4xf32, #tpu.memory_space<vmem>>, vector<128x4xf32>
    tpu.vector_store %arg11[%c0_58, %c0_59], %66 {strides = array<i32>} : memref<128x4xf32, #tpu.memory_space<vmem>>, vector<128x4xf32>,
    %c1_60 = arith.constant 1 : index
    %c0_61 = arith.constant 0 : index
    %c0_62 = arith.constant 0 : index
    %68 = vector.load %arg10[%c1_60, %c0_61, %c0_62] : memref<10x18x4xf32, #tpu.memory_space<vmem>>, vector<8x16x4xf32>
    %69 = vector.shape_cast %68 : vector<8x16x4xf32> to vector<128x4xf32>
    %c3 = arith.constant 3 : index
    %c0_63 = arith.constant 0 : index
    %c0_64 = arith.constant 0 : index
    %70 = vector.load %arg7[%c3, %c0_63, %c0_64] : memref<9x4x4xf32, #tpu.memory_space<vmem>>, vector<1x4x4xf32>
    %71 = vector.shape_cast %70 : vector<1x4x4xf32> to vector<4x4xf32>
    %cst_65 = arith.constant dense<0.000000e+00> : vector<128x4xf32>
    %72 = tpu.matmul %69, %71, %cst_65 {dimension_numbers = #tpu.dot_dimension_numbers<[1], [0], [0], [1], [0, 0, 1, 1], [], []>} : vector<128x4xf32>, vector<4x4xf32>, vector<128x4xf32> -> vector<128x4xf32>
    %c0_66 = arith.constant 0 : index
    %c0_67 = arith.constant 0 : index
    %73 = vector.load %arg11[%c0_66, %c0_67] : memref<128x4xf32, #tpu.memory_space<vmem>>, vector<128x4xf32>
    %74 = arith.addf %73, %72 : vector<128x4xf32>
    %c0_68 = arith.constant 0 : index
    %c0_69 = arith.constant 0 : index
    %75 = vector.load %arg11[%c0_68, %c0_69] : memref<128x4xf32, #tpu.memory_space<vmem>>, vector<128x4xf32>
    tpu.vector_store %arg11[%c0_68, %c0_69], %74 {strides = array<i32>} : memref<128x4xf32, #tpu.memory_space<vmem>>, vector<128x4xf32>,
    %c1_70 = arith.constant 1 : index
    %c1_71 = arith.constant 1 : index
    %c0_72 = arith.constant 0 : index
    %76 = vector.load %arg10[%c1_70, %c1_71, %c0_72] : memref<10x18x4xf32, #tpu.memory_space<vmem>>, vector<8x16x4xf32>
    %77 = vector.shape_cast %76 : vector<8x16x4xf32> to vector<128x4xf32>
    %c4 = arith.constant 4 : index
    %c0_73 = arith.constant 0 : index
    %c0_74 = arith.constant 0 : index
    %78 = vector.load %arg7[%c4, %c0_73, %c0_74] : memref<9x4x4xf32, #tpu.memory_space<vmem>>, vector<1x4x4xf32>
    %79 = vector.shape_cast %78 : vector<1x4x4xf32> to vector<4x4xf32>
    %cst_75 = arith.constant dense<0.000000e+00> : vector<128x4xf32>
    %80 = tpu.matmul %77, %79, %cst_75 {dimension_numbers = #tpu.dot_dimension_numbers<[1], [0], [0], [1], [0, 0, 1, 1], [], []>} : vector<128x4xf32>, vector<4x4xf32>, vector<128x4xf32> -> vector<128x4xf32>
    %c0_76 = arith.constant 0 : index
    %c0_77 = arith.constant 0 : index
    %81 = vector.load %arg11[%c0_76, %c0_77] : memref<128x4xf32, #tpu.memory_space<vmem>>, vector<128x4xf32>
    %82 = arith.addf %81, %80 : vector<128x4xf32>
    %c0_78 = arith.constant 0 : index
    %c0_79 = arith.constant 0 : index
    %83 = vector.load %arg11[%c0_78, %c0_79] : memref<128x4xf32, #tpu.memory_space<vmem>>, vector<128x4xf32>
    tpu.vector_store %arg11[%c0_78, %c0_79], %82 {strides = array<i32>} : memref<128x4xf32, #tpu.memory_space<vmem>>, vector<128x4xf32>,
    %c1_80 = arith.constant 1 : index
    %c2_81 = arith.constant 2 : index
    %c0_82 = arith.constant 0 : index
    %84 = vector.load %arg10[%c1_80, %c2_81, %c0_82] : memref<10x18x4xf32, #tpu.memory_space<vmem>>, vector<8x16x4xf32>
    %85 = vector.shape_cast %84 : vector<8x16x4xf32> to vector<128x4xf32>
    %c5 = arith.constant 5 : index
    %c0_83 = arith.constant 0 : index
    %c0_84 = arith.constant 0 : index
    %86 = vector.load %arg7[%c5, %c0_83, %c0_84] : memref<9x4x4xf32, #tpu.memory_space<vmem>>, vector<1x4x4xf32>
    %87 = vector.shape_cast %86 : vector<1x4x4xf32> to vector<4x4xf32>
    %cst_85 = arith.constant dense<0.000000e+00> : vector<128x4xf32>
    %88 = tpu.matmul %85, %87, %cst_85 {dimension_numbers = #tpu.dot_dimension_numbers<[1], [0], [0], [1], [0, 0, 1, 1], [], []>} : vector<128x4xf32>, vector<4x4xf32>, vector<128x4xf32> -> vector<128x4xf32>
    %c0_86 = arith.constant 0 : index
    %c0_87 = arith.constant 0 : index
    %89 = vector.load %arg11[%c0_86, %c0_87] : memref<128x4xf32, #tpu.memory_space<vmem>>, vector<128x4xf32>
    %90 = arith.addf %89, %88 : vector<128x4xf32>
    %c0_88 = arith.constant 0 : index
    %c0_89 = arith.constant 0 : index
    %91 = vector.load %arg11[%c0_88, %c0_89] : memref<128x4xf32, #tpu.memory_space<vmem>>, vector<128x4xf32>
    tpu.vector_store %arg11[%c0_88, %c0_89], %90 {strides = array<i32>} : memref<128x4xf32, #tpu.memory_space<vmem>>, vector<128x4xf32>,
    %c2_90 = arith.constant 2 : index
    %c0_91 = arith.constant 0 : index
    %c0_92 = arith.constant 0 : index
    %92 = vector.load %arg10[%c2_90, %c0_91, %c0_92] : memref<10x18x4xf32, #tpu.memory_space<vmem>>, vector<8x16x4xf32>
    %93 = vector.shape_cast %92 : vector<8x16x4xf32> to vector<128x4xf32>
    %c6 = arith.constant 6 : index
    %c0_93 = arith.constant 0 : index
    %c0_94 = arith.constant 0 : index
    %94 = vector.load %arg7[%c6, %c0_93, %c0_94] : memref<9x4x4xf32, #tpu.memory_space<vmem>>, vector<1x4x4xf32>
    %95 = vector.shape_cast %94 : vector<1x4x4xf32> to vector<4x4xf32>
    %cst_95 = arith.constant dense<0.000000e+00> : vector<128x4xf32>
    %96 = tpu.matmul %93, %95, %cst_95 {dimension_numbers = #tpu.dot_dimension_numbers<[1], [0], [0], [1], [0, 0, 1, 1], [], []>} : vector<128x4xf32>, vector<4x4xf32>, vector<128x4xf32> -> vector<128x4xf32>
    %c0_96 = arith.constant 0 : index
    %c0_97 = arith.constant 0 : index
    %97 = vector.load %arg11[%c0_96, %c0_97] : memref<128x4xf32, #tpu.memory_space<vmem>>, vector<128x4xf32>
    %98 = arith.addf %97, %96 : vector<128x4xf32>
    %c0_98 = arith.constant 0 : index
    %c0_99 = arith.constant 0 : index
    %99 = vector.load %arg11[%c0_98, %c0_99] : memref<128x4xf32, #tpu.memory_space<vmem>>, vector<128x4xf32>
    tpu.vector_store %arg11[%c0_98, %c0_99], %98 {strides = array<i32>} : memref<128x4xf32, #tpu.memory_space<vmem>>, vector<128x4xf32>,
    %c2_100 = arith.constant 2 : index
    %c1_101 = arith.constant 1 : index
    %c0_102 = arith.constant 0 : index
    %100 = vector.load %arg10[%c2_100, %c1_101, %c0_102] : memref<10x18x4xf32, #tpu.memory_space<vmem>>, vector<8x16x4xf32>
    %101 = vector.shape_cast %100 : vector<8x16x4xf32> to vector<128x4xf32>
    %c7 = arith.constant 7 : index
    %c0_103 = arith.constant 0 : index
    %c0_104 = arith.constant 0 : index
    %102 = vector.load %arg7[%c7, %c0_103, %c0_104] : memref<9x4x4xf32, #tpu.memory_space<vmem>>, vector<1x4x4xf32>
    %103 = vector.shape_cast %102 : vector<1x4x4xf32> to vector<4x4xf32>
    %cst_105 = arith.constant dense<0.000000e+00> : vector<128x4xf32>
    %104 = tpu.matmul %101, %103, %cst_105 {dimension_numbers = #tpu.dot_dimension_numbers<[1], [0], [0], [1], [0, 0, 1, 1], [], []>} : vector<128x4xf32>, vector<4x4xf32>, vector<128x4xf32> -> vector<128x4xf32>
    %c0_106 = arith.constant 0 : index
    %c0_107 = arith.constant 0 : index
    %105 = vector.load %arg11[%c0_106, %c0_107] : memref<128x4xf32, #tpu.memory_space<vmem>>, vector<128x4xf32>
    %106 = arith.addf %105, %104 : vector<128x4xf32>
    %c0_108 = arith.constant 0 : index
    %c0_109 = arith.constant 0 : index
    %107 = vector.load %arg11[%c0_108, %c0_109] : memref<128x4xf32, #tpu.memory_space<vmem>>, vector<128x4xf32>
    tpu.vector_store %arg11[%c0_108, %c0_109], %106 {strides = array<i32>} : memref<128x4xf32, #tpu.memory_space<vmem>>, vector<128x4xf32>,
    %c2_110 = arith.constant 2 : index
    %c2_111 = arith.constant 2 : index
    %c0_112 = arith.constant 0 : index
    %108 = vector.load %arg10[%c2_110, %c2_111, %c0_112] : memref<10x18x4xf32, #tpu.memory_space<vmem>>, vector<8x16x4xf32>
    %109 = vector.shape_cast %108 : vector<8x16x4xf32> to vector<128x4xf32>
    %c8 = arith.constant 8 : index
    %c0_113 = arith.constant 0 : index
    %c0_114 = arith.constant 0 : index
    %110 = vector.load %arg7[%c8, %c0_113, %c0_114] : memref<9x4x4xf32, #tpu.memory_space<vmem>>, vector<1x4x4xf32>
    %111 = vector.shape_cast %110 : vector<1x4x4xf32> to vector<4x4xf32>
    %cst_115 = arith.constant dense<0.000000e+00> : vector<128x4xf32>
    %112 = tpu.matmul %109, %111, %cst_115 {dimension_numbers = #tpu.dot_dimension_numbers<[1], [0], [0], [1], [0, 0, 1, 1], [], []>} : vector<128x4xf32>, vector<4x4xf32>, vector<128x4xf32> -> vector<128x4xf32>
    %c0_116 = arith.constant 0 : index
    %c0_117 = arith.constant 0 : index
    %113 = vector.load %arg11[%c0_116, %c0_117] : memref<128x4xf32, #tpu.memory_space<vmem>>, vector<128x4xf32>
    %114 = arith.addf %113, %112 : vector<128x4xf32>
    %c0_118 = arith.constant 0 : index
    %c0_119 = arith.constant 0 : index
    %115 = vector.load %arg11[%c0_118, %c0_119] : memref<128x4xf32, #tpu.memory_space<vmem>>, vector<128x4xf32>
    tpu.vector_store %arg11[%c0_118, %c0_119], %114 {strides = array<i32>} : memref<128x4xf32, #tpu.memory_space<vmem>>, vector<128x4xf32>,
    %c0_120 = arith.constant 0 : index
    %c0_121 = arith.constant 0 : index
    %116 = vector.load %arg11[%c0_120, %c0_121] : memref<128x4xf32, #tpu.memory_space<vmem>>, vector<128x4xf32>
    %cst_122 = arith.constant dense<0.000000e+00> : vector<4xf32>
    %117 = vector.multi_reduction <add>, %116, %cst_122 [0] : vector<128x4xf32> to vector<4xf32>
    %118 = vector.shape_cast %117 : vector<4xf32> to vector<1x1x1x4xf32>
    %119 = arith.mulf %116, %116 : vector<128x4xf32>
    %cst_123 = arith.constant dense<0.000000e+00> : vector<4xf32>
    %120 = vector.multi_reduction <add>, %119, %cst_123 [0] : vector<128x4xf32> to vector<4xf32>
    %121 = vector.shape_cast %120 : vector<4xf32> to vector<1x1x1x4xf32>
    %122 = tpu.concatenate %118, %121 in 2 : vector<1x1x1x4xf32>, vector<1x1x1x4xf32> -> vector<1x1x2x4xf32>
    %c0_124 = arith.constant 0 : index
    %c0_125 = arith.constant 0 : index
    %c0_126 = arith.constant 0 : index
    %c0_127 = arith.constant 0 : index
    %123 = vector.load %arg9[%c0_124, %c0_125, %c0_126, %c0_127] : memref<1x1x2x4xf32, #tpu.memory_space<vmem>>, vector<1x1x2x4xf32>
    tpu.vector_store %arg9[%c0_124, %c0_125, %c0_126, %c0_127], %122 {strides = array<i32>} : memref<1x1x2x4xf32, #tpu.memory_space<vmem>>, vector<1x1x2x4xf32>,
    %124 = vector.shape_cast %116 : vector<128x4xf32> to vector<1x8x16x4xf32>
    %c0_128 = arith.constant 0 : index
    %c0_129 = arith.constant 0 : index
    %c0_130 = arith.constant 0 : index
    %c0_131 = arith.constant 0 : index
    %125 = vector.load %arg8[%c0_128, %c0_129, %c0_130, %c0_131] : memref<1x8x16x4xf32, #tpu.memory_space<vmem>>, vector<1x8x16x4xf32>
    tpu.vector_store %arg8[%c0_128, %c0_129, %c0_130, %c0_131], %124 {strides = array<i32>} : memref<1x8x16x4xf32, #tpu.memory_space<vmem>>, vector<1x8x16x4xf32>,
    return
  }
  func.func @transform_0(%arg0: i32, %arg1: i32) -> (i32, i32, i32, i32) {
    %c0_i32 = arith.constant 0 : i32
    %c0_i32_0 = arith.constant 0 : i32
    %c0_i32_1 = arith.constant 0 : i32
    return %arg0, %arg1, %c0_i32, %c0_i32_0 : i32, i32, i32, i32
  }
  func.func @transform_1(%arg0: i32, %arg1: i32) -> (i32, i32, i32, i32) {
    %c8_i32 = arith.constant 8 : i32
    %0 = arith.muli %arg1, %c8_i32 : i32
    %c1_i32 = arith.constant 1 : i32
    %1 = arith.subi %0, %c1_i32 : i32
    %c0_i32 = arith.constant 0 : i32
    %2 = arith.maxsi %1, %c0_i32 : i32
    %c0_i32_0 = arith.constant 0 : i32
    %c0_i32_1 = arith.constant 0 : i32
    %c0_i32_2 = arith.constant 0 : i32
    return %arg0, %2, %c0_i32_0, %c0_i32_1 : i32, i32, i32, i32
  }
  func.func @transform_2(%arg0: i32, %arg1: i32) -> (i32, i32, i32, i32) {
    %c8_i32 = arith.constant 8 : i32
    %0 = arith.muli %arg1, %c8_i32 : i32
    %c8_i32_0 = arith.constant 8 : i32
    %1 = arith.addi %0, %c8_i32_0 : i32
    %c15_i32 = arith.constant 15 : i32
    %2 = arith.minsi %1, %c15_i32 : i32
    %c0_i32 = arith.constant 0 : i32
    %c0_i32_1 = arith.constant 0 : i32
    %c0_i32_2 = arith.constant 0 : i32
    return %arg0, %2, %c0_i32, %c0_i32_1 : i32, i32, i32, i32
  }
  func.func @transform_3(%arg0: i32, %arg1: i32) -> (i32, i32) {
    %c0_i32 = arith.constant 0 : i32
    %c0_i32_0 = arith.constant 0 : i32
    %c0_i32_1 = arith.constant 0 : i32
    return %c0_i32, %c0_i32_0 : i32, i32
  }
  func.func @transform_4(%arg0: i32, %arg1: i32) -> (i32, i32) {
    %c0_i32 = arith.constant 0 : i32
    %c0_i32_0 = arith.constant 0 : i32
    %c0_i32_1 = arith.constant 0 : i32
    return %c0_i32, %c0_i32_0 : i32, i32
  }
  func.func @transform_5(%arg0: i32, %arg1: i32) -> (i32, i32, i32) {
    %c0_i32 = arith.constant 0 : i32
    %c0_i32_0 = arith.constant 0 : i32
    %c0_i32_1 = arith.constant 0 : i32
    %c0_i32_2 = arith.constant 0 : i32
    return %c0_i32, %c0_i32_0, %c0_i32_1 : i32, i32, i32
  }
  func.func @transform_6(%arg0: i32, %arg1: i32) -> (i32, i32, i32, i32) {
    %c0_i32 = arith.constant 0 : i32
    %c0_i32_0 = arith.constant 0 : i32
    %c0_i32_1 = arith.constant 0 : i32
    return %arg0, %arg1, %c0_i32, %c0_i32_0 : i32, i32, i32, i32
  }
  func.func @transform_7(%arg0: i32, %arg1: i32) -> (i32, i32, i32, i32) {
    %c0_i32 = arith.constant 0 : i32
    %c0_i32_0 = arith.constant 0 : i32
    %c0_i32_1 = arith.constant 0 : i32
    return %arg0, %arg1, %c0_i32, %c0_i32_0 : i32, i32, i32, i32
  }
}

module attributes {stable_mosaic.version = 11 : i64} {
  func.func @_bn_conv1x1_stats_kernel(%arg0: i32, %arg1: memref<512x4xf32, #tpu.memory_space<vmem>>, %arg2: memref<1x4xf32, #tpu.memory_space<vmem>>, %arg3: memref<1x4xf32, #tpu.memory_space<vmem>>, %arg4: memref<4x16xf32, #tpu.memory_space<vmem>>, %arg5: memref<512x16xf32, #tpu.memory_space<vmem>>, %arg6: memref<1x2x16xf32, #tpu.memory_space<vmem>>) attributes {dimension_semantics = [#tpu.dimension_semantics<parallel>], iteration_bounds = array<i64: 1>, scalar_prefetch = 0 : i64, scratch_operands = 0 : i64, tpu.core_type = #tpu.core_type<tc>, window_params = [{transform_indices = @transform_0, window_bounds = array<i64: 512, 4>}, {pipeline_mode = #tpu.pipeline_mode<synchronous>, transform_indices = @transform_1, window_bounds = array<i64: 1, 4>}, {pipeline_mode = #tpu.pipeline_mode<synchronous>, transform_indices = @transform_2, window_bounds = array<i64: 1, 4>}, {pipeline_mode = #tpu.pipeline_mode<synchronous>, transform_indices = @transform_3, window_bounds = array<i64: 4, 16>}, {transform_indices = @transform_4, window_bounds = array<i64: 512, 16>}, {transform_indices = @transform_5, window_bounds = array<i64: 1, 2, 16>}]} {
    %c0 = arith.constant 0 : index
    %c0_0 = arith.constant 0 : index
    %0 = vector.load %arg1[%c0, %c0_0] : memref<512x4xf32, #tpu.memory_space<vmem>>, vector<512x4xf32>
    %c0_1 = arith.constant 0 : index
    %c0_2 = arith.constant 0 : index
    %1 = vector.load %arg2[%c0_1, %c0_2] : memref<1x4xf32, #tpu.memory_space<vmem>>, vector<1x4xf32>
    %2 = vector.broadcast %1 : vector<1x4xf32> to vector<512x4xf32>
    %3 = arith.mulf %0, %2 : vector<512x4xf32>
    %c0_3 = arith.constant 0 : index
    %c0_4 = arith.constant 0 : index
    %4 = vector.load %arg3[%c0_3, %c0_4] : memref<1x4xf32, #tpu.memory_space<vmem>>, vector<1x4xf32>
    %5 = vector.broadcast %4 : vector<1x4xf32> to vector<512x4xf32>
    %6 = arith.addf %3, %5 : vector<512x4xf32>
    %cst = arith.constant 0.000000e+00 : f32
    %7 = vector.broadcast %cst : f32 to vector<512x4xf32>
    %8 = arith.maximumf %6, %7 : vector<512x4xf32>
    %c0_5 = arith.constant 0 : index
    %c0_6 = arith.constant 0 : index
    %9 = vector.load %arg4[%c0_5, %c0_6] : memref<4x16xf32, #tpu.memory_space<vmem>>, vector<4x16xf32>
    %cst_7 = arith.constant dense<0.000000e+00> : vector<512x16xf32>
    %10 = tpu.matmul %8, %9, %cst_7 {dimension_numbers = #tpu.dot_dimension_numbers<[1], [0], [0], [1], [0, 0, 1, 1], [], []>} : vector<512x4xf32>, vector<4x16xf32>, vector<512x16xf32> -> vector<512x16xf32>
    %c0_8 = arith.constant 0 : index
    %c0_9 = arith.constant 0 : index
    %11 = vector.load %arg5[%c0_8, %c0_9] : memref<512x16xf32, #tpu.memory_space<vmem>>, vector<512x16xf32>
    tpu.vector_store %arg5[%c0_8, %c0_9], %10 {strides = array<i32>} : memref<512x16xf32, #tpu.memory_space<vmem>>, vector<512x16xf32>,
    %cst_10 = arith.constant dense<0.000000e+00> : vector<16xf32>
    %12 = vector.multi_reduction <add>, %10, %cst_10 [0] : vector<512x16xf32> to vector<16xf32>
    %13 = vector.shape_cast %12 : vector<16xf32> to vector<1x1x16xf32>
    %14 = arith.mulf %10, %10 : vector<512x16xf32>
    %cst_11 = arith.constant dense<0.000000e+00> : vector<16xf32>
    %15 = vector.multi_reduction <add>, %14, %cst_11 [0] : vector<512x16xf32> to vector<16xf32>
    %16 = vector.shape_cast %15 : vector<16xf32> to vector<1x1x16xf32>
    %17 = tpu.concatenate %13, %16 in 1 : vector<1x1x16xf32>, vector<1x1x16xf32> -> vector<1x2x16xf32>
    %c0_12 = arith.constant 0 : index
    %c0_13 = arith.constant 0 : index
    %c0_14 = arith.constant 0 : index
    %18 = vector.load %arg6[%c0_12, %c0_13, %c0_14] : memref<1x2x16xf32, #tpu.memory_space<vmem>>, vector<1x2x16xf32>
    tpu.vector_store %arg6[%c0_12, %c0_13, %c0_14], %17 {strides = array<i32>} : memref<1x2x16xf32, #tpu.memory_space<vmem>>, vector<1x2x16xf32>,
    return
  }
  func.func @transform_0(%arg0: i32) -> (i32, i32) {
    %c0_i32 = arith.constant 0 : i32
    %c0_i32_0 = arith.constant 0 : i32
    return %arg0, %c0_i32 : i32, i32
  }
  func.func @transform_1(%arg0: i32) -> (i32, i32) {
    %c0_i32 = arith.constant 0 : i32
    %c0_i32_0 = arith.constant 0 : i32
    %c0_i32_1 = arith.constant 0 : i32
    return %c0_i32, %c0_i32_0 : i32, i32
  }
  func.func @transform_2(%arg0: i32) -> (i32, i32) {
    %c0_i32 = arith.constant 0 : i32
    %c0_i32_0 = arith.constant 0 : i32
    %c0_i32_1 = arith.constant 0 : i32
    return %c0_i32, %c0_i32_0 : i32, i32
  }
  func.func @transform_3(%arg0: i32) -> (i32, i32) {
    %c0_i32 = arith.constant 0 : i32
    %c0_i32_0 = arith.constant 0 : i32
    %c0_i32_1 = arith.constant 0 : i32
    return %c0_i32, %c0_i32_0 : i32, i32
  }
  func.func @transform_4(%arg0: i32) -> (i32, i32) {
    %c0_i32 = arith.constant 0 : i32
    %c0_i32_0 = arith.constant 0 : i32
    return %arg0, %c0_i32 : i32, i32
  }
  func.func @transform_5(%arg0: i32) -> (i32, i32, i32) {
    %c0_i32 = arith.constant 0 : i32
    %c0_i32_0 = arith.constant 0 : i32
    %c0_i32_1 = arith.constant 0 : i32
    return %arg0, %c0_i32, %c0_i32_0 : i32, i32, i32
  }
}

module attributes {stable_mosaic.version = 11 : i64} {
  func.func @_bn_add_relu_kernel(%arg0: i32, %arg1: memref<512x16xf32, #tpu.memory_space<vmem>>, %arg2: memref<1x16xf32, #tpu.memory_space<vmem>>, %arg3: memref<1x16xf32, #tpu.memory_space<vmem>>, %arg4: memref<512x16xf32, #tpu.memory_space<vmem>>, %arg5: memref<512x16xf32, #tpu.memory_space<vmem>>) attributes {dimension_semantics = [#tpu.dimension_semantics<parallel>], iteration_bounds = array<i64: 1>, scalar_prefetch = 0 : i64, scratch_operands = 0 : i64, tpu.core_type = #tpu.core_type<tc>, window_params = [{transform_indices = @transform_0, window_bounds = array<i64: 512, 16>}, {pipeline_mode = #tpu.pipeline_mode<synchronous>, transform_indices = @transform_1, window_bounds = array<i64: 1, 16>}, {pipeline_mode = #tpu.pipeline_mode<synchronous>, transform_indices = @transform_2, window_bounds = array<i64: 1, 16>}, {transform_indices = @transform_3, window_bounds = array<i64: 512, 16>}, {transform_indices = @transform_4, window_bounds = array<i64: 512, 16>}]} {
    %c0 = arith.constant 0 : index
    %c0_0 = arith.constant 0 : index
    %0 = vector.load %arg1[%c0, %c0_0] : memref<512x16xf32, #tpu.memory_space<vmem>>, vector<512x16xf32>
    %c0_1 = arith.constant 0 : index
    %c0_2 = arith.constant 0 : index
    %1 = vector.load %arg2[%c0_1, %c0_2] : memref<1x16xf32, #tpu.memory_space<vmem>>, vector<1x16xf32>
    %2 = vector.broadcast %1 : vector<1x16xf32> to vector<512x16xf32>
    %3 = arith.mulf %0, %2 : vector<512x16xf32>
    %c0_3 = arith.constant 0 : index
    %c0_4 = arith.constant 0 : index
    %4 = vector.load %arg3[%c0_3, %c0_4] : memref<1x16xf32, #tpu.memory_space<vmem>>, vector<1x16xf32>
    %5 = vector.broadcast %4 : vector<1x16xf32> to vector<512x16xf32>
    %6 = arith.addf %3, %5 : vector<512x16xf32>
    %c0_5 = arith.constant 0 : index
    %c0_6 = arith.constant 0 : index
    %7 = vector.load %arg4[%c0_5, %c0_6] : memref<512x16xf32, #tpu.memory_space<vmem>>, vector<512x16xf32>
    %8 = arith.addf %6, %7 : vector<512x16xf32>
    %cst = arith.constant 0.000000e+00 : f32
    %9 = vector.broadcast %cst : f32 to vector<512x16xf32>
    %10 = arith.maximumf %8, %9 : vector<512x16xf32>
    %c0_7 = arith.constant 0 : index
    %c0_8 = arith.constant 0 : index
    %11 = vector.load %arg5[%c0_7, %c0_8] : memref<512x16xf32, #tpu.memory_space<vmem>>, vector<512x16xf32>
    tpu.vector_store %arg5[%c0_7, %c0_8], %10 {strides = array<i32>} : memref<512x16xf32, #tpu.memory_space<vmem>>, vector<512x16xf32>,
    return
  }
  func.func @transform_0(%arg0: i32) -> (i32, i32) {
    %c0_i32 = arith.constant 0 : i32
    %c0_i32_0 = arith.constant 0 : i32
    return %arg0, %c0_i32 : i32, i32
  }
  func.func @transform_1(%arg0: i32) -> (i32, i32) {
    %c0_i32 = arith.constant 0 : i32
    %c0_i32_0 = arith.constant 0 : i32
    %c0_i32_1 = arith.constant 0 : i32
    return %c0_i32, %c0_i32_0 : i32, i32
  }
  func.func @transform_2(%arg0: i32) -> (i32, i32) {
    %c0_i32 = arith.constant 0 : i32
    %c0_i32_0 = arith.constant 0 : i32
    %c0_i32_1 = arith.constant 0 : i32
    return %c0_i32, %c0_i32_0 : i32, i32
  }
  func.func @transform_3(%arg0: i32) -> (i32, i32) {
    %c0_i32 = arith.constant 0 : i32
    %c0_i32_0 = arith.constant 0 : i32
    return %arg0, %c0_i32 : i32, i32
  }
  func.func @transform_4(%arg0: i32) -> (i32, i32) {
    %c0_i32 = arith.constant 0 : i32
    %c0_i32_0 = arith.constant 0 : i32
    return %arg0, %c0_i32 : i32, i32
  }
}

</mosaic_0001>

<bundles_post_ra>
// kernel: bottleneck_forward.4
= control target key start
LH: loop header
LB: loop body
LE: loop exit
PB: predicated region body
PF: predicated region fallthrough
CT: control target
= control target key end

     0   :  { %vm79_vm0 = vcmask 130048   ;;  %vm481_vm1 = vcmask 31744   ;;  %vm876_vm2 = vcmask 1040384   ;;  %vm878_vm3 = vcmask 25600   ;;  %s1921_s1 = inlined_call_operand.vmem [shape: f32[16,4], index: 1, kind: input, shape index: {}]   ;;  %s1922_s0 = inlined_call_operand.vmem [shape: f32[512,16], index: 0, kind: input, shape index: {}]   ;;  %s1923_s2 = inlined_call_operand.vmem [shape: f32[512,4], index: 2, kind: output, shape index: {0}]   ;;  %s1924_s3 = inlined_call_operand.vmem [shape: f32[1,2,4], index: 3, kind: output, shape index: {1}]  }
   0x1   :  { %v78_v0 = vld [vmem:[%s1921_s1 + $0x8] sm:$0xff]  ;;  %v77_v1 = vld [vmem:[%s1921_s1] sm:$0xff]  ;;  %v15_v6 = vld [vmem:[%s1922_s0 + $0x10] sm:$0xff] }
   0x2   :  { %286 = vmatpush.msra.mxu0 %v78_v0  ;;  %v13_v2 = vld [vmem:[%s1922_s0] sm:$0xff]  ;;  %952 = vmatpush.msra.mxu1 %v78_v0  ;;  %v14_v4 = vld [vmem:[%s1922_s0 + $0x8] sm:$0xff]  ;;  %v31_v7 = vld [vmem:[%s1922_s0 + $0x90] sm:$0xff] }
   0x3   :  { %953 = vmatpush.msra.mxu2 %v78_v0  ;;  %954 = vmatpush.msra.mxu3 %v78_v0  ;;  %v29_v3 = vld [vmem:[%s1922_s0 + $0x80] sm:$0xff]  ;;  %v30_v5 = vld [vmem:[%s1922_s0 + $0x88] sm:$0xff]  ;;  %v16_v8 = vld [vmem:[%s1922_s0 + $0x18] sm:$0xff] }
   0x4   :  { %287 = vmatpush.msra.mxu0 %v77_v1  ;;  %955 = vmatpush.msra.mxu1 %v77_v1  ;;  %v32_v9 = vld [vmem:[%s1922_s0 + $0x98] sm:$0xff]  ;;  %v45_v10 = vld [vmem:[%s1922_s0 + $0x100] sm:$0xff]  ;;  %v46_v13 = vld [vmem:[%s1922_s0 + $0x108] sm:$0xff] }
   0x5   :  { %888 = vmatmul.msk.f32.vlgmr.msra.gmra.mxu0 %vm79_vm0, %v13_v2  ;;  %904 = vmatmul.msk.f32.vlgmr.msra.gmra.mxu1 %vm79_vm0, %v29_v3  ;;  %v17_v11 = vld [vmem:[%s1922_s0 + $0x20] sm:$0xff]  ;;  %v18_v14 = vld [vmem:[%s1922_s0 + $0x28] sm:$0xff]  ;;  %v47_v16 = vld [vmem:[%s1922_s0 + $0x110] sm:$0xff] }
   0x6   :  { %956 = vmatpush.msra.mxu2 %v77_v1  ;;  %957 = vmatpush.msra.mxu3 %v77_v1  ;;  %v33_v12 = vld [vmem:[%s1922_s0 + $0xa0] sm:$0xff]  ;;  %v34_v15 = vld [vmem:[%s1922_s0 + $0xa8] sm:$0xff]  ;;  %v19_v17 = vld [vmem:[%s1922_s0 + $0x30] sm:$0xff] }
   0x7   :  { %920 = vmatmul.msk.f32.vlgmr.msra.gmra.mxu2 %vm79_vm0, %v45_v10  ;;  %v35_v18 = vld [vmem:[%s1922_s0 + $0xb0] sm:$0xff]  ;;  %v48_v19 = vld [vmem:[%s1922_s0 + $0x118] sm:$0xff]  ;;  %v49_v22 = vld [vmem:[%s1922_s0 + $0x120] sm:$0xff] }
   0x8   :  { %v20_v20 = vld [vmem:[%s1922_s0 + $0x38] sm:$0xff]  ;;  %v61_v23 = vld [vmem:[%s1922_s0 + $0x180] sm:$0xff]  ;;  %v50_v26 = vld [vmem:[%s1922_s0 + $0x128] sm:$0xff] }
   0x9   :  { %v36_v21 = vld [vmem:[%s1922_s0 + $0xb8] sm:$0xff]  ;;  %936 = vmatmul.msk.f32.vlgmr.msra.gmra.mxu3 %vm79_vm0, %v61_v23  ;;  %v21_v24 = vld [vmem:[%s1922_s0 + $0x40] sm:$0xff]  ;;  %v62_v27 = vld [vmem:[%s1922_s0 + $0x188] sm:$0xff] }
   0xa   :  { %v37_v25 = vld [vmem:[%s1922_s0 + $0xc0] sm:$0xff]  ;;  %v22_v28 = vld [vmem:[%s1922_s0 + $0x48] sm:$0xff]  ;;  %v51_v30 = vld [vmem:[%s1922_s0 + $0x130] sm:$0xff] }
   0xb   :  { %v38_v29 = vld [vmem:[%s1922_s0 + $0xc8] sm:$0xff]  ;;  %v63_v31 = vld [vmem:[%s1922_s0 + $0x190] sm:$0xff]  ;;  %v52_v34 = vld [vmem:[%s1922_s0 + $0x138] sm:$0xff] }
   0xc   :  { %v23_v32 = vld [vmem:[%s1922_s0 + $0x50] sm:$0xff]  ;;  %v64_v35 = vld [vmem:[%s1922_s0 + $0x198] sm:$0xff]  ;;  %v53_v38 = vld [vmem:[%s1922_s0 + $0x140] sm:$0xff] }
   0xd   :  { %889 = vmatmul.msk.f32.gmra.mxu0 %vm79_vm0, %v14_v4  ;;  %905 = vmatmul.msk.f32.gmra.mxu1 %vm79_vm0, %v30_v5  ;;  %v39_v33 = vld [vmem:[%s1922_s0 + $0xd0] sm:$0xff]  ;;  %v24_v36 = vld [vmem:[%s1922_s0 + $0x58] sm:$0xff]  ;;  %v65_v39 = vld [vmem:[%s1922_s0 + $0x1a0] sm:$0xff] }
   0xe   :  { %v40_v37 = vld [vmem:[%s1922_s0 + $0xd8] sm:$0xff]  ;;  %v25_v40 = vld [vmem:[%s1922_s0 + $0x60] sm:$0xff]  ;;  %v54_v42 = vld [vmem:[%s1922_s0 + $0x148] sm:$0xff] }
   0xf   :  { %921 = vmatmul.msk.f32.gmra.mxu2 %vm79_vm0, %v46_v13  ;;  %v41_v41 = vld [vmem:[%s1922_s0 + $0xe0] sm:$0xff]  ;;  %v66_v43 = vld [vmem:[%s1922_s0 + $0x1a8] sm:$0xff]  ;;  %v55_v46 = vld [vmem:[%s1922_s0 + $0x150] sm:$0xff] }
  0x10   :  { %v26_v44 = vld [vmem:[%s1922_s0 + $0x68] sm:$0xff]  ;;  %v67_v47 = vld [vmem:[%s1922_s0 + $0x1b0] sm:$0xff]  ;;  %v56_v50 = vld [vmem:[%s1922_s0 + $0x158] sm:$0xff] }
  0x11   :  { %937 = vmatmul.msk.f32.gmra.mxu3 %vm79_vm0, %v62_v27  ;;  %v42_v45 = vld [vmem:[%s1922_s0 + $0xe8] sm:$0xff]  ;;  %v27_v48 = vld [vmem:[%s1922_s0 + $0x70] sm:$0xff]  ;;  %v68_v51 = vld [vmem:[%s1922_s0 + $0x1b8] sm:$0xff] }
  0x12   :  { %v43_v49 = vld [vmem:[%s1922_s0 + $0xf0] sm:$0xff]  ;;  %v28_v52 = vld [vmem:[%s1922_s0 + $0x78] sm:$0xff]  ;;  %v57_v54 = vld [vmem:[%s1922_s0 + $0x160] sm:$0xff] }
  0x13   :  { %v44_v53 = vld [vmem:[%s1922_s0 + $0xf8] sm:$0xff]  ;;  %v69_v55 = vld [vmem:[%s1922_s0 + $0x1c0] sm:$0xff]  ;;  %v58_v58 = vld [vmem:[%s1922_s0 + $0x168] sm:$0xff] }
  0x14   :  { %v70_v59 = vld [vmem:[%s1922_s0 + $0x1c8] sm:$0xff] }
  0x15   :  { %890 = vmatmul.msk.f32.gmra.mxu0 %vm79_vm0, %v15_v6  ;;  %906 = vmatmul.msk.f32.gmra.mxu1 %vm79_vm0, %v31_v7  ;;  %v59_v6 = vld [vmem:[%s1922_s0 + $0x170] sm:$0xff] }
  0x16   :  { %v71_v7 = vld [vmem:[%s1922_s0 + $0x1d0] sm:$0xff] }
  0x17   :  { %922 = vmatmul.msk.f32.gmra.mxu2 %vm79_vm0, %v47_v16  ;;  %v72_v16 = vld [vmem:[%s1922_s0 + $0x1d8] sm:$0xff] }
  0x19   :  { %938 = vmatmul.msk.f32.gmra.mxu3 %vm79_vm0, %v63_v31 }
  0x1d   :  { %891 = vmatmul.msk.f32.gmra.mxu0 %vm79_vm0, %v16_v8  ;;  %907 = vmatmul.msk.f32.gmra.mxu1 %vm79_vm0, %v32_v9 }
  0x1f   :  { %923 = vmatmul.msk.f32.gmra.mxu2 %vm79_vm0, %v48_v19 }
  0x21   :  { %939 = vmatmul.msk.f32.gmra.mxu3 %vm79_vm0, %v64_v35 }
  0x25   :  { %892 = vmatmul.msk.f32.gmra.mxu0 %vm79_vm0, %v17_v11  ;;  %908 = vmatmul.msk.f32.gmra.mxu1 %vm79_vm0, %v33_v12 }
  0x27   :  { %924 = vmatmul.msk.f32.gmra.mxu2 %vm79_vm0, %v49_v22 }
  0x29   :  { %940 = vmatmul.msk.f32.gmra.mxu3 %vm79_vm0, %v65_v39 }
  0x2d   :  { %893 = vmatmul.msk.f32.gmra.mxu0 %vm79_vm0, %v18_v14  ;;  %909 = vmatmul.msk.f32.gmra.mxu1 %vm79_vm0, %v34_v15  ;;  %v60_v15 = vld [vmem:[%s1922_s0 + $0x178] sm:$0xff] }
  0x2f   :  { %925 = vmatmul.msk.f32.gmra.mxu2 %vm79_vm0, %v50_v26 }
  0x31   :  { %941 = vmatmul.msk.f32.gmra.mxu3 %vm79_vm0, %v66_v43 }
  0x35   :  { %894 = vmatmul.msk.f32.gmra.mxu0 %vm79_vm0, %v19_v17  ;;  %910 = vmatmul.msk.f32.gmra.mxu1 %vm79_vm0, %v35_v18 }
  0x37   :  { %926 = vmatmul.msk.f32.gmra.mxu2 %vm79_vm0, %v51_v30 }
  0x39   :  { %942 = vmatmul.msk.f32.gmra.mxu3 %vm79_vm0, %v67_v47 }
  0x3d   :  { %895 = vmatmul.msk.f32.gmra.mxu0 %vm79_vm0, %v20_v20  ;;  %911 = vmatmul.msk.f32.gmra.mxu1 %vm79_vm0, %v36_v21 }
  0x3f   :  { %927 = vmatmul.msk.f32.gmra.mxu2 %vm79_vm0, %v52_v34 }
  0x41   :  { %943 = vmatmul.msk.f32.gmra.mxu3 %vm79_vm0, %v68_v51 }
  0x45   :  { %896 = vmatmul.msk.f32.gmra.mxu0 %vm79_vm0, %v21_v24  ;;  %912 = vmatmul.msk.f32.gmra.mxu1 %vm79_vm0, %v37_v25  ;;  %v73_v24 = vld [vmem:[%s1922_s0 + $0x1e0] sm:$0xff] }
  0x47   :  { %928 = vmatmul.msk.f32.gmra.mxu2 %vm79_vm0, %v53_v38 }
  0x49   :  { %944 = vmatmul.msk.f32.gmra.mxu3 %vm79_vm0, %v69_v55 }
  0x4d   :  { %897 = vmatmul.msk.f32.gmra.mxu0 %vm79_vm0, %v22_v28  ;;  %913 = vmatmul.msk.f32.gmra.mxu1 %vm79_vm0, %v38_v29 }
  0x4f   :  { %929 = vmatmul.msk.f32.gmra.mxu2 %vm79_vm0, %v54_v42 }
  0x51   :  { %945 = vmatmul.msk.f32.gmra.mxu3 %vm79_vm0, %v70_v59 }
  0x55   :  { %898 = vmatmul.msk.f32.gmra.mxu0 %vm79_vm0, %v23_v32  ;;  %914 = vmatmul.msk.f32.gmra.mxu1 %vm79_vm0, %v39_v33  ;;  %v74_v33 = vld [vmem:[%s1922_s0 + $0x1e8] sm:$0xff] }
  0x57   :  { %930 = vmatmul.msk.f32.gmra.mxu2 %vm79_vm0, %v55_v46 }
  0x59   :  { %946 = vmatmul.msk.f32.gmra.mxu3 %vm79_vm0, %v71_v7 }
  0x5d   :  { %899 = vmatmul.msk.f32.gmra.mxu0 %vm79_vm0, %v24_v36  ;;  %915 = vmatmul.msk.f32.gmra.mxu1 %vm79_vm0, %v40_v37  ;;  %v75_v37 = vld [vmem:[%s1922_s0 + $0x1f0] sm:$0xff] }
  0x5f   :  { %931 = vmatmul.msk.f32.gmra.mxu2 %vm79_vm0, %v56_v50 }
  0x61   :  { %947 = vmatmul.msk.f32.gmra.mxu3 %vm79_vm0, %v72_v16 }
  0x65   :  { %900 = vmatmul.msk.f32.gmra.mxu0 %vm79_vm0, %v25_v40  ;;  %916 = vmatmul.msk.f32.gmra.mxu1 %vm79_vm0, %v41_v41  ;;  %v76_v41 = vld [vmem:[%s1922_s0 + $0x1f8] sm:$0xff] }
  0x67   :  { %932 = vmatmul.msk.f32.gmra.mxu2 %vm79_vm0, %v57_v54 }
  0x69   :  { %948 = vmatmul.msk.f32.gmra.mxu3 %vm79_vm0, %v73_v24 }
  0x6d   :  { %901 = vmatmul.msk.f32.gmra.mxu0 %vm79_vm0, %v26_v44  ;;  %917 = vmatmul.msk.f32.gmra.mxu1 %vm79_vm0, %v42_v45 }
  0x6f   :  { %933 = vmatmul.msk.f32.gmra.mxu2 %vm79_vm0, %v58_v58 }
  0x71   :  { %949 = vmatmul.msk.f32.gmra.mxu3 %vm79_vm0, %v74_v33 }
  0x75   :  { %902 = vmatmul.msk.f32.gmra.mxu0 %vm79_vm0, %v27_v48  ;;  %918 = vmatmul.msk.f32.gmra.mxu1 %vm79_vm0, %v43_v49 }
  0x77   :  { %934 = vmatmul.msk.f32.gmra.mxu2 %vm79_vm0, %v59_v6 }
  0x79   :  { %950 = vmatmul.msk.f32.gmra.mxu3 %vm79_vm0, %v75_v37 }
  0x7d   :  { %903 = vmatmul.msk.f32.gmra.mxu0 %vm79_vm0, %v28_v52  ;;  %919 = vmatmul.msk.f32.gmra.mxu1 %vm79_vm0, %v44_v53 }
  0x7f   :  { %935 = vmatmul.msk.f32.gmra.mxu2 %vm79_vm0, %v60_v15 }
  0x81   :  { %951 = vmatmul.msk.f32.gmra.mxu3 %vm79_vm0, %v76_v41 }
  0x82   :  { %v289_v56 = vpop.f32.mrf.mxu0  ;;  %v1200_v57 = vpop.f32.mrf.mxu1 }
  0x83   :  { %482 = vst.msk [vmem:[%s1923_s2] sm:$0xff] %vm481_vm1, %v289_v56  ;;  %v679_v60 = vmul.f32 %v289_v56, %v289_v56  ;;  %v546_v63 = vsel %vm481_vm1, %v289_v56, 0.0 }
  0x84   :  { %498 = vst.msk [vmem:[%s1923_s2 + $0x80] sm:$0xff] %vm481_vm1, %v1200_v57 }
  0x85   :  { %v743_v3 = vsel %vm481_vm1, %v679_v60, 0.0 }
  0x8a   :  { %v292_v61 = vpop.f32.mrf.mxu0  ;;  %v1219_v62 = vpop.f32.mrf.mxu1 }
  0x8b   :  { %483 = vst.msk [vmem:[%s1923_s2 + $0x8] sm:$0xff] %vm481_vm1, %v292_v61  ;;  %v547_v0 = vsel %vm481_vm1, %v292_v61, 0.0  ;;  %v680_v1 = vmul.f32 %v292_v61, %v292_v61  ;;  %v1287_v29 = vpop.f32.mrf.mxu2 }
  0x8c   :  { %v548_v2 = vadd.f32 %v547_v0, %v546_v63  ;;  %499 = vst.msk [vmem:[%s1923_s2 + $0x88] sm:$0xff] %vm481_vm1, %v1219_v62  ;;  %v1378_v48 = vpop.f32.mrf.mxu3 }
  0x8d   :  { %v744_v4 = vsel %vm481_vm1, %v680_v1, 0.0  ;;  %514 = vst.msk [vmem:[%s1923_s2 + $0x100] sm:$0xff] %vm481_vm1, %v1287_v29 }
  0x8e   :  { %v745_v5 = vadd.f32 %v744_v4, %v743_v3  ;;  %530 = vst.msk [vmem:[%s1923_s2 + $0x180] sm:$0xff] %vm481_vm1, %v1378_v48 }
  0x92   :  { %v295_v8 = vpop.f32.mrf.mxu0  ;;  %v1242_v9 = vpop.f32.mrf.mxu1 }
  0x93   :  { %484 = vst.msk [vmem:[%s1923_s2 + $0x10] sm:$0xff] %vm481_vm1, %v295_v8  ;;  %v549_v10 = vsel %vm481_vm1, %v295_v8, 0.0  ;;  %v681_v11 = vmul.f32 %v295_v8, %v295_v8  ;;  %v1314_v36 = vpop.f32.mrf.mxu2 }
  0x94   :  { %v550_v12 = vadd.f32 %v549_v10, %v548_v2  ;;  %500 = vst.msk [vmem:[%s1923_s2 + $0x90] sm:$0xff] %vm481_vm1, %v1242_v9  ;;  %v1403_v52 = vpop.f32.mrf.mxu3 }
  0x95   :  { %v746_v13 = vsel %vm481_vm1, %v681_v11, 0.0  ;;  %515 = vst.msk [vmem:[%s1923_s2 + $0x108] sm:$0xff] %vm481_vm1, %v1314_v36 }
  0x96   :  { %v747_v14 = vadd.f32 %v746_v13, %v745_v5  ;;  %531 = vst.msk [vmem:[%s1923_s2 + $0x188] sm:$0xff] %vm481_vm1, %v1403_v52 }
  0x9a   :  { %v298_v17 = vpop.f32.mrf.mxu0  ;;  %v1263_v18 = vpop.f32.mrf.mxu1 }
  0x9b   :  { %485 = vst.msk [vmem:[%s1923_s2 + $0x18] sm:$0xff] %vm481_vm1, %v298_v17  ;;  %v551_v19 = vsel %vm481_vm1, %v298_v17, 0.0  ;;  %v682_v20 = vmul.f32 %v298_v17, %v298_v17  ;;  %v1336_v40 = vpop.f32.mrf.mxu2 }
  0x9c   :  { %v552_v21 = vadd.f32 %v551_v19, %v550_v12  ;;  %501 = vst.msk [vmem:[%s1923_s2 + $0x98] sm:$0xff] %vm481_vm1, %v1263_v18  ;;  %v1428_v56 = vpop.f32.mrf.mxu3 }
  0x9d   :  { %v748_v22 = vsel %vm481_vm1, %v682_v20, 0.0  ;;  %516 = vst.msk [vmem:[%s1923_s2 + $0x110] sm:$0xff] %vm481_vm1, %v1336_v40 }
  0x9e   :  { %v749_v23 = vadd.f32 %v748_v22, %v747_v14  ;;  %532 = vst.msk [vmem:[%s1923_s2 + $0x190] sm:$0xff] %vm481_vm1, %v1428_v56 }
  0xa2   :  { %v301_v25 = vpop.f32.mrf.mxu0  ;;  %v1280_v26 = vpop.f32.mrf.mxu1 }
  0xa3   :  { %486 = vst.msk [vmem:[%s1923_s2 + $0x20] sm:$0xff] %vm481_vm1, %v301_v25  ;;  %v553_v27 = vsel %vm481_vm1, %v301_v25, 0.0  ;;  %v683_v28 = vmul.f32 %v301_v25, %v301_v25  ;;  %v1358_v44 = vpop.f32.mrf.mxu2 }
  0xa4   :  { %v1289_v30 = vadd.f32 %v553_v27, %v552_v21  ;;  %502 = vst.msk [vmem:[%s1923_s2 + $0xa0] sm:$0xff] %vm481_vm1, %v1280_v26  ;;  %v1453_v61 = vpop.f32.mrf.mxu3 }
  0xa5   :  { %v750_v31 = vsel %vm481_vm1, %v683_v28, 0.0  ;;  %517 = vst.msk [vmem:[%s1923_s2 + $0x118] sm:$0xff] %vm481_vm1, %v1358_v44 }
  0xa6   :  { %v1302_v32 = vadd.f32 %v750_v31, %v749_v23  ;;  %533 = vst.msk [vmem:[%s1923_s2 + $0x198] sm:$0xff] %vm481_vm1, %v1453_v61 }
  0xaa   :  { %v304_v34 = vpop.f32.mrf.mxu0  ;;  %v1308_v35 = vpop.f32.mrf.mxu1 }
  0xab   :  { %487 = vst.msk [vmem:[%s1923_s2 + $0x28] sm:$0xff] %vm481_vm1, %v304_v34  ;;  %v1376_v47 = vpop.f32.mrf.mxu2  ;;  %v684_v1 = vmul.f32 %v304_v34, %v304_v34  ;;  %v555_v4 = vsel %vm481_vm1, %v304_v34, 0.0 }
  0xac   :  { %503 = vst.msk [vmem:[%s1923_s2 + $0xa8] sm:$0xff] %vm481_vm1, %v1308_v35  ;;  %v1478_v3 = vpop.f32.mrf.mxu3  ;;  %v556_v10 = vadd.f32 %v555_v4, %v1289_v30 }
  0xad   :  { %518 = vst.msk [vmem:[%s1923_s2 + $0x120] sm:$0xff] %vm481_vm1, %v1376_v47  ;;  %v752_v6 = vsel %vm481_vm1, %v684_v1, 0.0 }
  0xae   :  { %534 = vst.msk [vmem:[%s1923_s2 + $0x1a0] sm:$0xff] %vm481_vm1, %v1478_v3  ;;  %v753_v14 = vadd.f32 %v752_v6, %v1302_v32 }
  0xb2   :  { %v307_v38 = vpop.f32.mrf.mxu0  ;;  %v1330_v39 = vpop.f32.mrf.mxu1 }
  0xb3   :  { %488 = vst.msk [vmem:[%s1923_s2 + $0x30] sm:$0xff] %vm481_vm1, %v307_v38  ;;  %v1401_v51 = vpop.f32.mrf.mxu2  ;;  %v685_v5 = vmul.f32 %v307_v38, %v307_v38  ;;  %v557_v7 = vsel %vm481_vm1, %v307_v38, 0.0 }
  0xb4   :  { %504 = vst.msk [vmem:[%s1923_s2 + $0xb0] sm:$0xff] %vm481_vm1, %v1330_v39  ;;  %v558_v15 = vadd.f32 %v557_v7, %v556_v10  ;;  %v1512_v23 = vpop.f32.mrf.mxu3 }
  0xb5   :  { %519 = vst.msk [vmem:[%s1923_s2 + $0x128] sm:$0xff] %vm481_vm1, %v1401_v51  ;;  %v754_v11 = vsel %vm481_vm1, %v685_v5, 0.0 }
  0xb6   :  { %v755_v24 = vadd.f32 %v754_v11, %v753_v14  ;;  %535 = vst.msk [vmem:[%s1923_s2 + $0x1a8] sm:$0xff] %vm481_vm1, %v1512_v23 }
  0xba   :  { %v310_v42 = vpop.f32.mrf.mxu0  ;;  %v1352_v43 = vpop.f32.mrf.mxu1 }
  0xbb   :  { %489 = vst.msk [vmem:[%s1923_s2 + $0x38] sm:$0xff] %vm481_vm1, %v310_v42  ;;  %v1426_v55 = vpop.f32.mrf.mxu2  ;;  %v686_v8 = vmul.f32 %v310_v42, %v310_v42  ;;  %v559_v12 = vsel %vm481_vm1, %v310_v42, 0.0 }
  0xbc   :  { %505 = vst.msk [vmem:[%s1923_s2 + $0xb8] sm:$0xff] %vm481_vm1, %v1352_v43  ;;  %v560_v25 = vadd.f32 %v559_v12, %v558_v15  ;;  %v1545_v11 = vpop.f32.mrf.mxu3 }
  0xbd   :  { %520 = vst.msk [vmem:[%s1923_s2 + $0x130] sm:$0xff] %vm481_vm1, %v1426_v55  ;;  %v756_v19 = vsel %vm481_vm1, %v686_v8, 0.0 }
  0xbe   :  { %v757_v31 = vadd.f32 %v756_v19, %v755_v24  ;;  %536 = vst.msk [vmem:[%s1923_s2 + $0x1b0] sm:$0xff] %vm481_vm1, %v1545_v11 }
  0xc2   :  { %v313_v45 = vpop.f32.mrf.mxu0  ;;  %v1370_v46 = vpop.f32.mrf.mxu1 }
  0xc3   :  { %490 = vst.msk [vmem:[%s1923_s2 + $0x40] sm:$0xff] %vm481_vm1, %v313_v45  ;;  %v1451_v60 = vpop.f32.mrf.mxu2  ;;  %v687_v13 = vmul.f32 %v313_v45, %v313_v45  ;;  %v561_v20 = vsel %vm481_vm1, %v313_v45, 0.0 }
  0xc4   :  { %506 = vst.msk [vmem:[%s1923_s2 + $0xc0] sm:$0xff] %vm481_vm1, %v1370_v46  ;;  %v562_v32 = vadd.f32 %v561_v20, %v560_v25 }
  0xc5   :  { %521 = vst.msk [vmem:[%s1923_s2 + $0x138] sm:$0xff] %vm481_vm1, %v1451_v60  ;;  %v758_v27 = vsel %vm481_vm1, %v687_v13, 0.0 }
  0xc6   :  { %v759_v38 = vadd.f32 %v758_v27, %v757_v31 }
  0xca   :  { %v316_v49 = vpop.f32.mrf.mxu0  ;;  %v1395_v50 = vpop.f32.mrf.mxu1 }
  0xcb   :  { %491 = vst.msk [vmem:[%s1923_s2 + $0x48] sm:$0xff] %vm481_vm1, %v316_v49  ;;  %v1476_v2 = vpop.f32.mrf.mxu2  ;;  %v688_v21 = vmul.f32 %v316_v49, %v316_v49  ;;  %v563_v28 = vsel %vm481_vm1, %v316_v49, 0.0 }
  0xcc   :  { %507 = vst.msk [vmem:[%s1923_s2 + $0xc8] sm:$0xff] %vm481_vm1, %v1395_v50  ;;  %v564_v41 = vadd.f32 %v563_v28, %v562_v32  ;;  %v695_v32 = vmul.f32 %v1200_v57, %v1200_v57 }
  0xcd   :  { %522 = vst.msk [vmem:[%s1923_s2 + $0x140] sm:$0xff] %vm481_vm1, %v1476_v2  ;;  %v760_v33 = vsel %vm481_vm1, %v688_v21, 0.0 }
  0xce   :  { %v761_v1 = vadd.f32 %v760_v33, %v759_v38  ;;  %v1578_v38 = vpop.f32.mrf.mxu3 }
  0xcf   :  { %537 = vst.msk [vmem:[%s1923_s2 + $0x1b8] sm:$0xff] %vm481_vm1, %v1578_v38 }
  0xd2   :  { %v319_v53 = vpop.f32.mrf.mxu0  ;;  %v1420_v54 = vpop.f32.mrf.mxu1 }
  0xd3   :  { %492 = vst.msk [vmem:[%s1923_s2 + $0x50] sm:$0xff] %vm481_vm1, %v319_v53  ;;  %v1510_v22 = vpop.f32.mrf.mxu2  ;;  %v689_v30 = vmul.f32 %v319_v53, %v319_v53  ;;  %v565_v34 = vsel %vm481_vm1, %v319_v53, 0.0 }
  0xd4   :  { %508 = vst.msk [vmem:[%s1923_s2 + $0xd0] sm:$0xff] %vm481_vm1, %v1420_v54  ;;  %v566_v4 = vadd.f32 %v565_v34, %v564_v41 }
  0xd5   :  { %523 = vst.msk [vmem:[%s1923_s2 + $0x148] sm:$0xff] %vm481_vm1, %v1510_v22  ;;  %v762_v42 = vsel %vm481_vm1, %v689_v30, 0.0 }
  0xda   :  { %v322_v58 = vpop.f32.mrf.mxu0  ;;  %v1445_v59 = vpop.f32.mrf.mxu1 }
  0xdb   :  { %493 = vst.msk [vmem:[%s1923_s2 + $0x58] sm:$0xff] %vm481_vm1, %v322_v58  ;;  %v690_v37 = vmul.f32 %v322_v58, %v322_v58  ;;  %v567_v45 = vsel %vm481_vm1, %v322_v58, 0.0  ;;  %v1543_v53 = vpop.f32.mrf.mxu2  ;;  %v763_v58 = vadd.f32 %v762_v42, %v761_v1 }
  0xdc   :  { %509 = vst.msk [vmem:[%s1923_s2 + $0xd8] sm:$0xff] %vm481_vm1, %v1445_v59  ;;  %v568_v12 = vadd.f32 %v567_v45, %v566_v4  ;;  %v577_v45 = vsel %vm481_vm1, %v1200_v57, 0.0  ;;  %v774_v57 = vsel %vm481_vm1, %v695_v32, 0.0 }
  0xdd   :  { %v764_v7 = vsel %vm481_vm1, %v690_v37, 0.0  ;;  %524 = vst.msk [vmem:[%s1923_s2 + $0x150] sm:$0xff] %vm481_vm1, %v1543_v53 }
  0xde   :  { %v765_v15 = vadd.f32 %v764_v7, %v763_v58  ;;  %v579_v7 = vsel %vm481_vm1, %v1219_v62, 0.0 }
  0xe2   :  { %v325_v63 = vpop.f32.mrf.mxu0  ;;  %v1470_v0 = vpop.f32.mrf.mxu1 }
  0xe3   :  { %494 = vst.msk [vmem:[%s1923_s2 + $0x60] sm:$0xff] %vm481_vm1, %v325_v63  ;;  %v691_v49 = vmul.f32 %v325_v63, %v325_v63  ;;  %v569_v8 = vsel %vm481_vm1, %v325_v63, 0.0  ;;  %v1576_v37 = vpop.f32.mrf.mxu2 }
  0xe4   :  { %510 = vst.msk [vmem:[%s1923_s2 + $0xe0] sm:$0xff] %vm481_vm1, %v1470_v0  ;;  %v570_v19 = vadd.f32 %v569_v8, %v568_v12  ;;  %v697_v8 = vmul.f32 %v1242_v9, %v1242_v9 }
  0xe5   :  { %v766_v63 = vsel %vm481_vm1, %v691_v49, 0.0  ;;  %v696_v49 = vmul.f32 %v1219_v62, %v1219_v62  ;;  %525 = vst.msk [vmem:[%s1923_s2 + $0x158] sm:$0xff] %vm481_vm1, %v1576_v37  ;;  %v583_v62 = vsel %vm481_vm1, %v1263_v18, 0.0 }
  0xe7   :  { %v776_v12 = vsel %vm481_vm1, %v696_v49, 0.0  ;;  %v702_v49 = vmul.f32 %v1352_v43, %v1352_v43 }
  0xea   :  { %v328_v16 = vpop.f32.mrf.mxu0  ;;  %v1502_v17 = vpop.f32.mrf.mxu1 }
  0xeb   :  { %495 = vst.msk [vmem:[%s1923_s2 + $0x68] sm:$0xff] %vm481_vm1, %v328_v16  ;;  %v692_v10 = vmul.f32 %v328_v16, %v328_v16  ;;  %v571_v13 = vsel %vm481_vm1, %v328_v16, 0.0  ;;  %v767_v16 = vadd.f32 %v766_v63, %v765_v15  ;;  %v581_v63 = vsel %vm481_vm1, %v1242_v9, 0.0 }
  0xec   :  { %511 = vst.msk [vmem:[%s1923_s2 + $0xe8] sm:$0xff] %vm481_vm1, %v1502_v17  ;;  %v572_v24 = vadd.f32 %v571_v13, %v570_v19  ;;  %v698_v13 = vmul.f32 %v1263_v18, %v1263_v18  ;;  %v778_v19 = vsel %vm481_vm1, %v697_v8, 0.0  ;;  %v585_v18 = vsel %vm481_vm1, %v1280_v26, 0.0 }
  0xed   :  { %v768_v20 = vsel %vm481_vm1, %v692_v10, 0.0 }
  0xee   :  { %v769_v27 = vadd.f32 %v768_v20, %v767_v16  ;;  %v699_v20 = vmul.f32 %v1280_v26, %v1280_v26  ;;  %v1617_v16 = vpop.f32.mrf.mxu3  ;;  %v780_v9 = vsel %vm481_vm1, %v698_v13, 0.0 }
  0xef   :  { %538 = vst.msk [vmem:[%s1923_s2 + $0x1c0] sm:$0xff] %vm481_vm1, %v1617_v16 }
  0xf0   :  { %v782_v32 = vsel %vm481_vm1, %v699_v20, 0.0 }
  0xf2   :  { %v331_v5 = vpop.f32.mrf.mxu0  ;;  %v1535_v6 = vpop.f32.mrf.mxu1 }
  0xf3   :  { %496 = vst.msk [vmem:[%s1923_s2 + $0x70] sm:$0xff] %vm481_vm1, %v331_v5  ;;  %v693_v14 = vmul.f32 %v331_v5, %v331_v5  ;;  %v573_v21 = vsel %vm481_vm1, %v331_v5, 0.0 }
  0xf4   :  { %512 = vst.msk [vmem:[%s1923_s2 + $0xf0] sm:$0xff] %vm481_vm1, %v1535_v6  ;;  %v574_v28 = vadd.f32 %v573_v21, %v572_v24  ;;  %v1615_v21 = vpop.f32.mrf.mxu2 }
  0xf5   :  { %v770_v25 = vsel %vm481_vm1, %v693_v14, 0.0  ;;  %526 = vst.msk [vmem:[%s1923_s2 + $0x160] sm:$0xff] %vm481_vm1, %v1615_v21 }
  0xf6   :  { %v771_v41 = vadd.f32 %v770_v25, %v769_v27  ;;  %v700_v27 = vmul.f32 %v1308_v35, %v1308_v35  ;;  %v1651_v8 = vpop.f32.mrf.mxu3 }
  0xf7   :  { %539 = vst.msk [vmem:[%s1923_s2 + $0x1c8] sm:$0xff] %vm481_vm1, %v1651_v8 }
  0xfa   :  { %v334_v30 = vpop.f32.mrf.mxu0  ;;  %v1567_v31 = vpop.f32.mrf.mxu1 }
  0xfb   :  { %497 = vst.msk [vmem:[%s1923_s2 + $0x78] sm:$0xff] %vm481_vm1, %v334_v30  ;;  %v575_v33 = vsel %vm481_vm1, %v334_v30, 0.0  ;;  %v694_v34 = vmul.f32 %v334_v30, %v334_v30 }
  0xfc   :  { %v576_v42 = vadd.f32 %v575_v33, %v574_v28  ;;  %513 = vst.msk [vmem:[%s1923_s2 + $0xf8] sm:$0xff] %vm481_vm1, %v1567_v31  ;;  %v587_v33 = vsel %vm481_vm1, %v1308_v35, 0.0  ;;  %v591_v35 = vsel %vm481_vm1, %v1352_v43, 0.0  ;;  %v593_v43 = vsel %vm481_vm1, %v1370_v46, 0.0 }
  0xfd   :  { %v772_v1 = vsel %vm481_vm1, %v694_v34, 0.0  ;;  %v701_v34 = vmul.f32 %v1330_v39, %v1330_v39 }
  0xfe   :  { %v578_v4 = vadd.f32 %v577_v45, %v576_v42  ;;  %v773_v5 = vadd.f32 %v772_v1, %v771_v41  ;;  %v784_v42 = vsel %vm481_vm1, %v700_v27, 0.0  ;;  %v589_v45 = vsel %vm481_vm1, %v1330_v39, 0.0 }
  0xff   :  { %v788_v39 = vsel %vm481_vm1, %v702_v49, 0.0  ;;  %v603_v49 = vsel %vm481_vm1, %v1502_v17, 0.0 }
 0x100   :  { %v580_v10 = vadd.f32 %v579_v7, %v578_v4  ;;  %v775_v58 = vadd.f32 %v774_v57, %v773_v5  ;;  %v786_v5 = vsel %vm481_vm1, %v701_v34, 0.0  ;;  %v703_v57 = vmul.f32 %v1370_v46, %v1370_v46  ;;  %v1649_v7 = vpop.f32.mrf.mxu2 }
 0x101   :  { %527 = vst.msk [vmem:[%s1923_s2 + $0x168] sm:$0xff] %vm481_vm1, %v1649_v7 }
 0x102   :  { %v582_v14 = vadd.f32 %v581_v63, %v580_v10  ;;  %v777_v15 = vadd.f32 %v776_v12, %v775_v58  ;;  %v704_v12 = vmul.f32 %v1395_v50, %v1395_v50 }
 0x104   :  { %v584_v24 = vadd.f32 %v583_v62, %v582_v14  ;;  %v779_v25 = vadd.f32 %v778_v19, %v777_v15  ;;  %v790_v14 = vsel %vm481_vm1, %v703_v57, 0.0  ;;  %v595_v15 = vsel %vm481_vm1, %v1395_v50, 0.0 }
 0x105   :  { %v705_v19 = vmul.f32 %v1420_v54, %v1420_v54  ;;  %v792_v20 = vsel %vm481_vm1, %v704_v12, 0.0  ;;  %v599_v50 = vsel %vm481_vm1, %v1445_v59, 0.0  ;;  %v605_v57 = vsel %vm481_vm1, %v1535_v6, 0.0 }
 0x106   :  { %v586_v28 = vadd.f32 %v585_v18, %v584_v24  ;;  %v781_v30 = vadd.f32 %v780_v9, %v779_v25  ;;  %v597_v24 = vsel %vm481_vm1, %v1420_v54, 0.0  ;;  %v706_v25 = vmul.f32 %v1445_v59, %v1445_v59 }
 0x107   :  { %v794_v27 = vsel %vm481_vm1, %v705_v19, 0.0  ;;  %v601_v59 = vsel %vm481_vm1, %v1470_v0, 0.0 }
 0x108   :  { %v588_v26 = vadd.f32 %v587_v33, %v586_v28  ;;  %v783_v41 = vadd.f32 %v782_v32, %v781_v30  ;;  %v707_v28 = vmul.f32 %v1470_v0, %v1470_v0  ;;  %v1683_v30 = vpop.f32.mrf.mxu2  ;;  %v1685_v32 = vpop.f32.mrf.mxu3  ;;  %v796_v54 = vsel %vm481_vm1, %v706_v25, 0.0 }
 0x109   :  { %528 = vst.msk [vmem:[%s1923_s2 + $0x170] sm:$0xff] %vm481_vm1, %v1683_v30  ;;  %v710_v0 = vmul.f32 %v1567_v31, %v1567_v31 }
 0x10a   :  { %v785_v1 = vadd.f32 %v784_v42, %v783_v41  ;;  %v590_v4 = vadd.f32 %v589_v45, %v588_v26  ;;  %v708_v26 = vmul.f32 %v1502_v17, %v1502_v17  ;;  %540 = vst.msk [vmem:[%s1923_s2 + $0x1d0] sm:$0xff] %vm481_vm1, %v1685_v32  ;;  %v798_v45 = vsel %vm481_vm1, %v707_v28, 0.0 }
 0x10b   :  { %v711_v17 = vmul.f32 %v1287_v29, %v1287_v29  ;;  %v804_v12 = vsel %vm481_vm1, %v710_v0, 0.0  ;;  %v717_v0 = vmul.f32 %v1426_v55, %v1426_v55 }
 0x10c   :  { %v592_v10 = vadd.f32 %v591_v35, %v590_v4  ;;  %v787_v58 = vadd.f32 %v786_v5, %v785_v1  ;;  %v709_v1 = vmul.f32 %v1535_v6, %v1535_v6  ;;  %v800_v35 = vsel %vm481_vm1, %v708_v26, 0.0 }
 0x10d   :  { %v609_v6 = vsel %vm481_vm1, %v1287_v29, 0.0 }
 0x10e   :  { %v594_v63 = vadd.f32 %v593_v43, %v592_v10  ;;  %v789_v13 = vadd.f32 %v788_v39, %v787_v58  ;;  %v607_v10 = vsel %vm481_vm1, %v1567_v31, 0.0  ;;  %v802_v43 = vsel %vm481_vm1, %v709_v1, 0.0 }
 0x10f   :  { %v712_v31 = vmul.f32 %v1314_v36, %v1314_v36  ;;  %v619_v1 = vsel %vm481_vm1, %v1401_v51, 0.0 }
 0x110   :  { %v596_v46 = vadd.f32 %v595_v15, %v594_v63  ;;  %v791_v62 = vadd.f32 %v790_v14, %v789_v13  ;;  %v1718_v63 = vpop.f32.mrf.mxu2  ;;  %v1720_v13 = vpop.f32.mrf.mxu3 }
 0x111   :  { %529 = vst.msk [vmem:[%s1923_s2 + $0x178] sm:$0xff] %vm481_vm1, %v1718_v63 }
 0x112   :  { %v598_v9 = vadd.f32 %v597_v24, %v596_v46  ;;  %v793_v18 = vadd.f32 %v792_v20, %v791_v62  ;;  %541 = vst.msk [vmem:[%s1923_s2 + $0x1d8] sm:$0xff] %vm481_vm1, %v1720_v13  ;;  %v806_v62 = vsel %vm481_vm1, %v711_v17, 0.0  ;;  %v611_v20 = vsel %vm481_vm1, %v1314_v36, 0.0 }
 0x113   :  { %v713_v24 = vmul.f32 %v1336_v40, %v1336_v40  ;;  %v615_v36 = vsel %vm481_vm1, %v1358_v44, 0.0  ;;  %v719_v17 = vmul.f32 %v1476_v2, %v1476_v2 }
 0x114   :  { %v600_v33 = vadd.f32 %v599_v50, %v598_v9  ;;  %v795_v34 = vadd.f32 %v794_v27, %v793_v18  ;;  %v808_v9 = vsel %vm481_vm1, %v712_v31, 0.0  ;;  %v613_v18 = vsel %vm481_vm1, %v1336_v40, 0.0 }
 0x115   :  { %v714_v27 = vmul.f32 %v1358_v44, %v1358_v44  ;;  %v716_v44 = vmul.f32 %v1401_v51, %v1401_v51  ;;  %v623_v51 = vsel %vm481_vm1, %v1451_v60, 0.0 }
 0x116   :  { %v797_v41 = vadd.f32 %v796_v54, %v795_v34  ;;  %v602_v42 = vadd.f32 %v601_v59, %v600_v33  ;;  %v810_v33 = vsel %vm481_vm1, %v713_v24, 0.0  ;;  %v715_v34 = vmul.f32 %v1376_v47, %v1376_v47 }
 0x117   :  { %v812_v40 = vsel %vm481_vm1, %v714_v27, 0.0 }
 0x118   :  { %v799_v4 = vadd.f32 %v798_v45, %v797_v41  ;;  %v604_v5 = vadd.f32 %v603_v49, %v602_v42  ;;  %v1751_v54 = vpop.f32.mrf.mxu3  ;;  %v617_v41 = vsel %vm481_vm1, %v1376_v47, 0.0  ;;  %v814_v49 = vsel %vm481_vm1, %v715_v34, 0.0 }
 0x119   :  { %542 = vst.msk [vmem:[%s1923_s2 + $0x1e0] sm:$0xff] %vm481_vm1, %v1751_v54  ;;  %v621_v47 = vsel %vm481_vm1, %v1426_v55, 0.0  ;;  %v633_v34 = vsel %vm481_vm1, %v1615_v21, 0.0 }
 0x11a   :  { %v801_v58 = vadd.f32 %v800_v35, %v799_v4  ;;  %v606_v39 = vadd.f32 %v605_v57, %v604_v5  ;;  %v816_v35 = vsel %vm481_vm1, %v716_v44, 0.0  ;;  %v718_v57 = vmul.f32 %v1451_v60, %v1451_v60 }
 0x11b   :  { %v720_v60 = vmul.f32 %v1510_v22, %v1510_v22  ;;  %v725_v44 = vmul.f32 %v1683_v30, %v1683_v30 }
 0x11c   :  { %v803_v14 = vadd.f32 %v802_v43, %v801_v58  ;;  %v608_v15 = vadd.f32 %v607_v10, %v606_v39  ;;  %v818_v39 = vsel %vm481_vm1, %v717_v0, 0.0  ;;  %v820_v55 = vsel %vm481_vm1, %v718_v57, 0.0 }
 0x11d   :  { %v639_v0 = vsel %vm481_vm1, %v1718_v63, 0.0 }
 0x11e   :  { %v610_v19 = vadd.f32 %v609_v6, %v608_v15  ;;  %v805_v46 = vadd.f32 %v804_v12, %v803_v14  ;;  %v625_v15 = vsel %vm481_vm1, %v1476_v2, 0.0  ;;  %v629_v2 = vsel %vm481_vm1, %v1543_v53, 0.0 }
 0x120   :  { %v612_v29 = vadd.f32 %v611_v20, %v610_v19  ;;  %v807_v25 = vadd.f32 %v806_v62, %v805_v46  ;;  %v1778_v43 = vpop.f32.mrf.mxu3  ;;  %v822_v19 = vsel %vm481_vm1, %v719_v17, 0.0  ;;  %v627_v46 = vsel %vm481_vm1, %v1510_v22, 0.0 }
 0x121   :  { %543 = vst.msk [vmem:[%s1923_s2 + $0x1e8] sm:$0xff] %vm481_vm1, %v1778_v43  ;;  %v721_v62 = vmul.f32 %v1543_v53, %v1543_v53  ;;  %v631_v22 = vsel %vm481_vm1, %v1576_v37, 0.0 }
 0x122   :  { %v614_v50 = vadd.f32 %v613_v18, %v612_v29  ;;  %v809_v28 = vadd.f32 %v808_v9, %v807_v25  ;;  %v824_v29 = vsel %vm481_vm1, %v720_v60, 0.0  ;;  %v722_v25 = vmul.f32 %v1576_v37, %v1576_v37 }
 0x123   :  { %v826_v27 = vsel %vm481_vm1, %v721_v62, 0.0  ;;  %v724_v37 = vmul.f32 %v1649_v7, %v1649_v7  ;;  %v731_v62 = vmul.f32 %v1478_v3, %v1478_v3 }
 0x124   :  { %v616_v59 = vadd.f32 %v615_v36, %v614_v50  ;;  %v811_v26 = vadd.f32 %v810_v33, %v809_v28  ;;  %v723_v50 = vmul.f32 %v1615_v21, %v1615_v21  ;;  %v828_v53 = vsel %vm481_vm1, %v722_v25, 0.0 }
 0x125   :  { %v832_v21 = vsel %vm481_vm1, %v724_v37, 0.0 }
 0x126   :  { %v618_v42 = vadd.f32 %v617_v41, %v616_v59  ;;  %v813_v45 = vadd.f32 %v812_v40, %v811_v26  ;;  %v830_v40 = vsel %vm481_vm1, %v723_v50, 0.0  ;;  %v635_v41 = vsel %vm481_vm1, %v1649_v7, 0.0 }
 0x127   :  { %v727_v7 = vmul.f32 %v1378_v48, %v1378_v48 }
 0x128   :  { %v620_v4 = vadd.f32 %v619_v1, %v618_v42  ;;  %v815_v5 = vadd.f32 %v814_v49, %v813_v45  ;;  %v1805_v28 = vpop.f32.mrf.mxu3  ;;  %v726_v42 = vmul.f32 %v1718_v63, %v1718_v63  ;;  %v637_v1 = vsel %vm481_vm1, %v1683_v30, 0.0 }
 0x129   :  { %544 = vst.msk [vmem:[%s1923_s2 + $0x1f0] sm:$0xff] %vm481_vm1, %v1805_v28  ;;  %v641_v30 = vsel %vm481_vm1, %v1378_v48, 0.0  ;;  %v728_v63 = vmul.f32 %v1403_v52, %v1403_v52  ;;  %v838_v17 = vsel %vm481_vm1, %v727_v7, 0.0  ;;  %v645_v48 = vsel %vm481_vm1, %v1428_v56, 0.0 }
 0x12a   :  { %v817_v10 = vadd.f32 %v816_v35, %v815_v5  ;;  %v622_v58 = vadd.f32 %v621_v47, %v620_v4  ;;  %v834_v35 = vsel %vm481_vm1, %v725_v44, 0.0  ;;  %v836_v47 = vsel %vm481_vm1, %v726_v42, 0.0 }
 0x12b   :  { %v840_v60 = vsel %vm481_vm1, %v728_v63, 0.0  ;;  %v736_v44 = vmul.f32 %v1651_v8, %v1651_v8 }
 0x12c   :  { %v624_v12 = vadd.f32 %v623_v51, %v622_v58  ;;  %v819_v14 = vadd.f32 %v818_v39, %v817_v10 }
 0x12e   :  { %v626_v6 = vadd.f32 %v625_v15, %v624_v12  ;;  %v821_v31 = vadd.f32 %v820_v55, %v819_v14  ;;  %v643_v12 = vsel %vm481_vm1, %v1403_v52, 0.0  ;;  %v729_v14 = vmul.f32 %v1428_v56, %v1428_v56 }
 0x12f   :  { %v647_v52 = vsel %vm481_vm1, %v1453_v61, 0.0  ;;  %v649_v56 = vsel %vm481_vm1, %v1478_v3, 0.0  ;;  %v653_v3 = vsel %vm481_vm1, %v1545_v11, 0.0 }
 0x130   :  { %v628_v20 = vadd.f32 %v627_v46, %v626_v6  ;;  %v823_v24 = vadd.f32 %v822_v19, %v821_v31  ;;  %v1833_v57 = vpop.f32.mrf.mxu3  ;;  %v730_v6 = vmul.f32 %v1453_v61, %v1453_v61  ;;  %v842_v46 = vsel %vm481_vm1, %v729_v14, 0.0 }
 0x131   :  { %545 = vst.msk [vmem:[%s1923_s2 + $0x1f8] sm:$0xff] %vm481_vm1, %v1833_v57  ;;  %v651_v61 = vsel %vm481_vm1, %v1512_v23, 0.0  ;;  %v741_v14 = vmul.f32 %v1805_v28, %v1805_v28 }
 0x132   :  { %v630_v9 = vadd.f32 %v629_v2, %v628_v20  ;;  %v825_v18 = vadd.f32 %v824_v29, %v823_v24  ;;  %v844_v29 = vsel %vm481_vm1, %v730_v6, 0.0  ;;  %v732_v2 = vmul.f32 %v1512_v23, %v1512_v23 }
 0x133   :  { %v655_v23 = vsel %vm481_vm1, %v1578_v38, 0.0  ;;  %v671_v6 = vsel %vm481_vm1, %v1833_v57, 0.0 }
 0x134   :  { %v632_v33 = vadd.f32 %v631_v22, %v630_v9  ;;  %v827_v36 = vadd.f32 %v826_v27, %v825_v18  ;;  %v846_v18 = vsel %vm481_vm1, %v731_v62, 0.0  ;;  %v733_v27 = vmul.f32 %v1545_v11, %v1545_v11 }
 0x135   :  { %v657_v11 = vsel %vm481_vm1, %v1617_v16, 0.0 }
 0x136   :  { %v829_v59 = vadd.f32 %v828_v53, %v827_v36  ;;  %v634_v26 = vadd.f32 %v633_v34, %v632_v33  ;;  %v848_v33 = vsel %vm481_vm1, %v732_v2, 0.0  ;;  %v734_v36 = vmul.f32 %v1578_v38, %v1578_v38 }
 0x137   :  { %v850_v37 = vsel %vm481_vm1, %v733_v27, 0.0  ;;  %v659_v38 = vsel %vm481_vm1, %v1651_v8, 0.0  ;;  %v663_v8 = vsel %vm481_vm1, %v1720_v13, 0.0 }
 0x138   :  { %v831_v45 = vadd.f32 %v830_v40, %v829_v59  ;;  %v636_v49 = vadd.f32 %v635_v41, %v634_v26  ;;  %v735_v59 = vmul.f32 %v1617_v16, %v1617_v16  ;;  %v852_v41 = vsel %vm481_vm1, %v734_v36, 0.0 }
 0x139   :  { %v661_v16 = vsel %vm481_vm1, %v1685_v32, 0.0 }
 0x13a   :  { %v833_v4 = vadd.f32 %v832_v21, %v831_v45  ;;  %v638_v5 = vadd.f32 %v637_v1, %v636_v49  ;;  %v854_v49 = vsel %vm481_vm1, %v735_v59, 0.0  ;;  %v737_v21 = vmul.f32 %v1685_v32, %v1685_v32 }
 0x13b   :  { %v665_v32 = vsel %vm481_vm1, %v1751_v54, 0.0 }
 0x13c   :  { %v835_v10 = vadd.f32 %v834_v35, %v833_v4  ;;  %v640_v58 = vadd.f32 %v639_v0, %v638_v5  ;;  %v856_v4 = vsel %vm481_vm1, %v736_v44, 0.0  ;;  %v738_v5 = vmul.f32 %v1720_v13, %v1720_v13 }
 0x13d   :  { %v667_v13 = vsel %vm481_vm1, %v1778_v43, 0.0 }
 0x13e   :  { %v642_v39 = vadd.f32 %v641_v30, %v640_v58  ;;  %v837_v51 = vadd.f32 %v836_v47, %v835_v10  ;;  %v858_v47 = vsel %vm481_vm1, %v737_v21, 0.0  ;;  %v739_v10 = vmul.f32 %v1751_v54, %v1751_v54 }
 0x13f   :  { %v860_v63 = vsel %vm481_vm1, %v738_v5, 0.0 }
 0x140   :  { %v644_v55 = vadd.f32 %v643_v12, %v642_v39  ;;  %v839_v15 = vadd.f32 %v838_v17, %v837_v51  ;;  %v740_v39 = vmul.f32 %v1778_v43, %v1778_v43  ;;  %v862_v12 = vsel %vm481_vm1, %v739_v10, 0.0 }
 0x141   :  { %v866_v43 = vsel %vm481_vm1, %v741_v14, 0.0 }
 0x142   :  { %v646_v31 = vadd.f32 %v645_v48, %v644_v55  ;;  %v841_v19 = vadd.f32 %v840_v60, %v839_v15  ;;  %v742_v55 = vmul.f32 %v1833_v57, %v1833_v57  ;;  %v864_v54 = vsel %vm481_vm1, %v740_v39, 0.0 }
 0x143   :  { %v669_v48 = vsel %vm481_vm1, %v1805_v28, 0.0 }
 0x144   :  { %v648_v20 = vadd.f32 %v647_v52, %v646_v31  ;;  %v843_v24 = vadd.f32 %v842_v46, %v841_v19  ;;  %v868_v46 = vsel %vm481_vm1, %v742_v55, 0.0 }
 0x146   :  { %v650_v25 = vadd.f32 %v649_v56, %v648_v20  ;;  %v845_v9 = vadd.f32 %v844_v29, %v843_v24 }
 0x148   :  { %v652_v22 = vadd.f32 %v651_v61, %v650_v25  ;;  %v847_v50 = vadd.f32 %v846_v18, %v845_v9 }
 0x14a   :  { %v849_v53 = vadd.f32 %v848_v33, %v847_v50  ;;  %v654_v34 = vadd.f32 %v653_v3, %v652_v22 }
 0x14c   :  { %v656_v26 = vadd.f32 %v655_v23, %v654_v34  ;;  %v851_v40 = vadd.f32 %v850_v37, %v849_v53 }
 0x14e   :  { %v658_v42 = vadd.f32 %v657_v11, %v656_v26  ;;  %v853_v45 = vadd.f32 %v852_v41, %v851_v40 }
 0x150   :  { %v660_v1 = vadd.f32 %v659_v38, %v658_v42  ;;  %v855_v0 = vadd.f32 %v854_v49, %v853_v45 }
 0x152   :  { %v662_v7 = vadd.f32 %v661_v16, %v660_v1  ;;  %v857_v35 = vadd.f32 %v856_v4, %v855_v0 }
 0x154   :  { %v664_v58 = vadd.f32 %v663_v8, %v662_v7  ;;  %v859_v30 = vadd.f32 %v858_v47, %v857_v35 }
 0x156   :  { %v861_v51 = vadd.f32 %v860_v63, %v859_v30  ;;  %v666_v17 = vadd.f32 %v665_v32, %v664_v58 }
 0x158   :  { %v863_v15 = vadd.f32 %v862_v12, %v861_v51  ;;  %v668_v60 = vadd.f32 %v667_v13, %v666_v17 }
 0x15a   :  { %v865_v31 = vadd.f32 %v864_v54, %v863_v15  ;;  %v670_v19 = vadd.f32 %v669_v48, %v668_v60 }
 0x15c   :  { %v867_v52 = vadd.f32 %v866_v43, %v865_v31  ;;  %v672_v62 = vadd.f32 %v671_v6, %v670_v19 }
 0x15e   :  { %v673_v20 = vrot.slane %v672_v62, 4  ;;  %v869_v24 = vadd.f32 %v868_v46, %v867_v52 }
 0x160   :  { %v674_v29 = vadd.f32 %v673_v20, %v672_v62  ;;  %v870_v56 = vrot.slane %v869_v24, 4 }
 0x162   :  { %v675_v2 = vrot.slane %v674_v29, 2  ;;  %v871_v25 = vadd.f32 %v870_v56, %v869_v24 }
 0x164   :  { %v676_v9 = vadd.f32 %v675_v2, %v674_v29  ;;  %v872_v18 = vrot.slane %v871_v25, 2 }
 0x166   :  { %v677_v28 = vrot.slane %v676_v9, 1  ;;  %v873_v61 = vadd.f32 %v872_v18, %v871_v25 }
 0x168   :  { %v874_v27 = vrot.slane %v873_v61, 1  ;;  %v678_v57 = vadd.f32 %v677_v28, %v676_v9 }
 0x16a   :  { %v875_v22 = vadd.f32 %v874_v27, %v873_v61 }
 0x16c   :  { %v877_v50 = vsel %vm876_vm2, %v678_v57, %v875_v22 }
 0x16d   :  { %879 = vst.msk [vmem:[%s1924_s3] sm:$0x3] %vm878_vm3, %v877_v50 }

// kernel: bottleneck_forward.7
= control target key start
LH: loop header
LB: loop body
LE: loop exit
PB: predicated region body
PF: predicated region fallthrough
CT: control target
= control target key end

     0   :  { %vm409_vm0 = vcmask 130048   ;;  %s1283_s0 = inlined_call_operand.vmem [shape: f32[512,16], index: 0, kind: input, shape index: {}, may-alias: {0,4}]   ;;  %s1284_s1 = inlined_call_operand.vmem [shape: f32[1,16], index: 1, kind: input, shape index: {}]   ;;  %s1285_s2 = inlined_call_operand.vmem [shape: f32[1,16], index: 2, kind: input, shape index: {}]   ;;  %s1286_s3 = inlined_call_operand.vmem [shape: f32[512,16], index: 3, kind: input, shape index: {}]   ;;  %s1287_s4 = inlined_call_operand.vmem [shape: f32[512,16], index: 4, kind: output, shape index: {}, may-alias: {0,4}]  }
   0x1   :  { %v17_v0 = vld [vmem:[%s1283_s0] sm:$0xff]  ;;  %v18_v4 = vld [vmem:[%s1283_s0 + $0x8] sm:$0xff]  ;;  %v19_v5 = vld [vmem:[%s1283_s0 + $0x10] sm:$0xff] }
   0x2   :  { %v511_v1 = vld [vmem:[%s1284_s1] ss:$0 sm:$0xff]  ;;  %v218_v8 = vld [vmem:[%s1286_s3 + $0x8] sm:$0xff]  ;;  %v20_v10 = vld [vmem:[%s1283_s0 + $0x18] sm:$0xff] }
   0x3   :  { %v516_v2 = vld [vmem:[%s1285_s2] ss:$0 sm:$0xff]  ;;  %v85_v3 = vmul.f32 %v511_v1, %v17_v0  ;;  %v86_v7 = vmul.f32 %v511_v1, %v18_v4  ;;  %v87_v9 = vmul.f32 %v511_v1, %v19_v5  ;;  %v219_v12 = vld [vmem:[%s1286_s3 + $0x10] sm:$0xff]  ;;  %v88_v13 = vmul.f32 %v511_v1, %v20_v10  ;;  %v22_v15 = vld [vmem:[%s1283_s0 + $0x28] sm:$0xff] }
   0x4   :  { %v217_v6 = vld [vmem:[%s1286_s3] sm:$0xff]  ;;  %v220_v18 = vld [vmem:[%s1286_s3 + $0x18] sm:$0xff]  ;;  %v90_v20 = vmul.f32 %v511_v1, %v22_v15  ;;  %v23_v21 = vld [vmem:[%s1283_s0 + $0x30] sm:$0xff] }
   0x5   :  { %v153_v11 = vadd.f32 %v516_v2, %v85_v3  ;;  %v21_v14 = vld [vmem:[%s1283_s0 + $0x20] sm:$0xff]  ;;  %v154_v16 = vadd.f32 %v516_v2, %v86_v7  ;;  %v155_v17 = vadd.f32 %v516_v2, %v87_v9  ;;  %v156_v23 = vadd.f32 %v516_v2, %v88_v13  ;;  %v222_v25 = vld [vmem:[%s1286_s3 + $0x28] sm:$0xff]  ;;  %v24_v27 = vld [vmem:[%s1283_s0 + $0x38] sm:$0xff] }
   0x6   :  { %v89_v19 = vmul.f32 %v511_v1, %v21_v14  ;;  %v221_v24 = vld [vmem:[%s1286_s3 + $0x20] sm:$0xff]  ;;  %v91_v26 = vmul.f32 %v511_v1, %v23_v21  ;;  %v158_v31 = vadd.f32 %v516_v2, %v90_v20  ;;  %v223_v32 = vld [vmem:[%s1286_s3 + $0x30] sm:$0xff]  ;;  %v92_v37 = vmul.f32 %v511_v1, %v24_v27  ;;  %v26_v38 = vld [vmem:[%s1283_s0 + $0x48] sm:$0xff] }
   0x7   :  { %v281_v22 = vadd.f32 %v217_v6, %v153_v11  ;;  %v282_v28 = vadd.f32 %v218_v8, %v154_v16  ;;  %v283_v29 = vadd.f32 %v219_v12, %v155_v17  ;;  %v25_v33 = vld [vmem:[%s1283_s0 + $0x40] sm:$0xff]  ;;  %v284_v35 = vadd.f32 %v220_v18, %v156_v23  ;;  %v27_v39 = vld [vmem:[%s1283_s0 + $0x50] sm:$0xff]  ;;  %v224_v44 = vld [vmem:[%s1286_s3 + $0x38] sm:$0xff] }
   0x8   :  { %v157_v30 = vadd.f32 %v516_v2, %v89_v19  ;;  %v159_v36 = vadd.f32 %v516_v2, %v91_v26  ;;  %v286_v43 = vadd.f32 %v222_v25, %v158_v31  ;;  %v28_v45 = vld [vmem:[%s1283_s0 + $0x58] sm:$0xff]  ;;  %v160_v48 = vadd.f32 %v516_v2, %v92_v37  ;;  %v225_v54 = vld [vmem:[%s1286_s3 + $0x40] sm:$0xff]  ;;  %v226_v61 = vld [vmem:[%s1286_s3 + $0x48] sm:$0xff] }
   0x9   :  { %v345_v34 = vmax.f32 %v281_v22, 0.0  ;;  %v346_v40 = vmax.f32 %v282_v28, 0.0  ;;  %v347_v41 = vmax.f32 %v283_v29, 0.0  ;;  %v348_v46 = vmax.f32 %v284_v35, 0.0  ;;  %v227_v62 = vld [vmem:[%s1286_s3 + $0x50] sm:$0xff]  ;;  %v228_v4 = vld [vmem:[%s1286_s3 + $0x58] sm:$0xff] }
   0xa   :  { %v285_v42 = vadd.f32 %v221_v24, %v157_v30  ;;  %v287_v47 = vadd.f32 %v223_v32, %v159_v36  ;;  %v93_v49 = vmul.f32 %v511_v1, %v25_v33  ;;  %v350_v53 = vmax.f32 %v286_v43, 0.0  ;;  %v229_v11 = vld [vmem:[%s1286_s3 + $0x60] sm:$0xff]  ;;  %v230_v12 = vld [vmem:[%s1286_s3 + $0x68] sm:$0xff]  ;;  %v231_v18 = vld [vmem:[%s1286_s3 + $0x70] sm:$0xff] }
   0xb   :  { %410 = vst.msk [vmem:[%s1287_s4] sm:$0xff] %vm409_vm0, %v345_v34  ;;  %v94_v55 = vmul.f32 %v511_v1, %v26_v38  ;;  %v95_v56 = vmul.f32 %v511_v1, %v27_v39  ;;  %v288_v59 = vadd.f32 %v224_v44, %v160_v48  ;;  %v96_v63 = vmul.f32 %v511_v1, %v28_v45  ;;  %v232_v30 = vld [vmem:[%s1286_s3 + $0x78] sm:$0xff]  ;;  %v235_v48 = vld [vmem:[%s1286_s3 + $0x90] sm:$0xff] }
   0xc   :  { %v349_v52 = vmax.f32 %v285_v42, 0.0  ;;  %v351_v58 = vmax.f32 %v287_v47, 0.0  ;;  %v161_v60 = vadd.f32 %v516_v2, %v93_v49  ;;  %v234_v47 = vld [vmem:[%s1286_s3 + $0x88] sm:$0xff] }
   0xd   :  { %v162_v0 = vadd.f32 %v516_v2, %v94_v55  ;;  %v163_v3 = vadd.f32 %v516_v2, %v95_v56  ;;  %v352_v8 = vmax.f32 %v288_v59, 0.0  ;;  %v164_v10 = vadd.f32 %v516_v2, %v96_v63  ;;  %v237_v59 = vld [vmem:[%s1286_s3 + $0xa0] sm:$0xff] }
   0xe   :  { %v289_v9 = vadd.f32 %v225_v54, %v161_v60  ;;  %v238_v60 = vld [vmem:[%s1286_s3 + $0xa8] sm:$0xff] }
   0xf   :  { %v290_v14 = vadd.f32 %v226_v61, %v162_v0  ;;  %v291_v15 = vadd.f32 %v227_v62, %v163_v3  ;;  %v292_v21 = vadd.f32 %v228_v4, %v164_v10  ;;  %v239_v4 = vld [vmem:[%s1286_s3 + $0xb0] sm:$0xff] }
  0x10   :  { %v353_v20 = vmax.f32 %v289_v9, 0.0 }
  0x11   :  { %v354_v26 = vmax.f32 %v290_v14, 0.0  ;;  %v355_v27 = vmax.f32 %v291_v15, 0.0  ;;  %v356_v32 = vmax.f32 %v292_v21, 0.0 }
  0x12   :  { %v29_v50 = vld [vmem:[%s1283_s0 + $0x60] sm:$0xff]  ;;  %v30_v51 = vld [vmem:[%s1283_s0 + $0x68] sm:$0xff] }
  0x13   :  { %411 = vst.msk [vmem:[%s1287_s4 + $0x8] sm:$0xff] %vm409_vm0, %v346_v40  ;;  %v97_v5 = vmul.f32 %v511_v1, %v29_v50  ;;  %v98_v6 = vmul.f32 %v511_v1, %v30_v51  ;;  %v233_v40 = vld [vmem:[%s1286_s3 + $0x80] sm:$0xff] }
  0x15   :  { %v165_v16 = vadd.f32 %v516_v2, %v97_v5  ;;  %v166_v17 = vadd.f32 %v516_v2, %v98_v6 }
  0x17   :  { %v293_v28 = vadd.f32 %v229_v11, %v165_v16  ;;  %v294_v29 = vadd.f32 %v230_v12, %v166_v17  ;;  %v240_v16 = vld [vmem:[%s1286_s3 + $0xb8] sm:$0xff] }
  0x19   :  { %v357_v38 = vmax.f32 %v293_v28, 0.0  ;;  %v358_v39 = vmax.f32 %v294_v29, 0.0 }
  0x1a   :  { %v31_v57 = vld [vmem:[%s1283_s0 + $0x70] sm:$0xff] }
  0x1b   :  { %412 = vst.msk [vmem:[%s1287_s4 + $0x10] sm:$0xff] %vm409_vm0, %v347_v41  ;;  %v99_v13 = vmul.f32 %v511_v1, %v31_v57 }
  0x1c   :  { %413 = vst.msk [vmem:[%s1287_s4 + $0x18] sm:$0xff] %vm409_vm0, %v348_v46 }
  0x1d   :  { %v167_v22 = vadd.f32 %v516_v2, %v99_v13 }
  0x1f   :  { %v295_v33 = vadd.f32 %v231_v18, %v167_v22 }
  0x21   :  { %v359_v44 = vmax.f32 %v295_v33, 0.0  ;;  %v242_v33 = vld [vmem:[%s1286_s3 + $0xc8] sm:$0xff] }
  0x23   :  { %v32_v7 = vld [vmem:[%s1283_s0 + $0x78] sm:$0xff] }
  0x24   :  { %414 = vst.msk [vmem:[%s1287_s4 + $0x20] sm:$0xff] %vm409_vm0, %v349_v52  ;;  %v100_v23 = vmul.f32 %v511_v1, %v32_v7  ;;  %v236_v52 = vld [vmem:[%s1286_s3 + $0x98] sm:$0xff] }
  0x25   :  { %415 = vst.msk [vmem:[%s1287_s4 + $0x28] sm:$0xff] %vm409_vm0, %v350_v53 }
  0x26   :  { %v168_v34 = vadd.f32 %v516_v2, %v100_v23 }
  0x28   :  { %v296_v45 = vadd.f32 %v232_v30, %v168_v34  ;;  %v243_v34 = vld [vmem:[%s1286_s3 + $0xd0] sm:$0xff] }
  0x2a   :  { %v360_v56 = vmax.f32 %v296_v45, 0.0  ;;  %v245_v45 = vld [vmem:[%s1286_s3 + $0xe0] sm:$0xff] }
  0x2c   :  { %v33_v19 = vld [vmem:[%s1283_s0 + $0x80] sm:$0xff] }
  0x2d   :  { %416 = vst.msk [vmem:[%s1287_s4 + $0x30] sm:$0xff] %vm409_vm0, %v351_v58  ;;  %v101_v35 = vmul.f32 %v511_v1, %v33_v19 }
  0x2f   :  { %v169_v46 = vadd.f32 %v516_v2, %v101_v35 }
  0x31   :  { %v297_v57 = vadd.f32 %v233_v40, %v169_v46  ;;  %v246_v46 = vld [vmem:[%s1286_s3 + $0xe8] sm:$0xff] }
  0x33   :  { %v361_v6 = vmax.f32 %v297_v57, 0.0 }
  0x34   :  { %v34_v24 = vld [vmem:[%s1283_s0 + $0x88] sm:$0xff]  ;;  %v35_v25 = vld [vmem:[%s1283_s0 + $0x90] sm:$0xff] }
  0x35   :  { %417 = vst.msk [vmem:[%s1287_s4 + $0x38] sm:$0xff] %vm409_vm0, %v352_v8  ;;  %v102_v41 = vmul.f32 %v511_v1, %v34_v24  ;;  %v103_v42 = vmul.f32 %v511_v1, %v35_v25 }
  0x37   :  { %v170_v50 = vadd.f32 %v516_v2, %v102_v41  ;;  %v171_v51 = vadd.f32 %v516_v2, %v103_v42 }
  0x39   :  { %v298_v62 = vadd.f32 %v234_v47, %v170_v50  ;;  %v299_v63 = vadd.f32 %v235_v48, %v171_v51 }
  0x3b   :  { %v362_v12 = vmax.f32 %v298_v62, 0.0  ;;  %v363_v13 = vmax.f32 %v299_v63, 0.0 }
  0x3c   :  { %v36_v31 = vld [vmem:[%s1283_s0 + $0x98] sm:$0xff] }
  0x3d   :  { %418 = vst.msk [vmem:[%s1287_s4 + $0x40] sm:$0xff] %vm409_vm0, %v353_v20  ;;  %v104_v49 = vmul.f32 %v511_v1, %v36_v31 }
  0x3f   :  { %v172_v58 = vadd.f32 %v516_v2, %v104_v49 }
  0x41   :  { %v300_v7 = vadd.f32 %v236_v52, %v172_v58  ;;  %v247_v52 = vld [vmem:[%s1286_s3 + $0xf0] sm:$0xff] }
  0x43   :  { %v364_v18 = vmax.f32 %v300_v7, 0.0 }
  0x44   :  { %v37_v36 = vld [vmem:[%s1283_s0 + $0xa0] sm:$0xff]  ;;  %v38_v37 = vld [vmem:[%s1283_s0 + $0xa8] sm:$0xff] }
  0x45   :  { %419 = vst.msk [vmem:[%s1287_s4 + $0x48] sm:$0xff] %vm409_vm0, %v354_v26  ;;  %v105_v53 = vmul.f32 %v511_v1, %v37_v36  ;;  %v106_v54 = vmul.f32 %v511_v1, %v38_v37  ;;  %v241_v26 = vld [vmem:[%s1286_s3 + $0xc0] sm:$0xff] }
  0x47   :  { %v173_v0 = vadd.f32 %v516_v2, %v105_v53  ;;  %v174_v3 = vadd.f32 %v516_v2, %v106_v54 }
  0x49   :  { %v301_v14 = vadd.f32 %v237_v59, %v173_v0  ;;  %v302_v15 = vadd.f32 %v238_v60, %v174_v3  ;;  %v248_v0 = vld [vmem:[%s1286_s3 + $0xf8] sm:$0xff] }
  0x4b   :  { %v365_v24 = vmax.f32 %v301_v14, 0.0  ;;  %v366_v25 = vmax.f32 %v302_v15, 0.0 }
  0x4c   :  { %v39_v43 = vld [vmem:[%s1283_s0 + $0xb0] sm:$0xff] }
  0x4d   :  { %420 = vst.msk [vmem:[%s1287_s4 + $0x50] sm:$0xff] %vm409_vm0, %v355_v27  ;;  %v107_v61 = vmul.f32 %v511_v1, %v39_v43 }
  0x4e   :  { %421 = vst.msk [vmem:[%s1287_s4 + $0x58] sm:$0xff] %vm409_vm0, %v356_v32 }
  0x4f   :  { %v175_v8 = vadd.f32 %v516_v2, %v107_v61 }
  0x51   :  { %v303_v19 = vadd.f32 %v239_v4, %v175_v8 }
  0x53   :  { %v367_v30 = vmax.f32 %v303_v19, 0.0  ;;  %v250_v19 = vld [vmem:[%s1286_s3 + $0x108] sm:$0xff] }
  0x55   :  { %v40_v55 = vld [vmem:[%s1283_s0 + $0xb8] sm:$0xff] }
  0x56   :  { %422 = vst.msk [vmem:[%s1287_s4 + $0x60] sm:$0xff] %vm409_vm0, %v357_v38  ;;  %v108_v9 = vmul.f32 %v511_v1, %v40_v55  ;;  %v244_v38 = vld [vmem:[%s1286_s3 + $0xd8] sm:$0xff] }
  0x57   :  { %423 = vst.msk [vmem:[%s1287_s4 + $0x68] sm:$0xff] %vm409_vm0, %v358_v39 }
  0x58   :  { %v176_v20 = vadd.f32 %v516_v2, %v108_v9 }
  0x5a   :  { %v304_v31 = vadd.f32 %v240_v16, %v176_v20  ;;  %v251_v20 = vld [vmem:[%s1286_s3 + $0x110] sm:$0xff] }
  0x5c   :  { %v368_v42 = vmax.f32 %v304_v31, 0.0  ;;  %v253_v31 = vld [vmem:[%s1286_s3 + $0x120] sm:$0xff] }
  0x5e   :  { %v41_v5 = vld [vmem:[%s1283_s0 + $0xc0] sm:$0xff] }
  0x5f   :  { %424 = vst.msk [vmem:[%s1287_s4 + $0x70] sm:$0xff] %vm409_vm0, %v359_v44  ;;  %v109_v21 = vmul.f32 %v511_v1, %v41_v5 }
  0x61   :  { %v177_v32 = vadd.f32 %v516_v2, %v109_v21 }
  0x63   :  { %v305_v43 = vadd.f32 %v241_v26, %v177_v32  ;;  %v254_v32 = vld [vmem:[%s1286_s3 + $0x128] sm:$0xff] }
  0x65   :  { %v369_v54 = vmax.f32 %v305_v43, 0.0 }
  0x66   :  { %v42_v10 = vld [vmem:[%s1283_s0 + $0xc8] sm:$0xff]  ;;  %v43_v11 = vld [vmem:[%s1283_s0 + $0xd0] sm:$0xff] }
  0x67   :  { %425 = vst.msk [vmem:[%s1287_s4 + $0x78] sm:$0xff] %vm409_vm0, %v360_v56  ;;  %v110_v27 = vmul.f32 %v511_v1, %v42_v10  ;;  %v111_v28 = vmul.f32 %v511_v1, %v43_v11 }
  0x69   :  { %v178_v36 = vadd.f32 %v516_v2, %v110_v27  ;;  %v179_v37 = vadd.f32 %v516_v2, %v111_v28 }
  0x6b   :  { %v306_v48 = vadd.f32 %v242_v33, %v178_v36  ;;  %v307_v49 = vadd.f32 %v243_v34, %v179_v37 }
  0x6d   :  { %v370_v60 = vmax.f32 %v306_v48, 0.0  ;;  %v371_v61 = vmax.f32 %v307_v49, 0.0 }
  0x6e   :  { %v44_v17 = vld [vmem:[%s1283_s0 + $0xd8] sm:$0xff] }
  0x6f   :  { %426 = vst.msk [vmem:[%s1287_s4 + $0x80] sm:$0xff] %vm409_vm0, %v361_v6  ;;  %v112_v35 = vmul.f32 %v511_v1, %v44_v17 }
  0x71   :  { %v180_v44 = vadd.f32 %v516_v2, %v112_v35 }
  0x73   :  { %v308_v55 = vadd.f32 %v244_v38, %v180_v44  ;;  %v255_v38 = vld [vmem:[%s1286_s3 + $0x130] sm:$0xff] }
  0x75   :  { %v372_v4 = vmax.f32 %v308_v55, 0.0 }
  0x76   :  { %v45_v22 = vld [vmem:[%s1283_s0 + $0xe0] sm:$0xff]  ;;  %v46_v23 = vld [vmem:[%s1283_s0 + $0xe8] sm:$0xff] }
  0x77   :  { %427 = vst.msk [vmem:[%s1287_s4 + $0x88] sm:$0xff] %vm409_vm0, %v362_v12  ;;  %v113_v39 = vmul.f32 %v511_v1, %v45_v22  ;;  %v114_v40 = vmul.f32 %v511_v1, %v46_v23  ;;  %v249_v12 = vld [vmem:[%s1286_s3 + $0x100] sm:$0xff] }
  0x79   :  { %v181_v50 = vadd.f32 %v516_v2, %v113_v39  ;;  %v182_v51 = vadd.f32 %v516_v2, %v114_v40 }
  0x7b   :  { %v309_v62 = vadd.f32 %v245_v45, %v181_v50  ;;  %v310_v63 = vadd.f32 %v246_v46, %v182_v51  ;;  %v256_v50 = vld [vmem:[%s1286_s3 + $0x138] sm:$0xff] }
  0x7d   :  { %v373_v10 = vmax.f32 %v309_v62, 0.0  ;;  %v374_v11 = vmax.f32 %v310_v63, 0.0 }
  0x7e   :  { %v47_v29 = vld [vmem:[%s1283_s0 + $0xf0] sm:$0xff] }
  0x7f   :  { %428 = vst.msk [vmem:[%s1287_s4 + $0x90] sm:$0xff] %vm409_vm0, %v363_v13  ;;  %v115_v47 = vmul.f32 %v511_v1, %v47_v29 }
  0x80   :  { %429 = vst.msk [vmem:[%s1287_s4 + $0x98] sm:$0xff] %vm409_vm0, %v364_v18 }
  0x81   :  { %v183_v56 = vadd.f32 %v516_v2, %v115_v47 }
  0x83   :  { %v311_v5 = vadd.f32 %v247_v52, %v183_v56 }
  0x85   :  { %v375_v16 = vmax.f32 %v311_v5, 0.0  ;;  %v258_v5 = vld [vmem:[%s1286_s3 + $0x148] sm:$0xff] }
  0x87   :  { %v48_v41 = vld [vmem:[%s1283_s0 + $0xf8] sm:$0xff] }
  0x88   :  { %430 = vst.msk [vmem:[%s1287_s4 + $0xa0] sm:$0xff] %vm409_vm0, %v365_v24  ;;  %v116_v57 = vmul.f32 %v511_v1, %v48_v41  ;;  %v252_v24 = vld [vmem:[%s1286_s3 + $0x118] sm:$0xff] }
  0x89   :  { %431 = vst.msk [vmem:[%s1287_s4 + $0xa8] sm:$0xff] %vm409_vm0, %v366_v25 }
  0x8a   :  { %v184_v6 = vadd.f32 %v516_v2, %v116_v57 }
  0x8c   :  { %v312_v17 = vadd.f32 %v248_v0, %v184_v6  ;;  %v259_v6 = vld [vmem:[%s1286_s3 + $0x150] sm:$0xff] }
  0x8e   :  { %v376_v28 = vmax.f32 %v312_v17, 0.0  ;;  %v261_v17 = vld [vmem:[%s1286_s3 + $0x160] sm:$0xff] }
  0x90   :  { %v49_v53 = vld [vmem:[%s1283_s0 + $0x100] sm:$0xff] }
  0x91   :  { %432 = vst.msk [vmem:[%s1287_s4 + $0xb0] sm:$0xff] %vm409_vm0, %v367_v30  ;;  %v117_v7 = vmul.f32 %v511_v1, %v49_v53 }
  0x93   :  { %v185_v18 = vadd.f32 %v516_v2, %v117_v7 }
  0x95   :  { %v313_v29 = vadd.f32 %v249_v12, %v185_v18  ;;  %v262_v18 = vld [vmem:[%s1286_s3 + $0x168] sm:$0xff] }
  0x97   :  { %v377_v40 = vmax.f32 %v313_v29, 0.0 }
  0x98   :  { %v50_v58 = vld [vmem:[%s1283_s0 + $0x108] sm:$0xff]  ;;  %v51_v59 = vld [vmem:[%s1283_s0 + $0x110] sm:$0xff] }
  0x99   :  { %433 = vst.msk [vmem:[%s1287_s4 + $0xb8] sm:$0xff] %vm409_vm0, %v368_v42  ;;  %v118_v13 = vmul.f32 %v511_v1, %v50_v58  ;;  %v119_v14 = vmul.f32 %v511_v1, %v51_v59 }
  0x9b   :  { %v186_v22 = vadd.f32 %v516_v2, %v118_v13  ;;  %v187_v23 = vadd.f32 %v516_v2, %v119_v14 }
  0x9d   :  { %v314_v34 = vadd.f32 %v250_v19, %v186_v22  ;;  %v315_v35 = vadd.f32 %v251_v20, %v187_v23 }
  0x9f   :  { %v378_v46 = vmax.f32 %v314_v34, 0.0  ;;  %v379_v47 = vmax.f32 %v315_v35, 0.0 }
  0xa0   :  { %v52_v3 = vld [vmem:[%s1283_s0 + $0x118] sm:$0xff] }
  0xa1   :  { %434 = vst.msk [vmem:[%s1287_s4 + $0xc0] sm:$0xff] %vm409_vm0, %v369_v54  ;;  %v120_v21 = vmul.f32 %v511_v1, %v52_v3 }
  0xa3   :  { %v188_v30 = vadd.f32 %v516_v2, %v120_v21 }
  0xa5   :  { %v316_v41 = vadd.f32 %v252_v24, %v188_v30  ;;  %v263_v24 = vld [vmem:[%s1286_s3 + $0x170] sm:$0xff] }
  0xa7   :  { %v380_v52 = vmax.f32 %v316_v41, 0.0 }
  0xa8   :  { %v53_v8 = vld [vmem:[%s1283_s0 + $0x120] sm:$0xff]  ;;  %v54_v9 = vld [vmem:[%s1283_s0 + $0x128] sm:$0xff] }
  0xa9   :  { %435 = vst.msk [vmem:[%s1287_s4 + $0xc8] sm:$0xff] %vm409_vm0, %v370_v60  ;;  %v121_v25 = vmul.f32 %v511_v1, %v53_v8  ;;  %v122_v26 = vmul.f32 %v511_v1, %v54_v9  ;;  %v257_v60 = vld [vmem:[%s1286_s3 + $0x140] sm:$0xff] }
  0xab   :  { %v189_v36 = vadd.f32 %v516_v2, %v121_v25  ;;  %v190_v37 = vadd.f32 %v516_v2, %v122_v26 }
  0xad   :  { %v317_v48 = vadd.f32 %v253_v31, %v189_v36  ;;  %v318_v49 = vadd.f32 %v254_v32, %v190_v37  ;;  %v264_v36 = vld [vmem:[%s1286_s3 + $0x178] sm:$0xff] }
  0xaf   :  { %v381_v58 = vmax.f32 %v317_v48, 0.0  ;;  %v382_v59 = vmax.f32 %v318_v49, 0.0 }
  0xb0   :  { %v55_v15 = vld [vmem:[%s1283_s0 + $0x130] sm:$0xff] }
  0xb1   :  { %436 = vst.msk [vmem:[%s1287_s4 + $0xd0] sm:$0xff] %vm409_vm0, %v371_v61  ;;  %v123_v33 = vmul.f32 %v511_v1, %v55_v15 }
  0xb2   :  { %437 = vst.msk [vmem:[%s1287_s4 + $0xd8] sm:$0xff] %vm409_vm0, %v372_v4 }
  0xb3   :  { %v191_v42 = vadd.f32 %v516_v2, %v123_v33 }
  0xb5   :  { %v319_v53 = vadd.f32 %v255_v38, %v191_v42 }
  0xb7   :  { %v383_v0 = vmax.f32 %v319_v53, 0.0  ;;  %v266_v53 = vld [vmem:[%s1286_s3 + $0x188] sm:$0xff] }
  0xb9   :  { %v56_v27 = vld [vmem:[%s1283_s0 + $0x138] sm:$0xff] }
  0xba   :  { %438 = vst.msk [vmem:[%s1287_s4 + $0xe0] sm:$0xff] %vm409_vm0, %v373_v10  ;;  %v124_v43 = vmul.f32 %v511_v1, %v56_v27  ;;  %v260_v10 = vld [vmem:[%s1286_s3 + $0x158] sm:$0xff] }
  0xbb   :  { %439 = vst.msk [vmem:[%s1287_s4 + $0xe8] sm:$0xff] %vm409_vm0, %v374_v11 }
  0xbc   :  { %v192_v54 = vadd.f32 %v516_v2, %v124_v43 }
  0xbe   :  { %v320_v3 = vadd.f32 %v256_v50, %v192_v54  ;;  %v267_v54 = vld [vmem:[%s1286_s3 + $0x190] sm:$0xff] }
  0xc0   :  { %v384_v14 = vmax.f32 %v320_v3, 0.0  ;;  %v269_v3 = vld [vmem:[%s1286_s3 + $0x1a0] sm:$0xff] }
  0xc2   :  { %v57_v39 = vld [vmem:[%s1283_s0 + $0x140] sm:$0xff] }
  0xc3   :  { %440 = vst.msk [vmem:[%s1287_s4 + $0xf0] sm:$0xff] %vm409_vm0, %v375_v16  ;;  %v125_v55 = vmul.f32 %v511_v1, %v57_v39 }
  0xc5   :  { %v193_v4 = vadd.f32 %v516_v2, %v125_v55 }
  0xc7   :  { %v321_v15 = vadd.f32 %v257_v60, %v193_v4  ;;  %v270_v4 = vld [vmem:[%s1286_s3 + $0x1a8] sm:$0xff] }
  0xc9   :  { %v385_v26 = vmax.f32 %v321_v15, 0.0 }
  0xca   :  { %v58_v44 = vld [vmem:[%s1283_s0 + $0x148] sm:$0xff]  ;;  %v59_v45 = vld [vmem:[%s1283_s0 + $0x150] sm:$0xff] }
  0xcb   :  { %441 = vst.msk [vmem:[%s1287_s4 + $0xf8] sm:$0xff] %vm409_vm0, %v376_v28  ;;  %v126_v61 = vmul.f32 %v511_v1, %v58_v44  ;;  %v127_v62 = vmul.f32 %v511_v1, %v59_v45 }
  0xcd   :  { %v194_v8 = vadd.f32 %v516_v2, %v126_v61  ;;  %v195_v9 = vadd.f32 %v516_v2, %v127_v62 }
  0xcf   :  { %v322_v20 = vadd.f32 %v258_v5, %v194_v8  ;;  %v323_v21 = vadd.f32 %v259_v6, %v195_v9 }
  0xd1   :  { %v386_v32 = vmax.f32 %v322_v20, 0.0  ;;  %v387_v33 = vmax.f32 %v323_v21, 0.0 }
  0xd2   :  { %v60_v51 = vld [vmem:[%s1283_s0 + $0x158] sm:$0xff] }
  0xd3   :  { %442 = vst.msk [vmem:[%s1287_s4 + $0x100] sm:$0xff] %vm409_vm0, %v377_v40  ;;  %v128_v7 = vmul.f32 %v511_v1, %v60_v51 }
  0xd5   :  { %v196_v16 = vadd.f32 %v516_v2, %v128_v7 }
  0xd7   :  { %v324_v27 = vadd.f32 %v260_v10, %v196_v16  ;;  %v271_v10 = vld [vmem:[%s1286_s3 + $0x1b0] sm:$0xff] }
  0xd9   :  { %v388_v38 = vmax.f32 %v324_v27, 0.0 }
  0xda   :  { %v61_v56 = vld [vmem:[%s1283_s0 + $0x160] sm:$0xff]  ;;  %v62_v57 = vld [vmem:[%s1283_s0 + $0x168] sm:$0xff] }
  0xdb   :  { %443 = vst.msk [vmem:[%s1287_s4 + $0x108] sm:$0xff] %vm409_vm0, %v378_v46  ;;  %v129_v11 = vmul.f32 %v511_v1, %v61_v56  ;;  %v130_v12 = vmul.f32 %v511_v1, %v62_v57  ;;  %v265_v46 = vld [vmem:[%s1286_s3 + $0x180] sm:$0xff] }
  0xdd   :  { %v197_v22 = vadd.f32 %v516_v2, %v129_v11  ;;  %v198_v23 = vadd.f32 %v516_v2, %v130_v12 }
  0xdf   :  { %v325_v34 = vadd.f32 %v261_v17, %v197_v22  ;;  %v326_v35 = vadd.f32 %v262_v18, %v198_v23  ;;  %v272_v22 = vld [vmem:[%s1286_s3 + $0x1b8] sm:$0xff] }
  0xe1   :  { %v389_v44 = vmax.f32 %v325_v34, 0.0  ;;  %v390_v45 = vmax.f32 %v326_v35, 0.0 }
  0xe2   :  { %v63_v63 = vld [vmem:[%s1283_s0 + $0x170] sm:$0xff] }
  0xe3   :  { %444 = vst.msk [vmem:[%s1287_s4 + $0x110] sm:$0xff] %vm409_vm0, %v379_v47  ;;  %v131_v19 = vmul.f32 %v511_v1, %v63_v63 }
  0xe4   :  { %445 = vst.msk [vmem:[%s1287_s4 + $0x118] sm:$0xff] %vm409_vm0, %v380_v52 }
  0xe5   :  { %v199_v28 = vadd.f32 %v516_v2, %v131_v19 }
  0xe7   :  { %v327_v39 = vadd.f32 %v263_v24, %v199_v28 }
  0xe9   :  { %v391_v50 = vmax.f32 %v327_v39, 0.0  ;;  %v274_v39 = vld [vmem:[%s1286_s3 + $0x1c8] sm:$0xff] }
  0xeb   :  { %v64_v13 = vld [vmem:[%s1283_s0 + $0x178] sm:$0xff] }
  0xec   :  { %446 = vst.msk [vmem:[%s1287_s4 + $0x120] sm:$0xff] %vm409_vm0, %v381_v58  ;;  %v132_v29 = vmul.f32 %v511_v1, %v64_v13  ;;  %v268_v58 = vld [vmem:[%s1286_s3 + $0x198] sm:$0xff] }
  0xed   :  { %447 = vst.msk [vmem:[%s1287_s4 + $0x128] sm:$0xff] %vm409_vm0, %v382_v59 }
  0xee   :  { %v200_v40 = vadd.f32 %v516_v2, %v132_v29 }
  0xf0   :  { %v328_v51 = vadd.f32 %v264_v36, %v200_v40  ;;  %v275_v40 = vld [vmem:[%s1286_s3 + $0x1d0] sm:$0xff] }
  0xf2   :  { %v392_v62 = vmax.f32 %v328_v51, 0.0  ;;  %v277_v51 = vld [vmem:[%s1286_s3 + $0x1e0] sm:$0xff] }
  0xf4   :  { %v65_v25 = vld [vmem:[%s1283_s0 + $0x180] sm:$0xff] }
  0xf5   :  { %448 = vst.msk [vmem:[%s1287_s4 + $0x130] sm:$0xff] %vm409_vm0, %v383_v0  ;;  %v133_v41 = vmul.f32 %v511_v1, %v65_v25 }
  0xf7   :  { %v201_v52 = vadd.f32 %v516_v2, %v133_v41 }
  0xf9   :  { %v329_v63 = vadd.f32 %v265_v46, %v201_v52  ;;  %v278_v52 = vld [vmem:[%s1286_s3 + $0x1e8] sm:$0xff] }
  0xfb   :  { %v393_v12 = vmax.f32 %v329_v63, 0.0 }
  0xfc   :  { %v66_v30 = vld [vmem:[%s1283_s0 + $0x188] sm:$0xff]  ;;  %v67_v31 = vld [vmem:[%s1283_s0 + $0x190] sm:$0xff] }
  0xfd   :  { %449 = vst.msk [vmem:[%s1287_s4 + $0x138] sm:$0xff] %vm409_vm0, %v384_v14  ;;  %v134_v47 = vmul.f32 %v511_v1, %v66_v30  ;;  %v135_v48 = vmul.f32 %v511_v1, %v67_v31 }
  0xff   :  { %v202_v56 = vadd.f32 %v516_v2, %v134_v47  ;;  %v203_v57 = vadd.f32 %v516_v2, %v135_v48 }
 0x101   :  { %v330_v6 = vadd.f32 %v266_v53, %v202_v56  ;;  %v331_v7 = vadd.f32 %v267_v54, %v203_v57 }
 0x103   :  { %v394_v18 = vmax.f32 %v330_v6, 0.0  ;;  %v395_v19 = vmax.f32 %v331_v7, 0.0 }
 0x104   :  { %v68_v37 = vld [vmem:[%s1283_s0 + $0x198] sm:$0xff] }
 0x105   :  { %450 = vst.msk [vmem:[%s1287_s4 + $0x140] sm:$0xff] %vm409_vm0, %v385_v26  ;;  %v136_v55 = vmul.f32 %v511_v1, %v68_v37 }
 0x107   :  { %v204_v0 = vadd.f32 %v516_v2, %v136_v55 }
 0x109   :  { %v332_v13 = vadd.f32 %v268_v58, %v204_v0  ;;  %v279_v58 = vld [vmem:[%s1286_s3 + $0x1f0] sm:$0xff] }
 0x10b   :  { %v396_v24 = vmax.f32 %v332_v13, 0.0 }
 0x10c   :  { %v69_v42 = vld [vmem:[%s1283_s0 + $0x1a0] sm:$0xff]  ;;  %v70_v43 = vld [vmem:[%s1283_s0 + $0x1a8] sm:$0xff] }
 0x10d   :  { %451 = vst.msk [vmem:[%s1287_s4 + $0x148] sm:$0xff] %vm409_vm0, %v386_v32  ;;  %v137_v59 = vmul.f32 %v511_v1, %v69_v42  ;;  %v138_v60 = vmul.f32 %v511_v1, %v70_v43  ;;  %v273_v32 = vld [vmem:[%s1286_s3 + $0x1c0] sm:$0xff] }
 0x10f   :  { %v205_v8 = vadd.f32 %v516_v2, %v137_v59  ;;  %v206_v9 = vadd.f32 %v516_v2, %v138_v60 }
 0x111   :  { %v333_v20 = vadd.f32 %v269_v3, %v205_v8  ;;  %v334_v21 = vadd.f32 %v270_v4, %v206_v9 }
 0x113   :  { %v397_v30 = vmax.f32 %v333_v20, 0.0  ;;  %v398_v31 = vmax.f32 %v334_v21, 0.0 }
 0x114   :  { %v71_v49 = vld [vmem:[%s1283_s0 + $0x1b0] sm:$0xff] }
 0x115   :  { %452 = vst.msk [vmem:[%s1287_s4 + $0x150] sm:$0xff] %vm409_vm0, %v387_v33  ;;  %v139_v5 = vmul.f32 %v511_v1, %v71_v49 }
 0x116   :  { %453 = vst.msk [vmem:[%s1287_s4 + $0x158] sm:$0xff] %vm409_vm0, %v388_v38 }
 0x117   :  { %v207_v14 = vadd.f32 %v516_v2, %v139_v5  ;;  %v280_v5 = vld [vmem:[%s1286_s3 + $0x1f8] sm:$0xff] }
 0x119   :  { %v335_v25 = vadd.f32 %v271_v10, %v207_v14 }
 0x11b   :  { %v399_v36 = vmax.f32 %v335_v25, 0.0 }
 0x11d   :  { %v72_v61 = vld [vmem:[%s1283_s0 + $0x1b8] sm:$0xff] }
 0x11e   :  { %454 = vst.msk [vmem:[%s1287_s4 + $0x160] sm:$0xff] %vm409_vm0, %v389_v44  ;;  %v140_v15 = vmul.f32 %v511_v1, %v72_v61  ;;  %v276_v44 = vld [vmem:[%s1286_s3 + $0x1d8] sm:$0xff] }
 0x11f   :  { %455 = vst.msk [vmem:[%s1287_s4 + $0x168] sm:$0xff] %vm409_vm0, %v390_v45 }
 0x120   :  { %v208_v26 = vadd.f32 %v516_v2, %v140_v15 }
 0x122   :  { %v336_v37 = vadd.f32 %v272_v22, %v208_v26 }
 0x124   :  { %v400_v48 = vmax.f32 %v336_v37, 0.0 }
 0x126   :  { %v73_v11 = vld [vmem:[%s1283_s0 + $0x1c0] sm:$0xff] }
 0x127   :  { %456 = vst.msk [vmem:[%s1287_s4 + $0x170] sm:$0xff] %vm409_vm0, %v391_v50  ;;  %v141_v27 = vmul.f32 %v511_v1, %v73_v11 }
 0x129   :  { %v209_v38 = vadd.f32 %v516_v2, %v141_v27 }
 0x12b   :  { %v337_v49 = vadd.f32 %v273_v32, %v209_v38 }
 0x12d   :  { %v401_v59 = vmax.f32 %v337_v49, 0.0 }
 0x12e   :  { %v74_v16 = vld [vmem:[%s1283_s0 + $0x1c8] sm:$0xff]  ;;  %v75_v17 = vld [vmem:[%s1283_s0 + $0x1d0] sm:$0xff] }
 0x12f   :  { %457 = vst.msk [vmem:[%s1287_s4 + $0x178] sm:$0xff] %vm409_vm0, %v392_v62  ;;  %v142_v33 = vmul.f32 %v511_v1, %v74_v16  ;;  %v143_v34 = vmul.f32 %v511_v1, %v75_v17 }
 0x131   :  { %v210_v42 = vadd.f32 %v516_v2, %v142_v33  ;;  %v211_v43 = vadd.f32 %v516_v2, %v143_v34 }
 0x133   :  { %v338_v54 = vadd.f32 %v274_v39, %v210_v42  ;;  %v339_v55 = vadd.f32 %v275_v40, %v211_v43 }
 0x135   :  { %v402_v63 = vmax.f32 %v338_v54, 0.0  ;;  %v403_v0 = vmax.f32 %v339_v55, 0.0 }
 0x136   :  { %v76_v23 = vld [vmem:[%s1283_s0 + $0x1d8] sm:$0xff] }
 0x137   :  { %458 = vst.msk [vmem:[%s1287_s4 + $0x180] sm:$0xff] %vm409_vm0, %v393_v12  ;;  %v144_v41 = vmul.f32 %v511_v1, %v76_v23 }
 0x139   :  { %v212_v50 = vadd.f32 %v516_v2, %v144_v41 }
 0x13b   :  { %v340_v60 = vadd.f32 %v276_v44, %v212_v50 }
 0x13d   :  { %v404_v6 = vmax.f32 %v340_v60, 0.0 }
 0x13e   :  { %v77_v28 = vld [vmem:[%s1283_s0 + $0x1e0] sm:$0xff]  ;;  %v78_v29 = vld [vmem:[%s1283_s0 + $0x1e8] sm:$0xff] }
 0x13f   :  { %459 = vst.msk [vmem:[%s1287_s4 + $0x188] sm:$0xff] %vm409_vm0, %v394_v18  ;;  %v145_v45 = vmul.f32 %v511_v1, %v77_v28  ;;  %v146_v46 = vmul.f32 %v511_v1, %v78_v29 }
 0x141   :  { %v213_v56 = vadd.f32 %v516_v2, %v145_v45  ;;  %v214_v57 = vadd.f32 %v516_v2, %v146_v46 }
 0x143   :  { %v341_v3 = vadd.f32 %v277_v51, %v213_v56  ;;  %v342_v4 = vadd.f32 %v278_v52, %v214_v57 }
 0x145   :  { %v405_v8 = vmax.f32 %v341_v3, 0.0  ;;  %v406_v9 = vmax.f32 %v342_v4, 0.0 }
 0x146   :  { %v79_v35 = vld [vmem:[%s1283_s0 + $0x1f0] sm:$0xff] }
 0x147   :  { %460 = vst.msk [vmem:[%s1287_s4 + $0x190] sm:$0xff] %vm409_vm0, %v395_v19  ;;  %v147_v53 = vmul.f32 %v511_v1, %v79_v35 }
 0x148   :  { %461 = vst.msk [vmem:[%s1287_s4 + $0x198] sm:$0xff] %vm409_vm0, %v396_v24 }
 0x149   :  { %v215_v61 = vadd.f32 %v516_v2, %v147_v53 }
 0x14f   :  { %v80_v47 = vld [vmem:[%s1283_s0 + $0x1f8] sm:$0xff] }
 0x150   :  { %462 = vst.msk [vmem:[%s1287_s4 + $0x1a0] sm:$0xff] %vm409_vm0, %v397_v30  ;;  %v148_v62 = vmul.f32 %v511_v1, %v80_v47  ;;  %v343_v1 = vadd.f32 %v279_v58, %v215_v61 }
 0x151   :  { %463 = vst.msk [vmem:[%s1287_s4 + $0x1a8] sm:$0xff] %vm409_vm0, %v398_v31 }
 0x152   :  { %464 = vst.msk [vmem:[%s1287_s4 + $0x1b0] sm:$0xff] %vm409_vm0, %v399_v36  ;;  %v216_v7 = vadd.f32 %v516_v2, %v148_v62  ;;  %v407_v10 = vmax.f32 %v343_v1, 0.0 }
 0x153   :  { %465 = vst.msk [vmem:[%s1287_s4 + $0x1b8] sm:$0xff] %vm409_vm0, %v400_v48 }
 0x154   :  { %466 = vst.msk [vmem:[%s1287_s4 + $0x1c0] sm:$0xff] %vm409_vm0, %v401_v59  ;;  %v344_v11 = vadd.f32 %v280_v5, %v216_v7 }
 0x155   :  { %467 = vst.msk [vmem:[%s1287_s4 + $0x1c8] sm:$0xff] %vm409_vm0, %v402_v63 }
 0x156   :  { %468 = vst.msk [vmem:[%s1287_s4 + $0x1d0] sm:$0xff] %vm409_vm0, %v403_v0  ;;  %v408_v2 = vmax.f32 %v344_v11, 0.0 }
 0x157   :  { %469 = vst.msk [vmem:[%s1287_s4 + $0x1d8] sm:$0xff] %vm409_vm0, %v404_v6 }
 0x158   :  { %470 = vst.msk [vmem:[%s1287_s4 + $0x1e0] sm:$0xff] %vm409_vm0, %v405_v8 }
 0x159   :  { %471 = vst.msk [vmem:[%s1287_s4 + $0x1e8] sm:$0xff] %vm409_vm0, %v406_v9 }
 0x15a   :  { %472 = vst.msk [vmem:[%s1287_s4 + $0x1f0] sm:$0xff] %vm409_vm0, %v407_v10 }
 0x15b   :  { %473 = vst.msk [vmem:[%s1287_s4 + $0x1f8] sm:$0xff] %vm409_vm0, %v408_v2 }

// kernel: bottleneck_forward.6
= control target key start
LH: loop header
LB: loop body
LE: loop exit
PB: predicated region body
PF: predicated region fallthrough
CT: control target
= control target key end

     0   :  { %vm477_vm0 = vcmask 1043456   ;;  %vm284_vm1 = vcmask 31744   ;;  %vm690_vm2 = vcmask 130048   ;;  %vm1085_vm3 = vcmask 1040384   ;;  %s2281_s3 = inlined_call_operand.vmem [shape: f32[4,16], index: 3, kind: input, shape index: {}]   ;;  %s2282_s0 = inlined_call_operand.vmem [shape: f32[512,4], index: 0, kind: input, shape index: {}]   ;;  %s2283_s1 = inlined_call_operand.vmem [shape: f32[1,4], index: 1, kind: input, shape index: {}]   ;;  %s2284_s2 = inlined_call_operand.vmem [shape: f32[1,4], index: 2, kind: input, shape index: {}]   ;;  %s2285_s4 = inlined_call_operand.vmem [shape: f32[512,16], index: 4, kind: output, shape index: {0}]   ;;  %s2286_s5 = inlined_call_operand.vmem [shape: f32[1,2,16], index: 5, kind: output, shape index: {1}]  }
   0x1   :  { %v283_v0 = vld [vmem:[%s2281_s3] sm:$0xf]  ;;  %v20_v4 = vld [vmem:[%s2282_s0 + $0x8] sm:$0xff]  ;;  %v21_v14 = vld [vmem:[%s2282_s0 + $0x10] sm:$0xff]  ;;  %vm1087_vm4 = vcmask 123904  }
   0x2   :  { %v19_v1 = vld [vmem:[%s2282_s0] sm:$0xff]  ;;  %1097 = vmatpush.msk.msra.mxu0 %vm477_vm0, %v283_v0  ;;  %1162 = vmatpush.msk.msra.mxu1 %vm477_vm0, %v283_v0  ;;  %v36_v15 = vld [vmem:[%s2282_s0 + $0x88] sm:$0xff]  ;;  %v22_v22 = vld [vmem:[%s2282_s0 + $0x18] sm:$0xff] }
   0x3   :  { %v1206_v2 = vld [vmem:[%s2283_s1] ss:$0 sm:$0xff]  ;;  %1163 = vmatpush.msk.msra.mxu2 %vm477_vm0, %v283_v0  ;;  %1164 = vmatpush.msk.msra.mxu3 %vm477_vm0, %v283_v0  ;;  %v37_v23 = vld [vmem:[%s2282_s0 + $0x90] sm:$0xff]  ;;  %v38_v31 = vld [vmem:[%s2282_s0 + $0x98] sm:$0xff] }
   0x4   :  { %v1211_v3 = vld [vmem:[%s2284_s2] ss:$0 sm:$0xff]  ;;  %v87_v5 = vmul.f32 %v1206_v2, %v19_v1  ;;  %v88_v9 = vmul.f32 %v1206_v2, %v20_v4  ;;  %v104_v16 = vmul.f32 %v1206_v2, %v36_v15  ;;  %v89_v18 = vmul.f32 %v1206_v2, %v21_v14  ;;  %v24_v42 = vld [vmem:[%s2282_s0 + $0x28] sm:$0xff]  ;;  %v25_v54 = vld [vmem:[%s2282_s0 + $0x30] sm:$0xff] }
   0x5   :  { %v35_v6 = vld [vmem:[%s2282_s0 + $0x80] sm:$0xff]  ;;  %v105_v24 = vmul.f32 %v1206_v2, %v37_v23  ;;  %v90_v26 = vmul.f32 %v1206_v2, %v22_v22  ;;  %v106_v32 = vmul.f32 %v1206_v2, %v38_v31  ;;  %v52_v45 = vld [vmem:[%s2282_s0 + $0x108] sm:$0xff]  ;;  %v92_v47 = vmul.f32 %v1206_v2, %v24_v42  ;;  %v53_v57 = vld [vmem:[%s2282_s0 + $0x110] sm:$0xff] }
   0x6   :  { %v103_v7 = vmul.f32 %v1206_v2, %v35_v6  ;;  %v155_v8 = vadd.f32 %v1211_v3, %v87_v5  ;;  %v156_v13 = vadd.f32 %v1211_v3, %v88_v9  ;;  %v172_v19 = vadd.f32 %v1211_v3, %v104_v16  ;;  %v23_v30 = vld [vmem:[%s2282_s0 + $0x20] sm:$0xff]  ;;  %v40_v55 = vld [vmem:[%s2282_s0 + $0xa8] sm:$0xff]  ;;  %v26_v4 = vld [vmem:[%s2282_s0 + $0x38] sm:$0xff] }
   0x7   :  { %v157_v21 = vadd.f32 %v1211_v3, %v89_v18  ;;  %v173_v27 = vadd.f32 %v1211_v3, %v105_v24  ;;  %v158_v29 = vadd.f32 %v1211_v3, %v90_v26  ;;  %v51_v33 = vld [vmem:[%s2282_s0 + $0x100] sm:$0xff]  ;;  %v91_v35 = vmul.f32 %v1206_v2, %v23_v30  ;;  %v41_v5 = vld [vmem:[%s2282_s0 + $0xb0] sm:$0xff] }
   0x8   :  { %v171_v10 = vadd.f32 %v1211_v3, %v103_v7  ;;  %v219_v11 = vmax.f32 %v155_v8, 0.0  ;;  %v220_v17 = vmax.f32 %v156_v13, 0.0  ;;  %v236_v20 = vmax.f32 %v172_v19, 0.0  ;;  %v39_v43 = vld [vmem:[%s2282_s0 + $0xa0] sm:$0xff]  ;;  %v54_v7 = vld [vmem:[%s2282_s0 + $0x118] sm:$0xff] }
   0x9   :  { %v221_v25 = vmax.f32 %v157_v21, 0.0  ;;  %v237_v28 = vmax.f32 %v173_v27, 0.0  ;;  %v222_v34 = vmax.f32 %v158_v29, 0.0  ;;  %v174_v36 = vadd.f32 %v1211_v3, %v106_v32  ;;  %v27_v15 = vld [vmem:[%s2282_s0 + $0x40] sm:$0xff]  ;;  %v28_v32 = vld [vmem:[%s2282_s0 + $0x48] sm:$0xff] }
   0xa   :  { %v235_v12 = vmax.f32 %v171_v10, 0.0  ;;  %1098 = vmatmul.msk.f32.vlgmr.msra.gmra.mxu0 %vm284_vm1, %v219_v11  ;;  %v119_v37 = vmul.f32 %v1206_v2, %v51_v33  ;;  %v159_v40 = vadd.f32 %v1211_v3, %v91_v35  ;;  %v107_v44 = vmul.f32 %v1206_v2, %v39_v43  ;;  %v67_v21 = vld [vmem:[%s2282_s0 + $0x180] sm:$0xff] }
   0xb   :  { %v238_v38 = vmax.f32 %v174_v36, 0.0  ;;  %v120_v49 = vmul.f32 %v1206_v2, %v52_v45  ;;  %v160_v52 = vadd.f32 %v1211_v3, %v92_v47  ;;  %v108_v56 = vmul.f32 %v1206_v2, %v40_v55  ;;  %v43_v33 = vld [vmem:[%s2282_s0 + $0xc0] sm:$0xff]  ;;  %v56_v36 = vld [vmem:[%s2282_s0 + $0x128] sm:$0xff] }
   0xc   :  { %1114 = vmatmul.msk.f32.vlgmr.msra.gmra.mxu1 %vm284_vm1, %v235_v12  ;;  %v187_v39 = vadd.f32 %v1211_v3, %v119_v37  ;;  %v223_v46 = vmax.f32 %v159_v40, 0.0  ;;  %v175_v48 = vadd.f32 %v1211_v3, %v107_v44  ;;  %v93_v59 = vmul.f32 %v1206_v2, %v25_v54  ;;  %v68_v37 = vld [vmem:[%s2282_s0 + $0x188] sm:$0xff] }
   0xd   :  { %v188_v51 = vadd.f32 %v1211_v3, %v120_v49  ;;  %v224_v58 = vmax.f32 %v160_v52, 0.0  ;;  %v176_v60 = vadd.f32 %v1211_v3, %v108_v56  ;;  %v121_v61 = vmul.f32 %v1206_v2, %v53_v57  ;;  %v44_v49 = vld [vmem:[%s2282_s0 + $0xc8] sm:$0xff]  ;;  %v57_v52 = vld [vmem:[%s2282_s0 + $0x130] sm:$0xff] }
   0xe   :  { %v251_v41 = vmax.f32 %v187_v39, 0.0  ;;  %v239_v50 = vmax.f32 %v175_v48, 0.0  ;;  %v161_v0 = vadd.f32 %v1211_v3, %v93_v59  ;;  %v109_v6 = vmul.f32 %v1206_v2, %v41_v5 }
   0xf   :  { %v252_v53 = vmax.f32 %v188_v51, 0.0  ;;  %v240_v62 = vmax.f32 %v176_v60, 0.0  ;;  %v189_v63 = vadd.f32 %v1211_v3, %v121_v61  ;;  %v94_v9 = vmul.f32 %v1206_v2, %v26_v4 }
  0x10   :  { %1130 = vmatmul.msk.f32.vlgmr.msra.gmra.mxu2 %vm284_vm1, %v251_v41  ;;  %v225_v8 = vmax.f32 %v161_v0, 0.0  ;;  %v177_v10 = vadd.f32 %v1211_v3, %v109_v6  ;;  %v122_v11 = vmul.f32 %v1206_v2, %v54_v7  ;;  %v95_v19 = vmul.f32 %v1206_v2, %v27_v15  ;;  %v30_v0 = vld [vmem:[%s2282_s0 + $0x58] sm:$0xff] }
  0x11   :  { %v253_v1 = vmax.f32 %v189_v63, 0.0  ;;  %v162_v14 = vadd.f32 %v1211_v3, %v94_v9  ;;  %v124_v40 = vmul.f32 %v1206_v2, %v56_v36  ;;  %v136_v41 = vmul.f32 %v1206_v2, %v68_v37  ;;  %v58_v6 = vld [vmem:[%s2282_s0 + $0x138] sm:$0xff] }
  0x12   :  { %1099 = vmatmul.msk.f32.gmra.mxu0 %vm284_vm1, %v220_v17  ;;  %v241_v12 = vmax.f32 %v177_v10, 0.0  ;;  %v190_v13 = vadd.f32 %v1211_v3, %v122_v11  ;;  %v42_v17 = vld [vmem:[%s2282_s0 + $0xb8] sm:$0xff]  ;;  %v163_v29 = vadd.f32 %v1211_v3, %v95_v19  ;;  %v125_v56 = vmul.f32 %v1206_v2, %v57_v52 }
  0x13   :  { %v110_v18 = vmul.f32 %v1206_v2, %v42_v17  ;;  %v226_v22 = vmax.f32 %v162_v14, 0.0  ;;  %v192_v43 = vadd.f32 %v1211_v3, %v124_v40  ;;  %v204_v44 = vadd.f32 %v1211_v3, %v136_v41  ;;  %v70_v7 = vld [vmem:[%s2282_s0 + $0x198] sm:$0xff] }
  0x14   :  { %1115 = vmatmul.msk.f32.gmra.mxu1 %vm284_vm1, %v236_v20  ;;  %v254_v16 = vmax.f32 %v190_v13, 0.0  ;;  %v55_v20 = vld [vmem:[%s2282_s0 + $0x120] sm:$0xff]  ;;  %v227_v35 = vmax.f32 %v163_v29, 0.0  ;;  %v193_v59 = vadd.f32 %v1211_v3, %v125_v56  ;;  %v126_v10 = vmul.f32 %v1206_v2, %v58_v6  ;;  %v46_v19 = vld [vmem:[%s2282_s0 + $0xd8] sm:$0xff] }
  0x15   :  { %v178_v23 = vadd.f32 %v1211_v3, %v110_v18  ;;  %v123_v24 = vmul.f32 %v1206_v2, %v55_v20  ;;  %v256_v47 = vmax.f32 %v192_v43, 0.0  ;;  %v268_v48 = vmax.f32 %v204_v44, 0.0 }
  0x16   :  { %v138_v11 = vmul.f32 %v1206_v2, %v70_v7  ;;  %v194_v13 = vadd.f32 %v1211_v3, %v126_v10  ;;  %v114_v20 = vmul.f32 %v1206_v2, %v46_v19 }
  0x17   :  { %v242_v26 = vmax.f32 %v178_v23, 0.0  ;;  %v191_v27 = vadd.f32 %v1211_v3, %v123_v24  ;;  %v71_v23 = vld [vmem:[%s2282_s0 + $0x1a0] sm:$0xff] }
  0x18   :  { %1131 = vmatmul.msk.f32.gmra.mxu2 %vm284_vm1, %v252_v53  ;;  %v69_v53 = vld [vmem:[%s2282_s0 + $0x190] sm:$0xff]  ;;  %v206_v14 = vadd.f32 %v1211_v3, %v138_v11  ;;  %v258_v17 = vmax.f32 %v194_v13, 0.0 }
  0x19   :  { %v255_v30 = vmax.f32 %v191_v27, 0.0  ;;  %v137_v57 = vmul.f32 %v1206_v2, %v69_v53  ;;  %v139_v27 = vmul.f32 %v1206_v2, %v71_v23  ;;  %v75_v23 = vld [vmem:[%s2282_s0 + $0x1c0] sm:$0xff] }
  0x1a   :  { %1100 = vmatmul.msk.f32.gmra.mxu0 %vm284_vm1, %v221_v25  ;;  %v135_v25 = vmul.f32 %v1206_v2, %v67_v21  ;;  %v270_v18 = vmax.f32 %v206_v14, 0.0 }
  0x1b   :  { %v205_v60 = vadd.f32 %v1211_v3, %v137_v57 }
  0x1c   :  { %1116 = vmatmul.msk.f32.gmra.mxu1 %vm284_vm1, %v237_v28  ;;  %v203_v28 = vadd.f32 %v1211_v3, %v135_v25  ;;  %v182_v25 = vadd.f32 %v1211_v3, %v114_v20  ;;  %v50_v20 = vld [vmem:[%s2282_s0 + $0xf8] sm:$0xff] }
  0x1d   :  { %v269_v63 = vmax.f32 %v205_v60, 0.0 }
  0x1e   :  { %v267_v31 = vmax.f32 %v203_v28, 0.0  ;;  %v246_v28 = vmax.f32 %v182_v25, 0.0 }
  0x20   :  { %1132 = vmatmul.msk.f32.gmra.mxu2 %vm284_vm1, %v253_v1  ;;  %1146 = vmatmul.msk.f32.vlgmr.msra.gmra.mxu3 %vm284_vm1, %v267_v31  ;;  %v45_v1 = vld [vmem:[%s2282_s0 + $0xd0] sm:$0xff] }
  0x21   :  { %v113_v4 = vmul.f32 %v1206_v2, %v45_v1 }
  0x22   :  { %1101 = vmatmul.msk.f32.gmra.mxu0 %vm284_vm1, %v222_v34  ;;  %v111_v34 = vmul.f32 %v1206_v2, %v43_v33 }
  0x23   :  { %v181_v9 = vadd.f32 %v1211_v3, %v113_v4  ;;  %v34_v4 = vld [vmem:[%s2282_s0 + $0x78] sm:$0xff] }
  0x24   :  { %1117 = vmatmul.msk.f32.gmra.mxu1 %vm284_vm1, %v238_v38  ;;  %v96_v38 = vmul.f32 %v1206_v2, %v28_v32  ;;  %v179_v39 = vadd.f32 %v1211_v3, %v111_v34  ;;  %v32_v34 = vld [vmem:[%s2282_s0 + $0x68] sm:$0xff]  ;;  %v102_v10 = vmul.f32 %v1206_v2, %v34_v4 }
  0x25   :  { %v100_v40 = vmul.f32 %v1206_v2, %v32_v34  ;;  %v76_v34 = vld [vmem:[%s2282_s0 + $0x1c8] sm:$0xff] }
  0x26   :  { %v243_v42 = vmax.f32 %v179_v39, 0.0  ;;  %v164_v45 = vadd.f32 %v1211_v3, %v96_v38  ;;  %v60_v38 = vld [vmem:[%s2282_s0 + $0x148] sm:$0xff] }
  0x27   :  { %v72_v39 = vld [vmem:[%s2282_s0 + $0x1a8] sm:$0xff] }
  0x28   :  { %1133 = vmatmul.msk.f32.gmra.mxu2 %vm284_vm1, %v254_v16  ;;  %1147 = vmatmul.msk.f32.gmra.mxu3 %vm284_vm1, %v268_v48  ;;  %v228_v54 = vmax.f32 %v164_v45, 0.0  ;;  %v31_v16 = vld [vmem:[%s2282_s0 + $0x60] sm:$0xff]  ;;  %v140_v43 = vmul.f32 %v1206_v2, %v72_v39  ;;  %v33_v48 = vld [vmem:[%s2282_s0 + $0x70] sm:$0xff] }
  0x29   :  { %v99_v21 = vmul.f32 %v1206_v2, %v31_v16  ;;  %v101_v53 = vmul.f32 %v1206_v2, %v33_v48 }
  0x2a   :  { %1102 = vmatmul.msk.f32.gmra.mxu0 %vm284_vm1, %v223_v46  ;;  %v29_v46 = vld [vmem:[%s2282_s0 + $0x50] sm:$0xff] }
  0x2b   :  { %v97_v51 = vmul.f32 %v1206_v2, %v29_v46  ;;  %v167_v31 = vadd.f32 %v1211_v3, %v99_v21  ;;  %v208_v46 = vadd.f32 %v1211_v3, %v140_v43  ;;  %v118_v21 = vmul.f32 %v1206_v2, %v50_v20  ;;  %v65_v43 = vld [vmem:[%s2282_s0 + $0x170] sm:$0xff] }
  0x2c   :  { %1118 = vmatmul.msk.f32.gmra.mxu1 %vm284_vm1, %v239_v50  ;;  %v112_v50 = vmul.f32 %v1206_v2, %v44_v49 }
  0x2d   :  { %v165_v61 = vadd.f32 %v1211_v3, %v97_v51  ;;  %v231_v37 = vmax.f32 %v167_v31, 0.0  ;;  %v48_v51 = vld [vmem:[%s2282_s0 + $0xe8] sm:$0xff]  ;;  %v186_v25 = vadd.f32 %v1211_v3, %v118_v21 }
  0x2e   :  { %v180_v55 = vadd.f32 %v1211_v3, %v112_v50  ;;  %v272_v50 = vmax.f32 %v208_v46, 0.0  ;;  %v116_v52 = vmul.f32 %v1206_v2, %v48_v51  ;;  %v133_v46 = vmul.f32 %v1206_v2, %v65_v43 }
  0x2f   :  { %v229_v5 = vmax.f32 %v165_v61, 0.0 }
  0x30   :  { %1134 = vmatmul.msk.f32.gmra.mxu2 %vm284_vm1, %v255_v30  ;;  %1148 = vmatmul.msk.f32.gmra.mxu3 %vm284_vm1, %v269_v63  ;;  %v207_v30 = vadd.f32 %v1211_v3, %v139_v27  ;;  %v184_v57 = vadd.f32 %v1211_v3, %v116_v52  ;;  %v169_v63 = vadd.f32 %v1211_v3, %v101_v53 }
  0x31   :  { %v143_v27 = vmul.f32 %v1206_v2, %v75_v23  ;;  %v201_v53 = vadd.f32 %v1211_v3, %v133_v46 }
  0x32   :  { %1103 = vmatmul.msk.f32.gmra.mxu0 %vm284_vm1, %v224_v58  ;;  %v244_v58 = vmax.f32 %v180_v55, 0.0  ;;  %v271_v33 = vmax.f32 %v207_v30, 0.0  ;;  %v73_v55 = vld [vmem:[%s2282_s0 + $0x1b0] sm:$0xff]  ;;  %v248_v60 = vmax.f32 %v184_v57, 0.0  ;;  %v233_v7 = vmax.f32 %v169_v63, 0.0 }
  0x33   :  { %v211_v30 = vadd.f32 %v1211_v3, %v143_v27 }
  0x34   :  { %1119 = vmatmul.msk.f32.gmra.mxu1 %vm284_vm1, %v240_v62  ;;  %v257_v62 = vmax.f32 %v193_v59, 0.0  ;;  %v141_v59 = vmul.f32 %v1206_v2, %v73_v55 }
  0x38   :  { %1135 = vmatmul.msk.f32.gmra.mxu2 %vm284_vm1, %v256_v47  ;;  %1149 = vmatmul.msk.f32.gmra.mxu3 %vm284_vm1, %v270_v18  ;;  %v168_v47 = vadd.f32 %v1211_v3, %v100_v40 }
  0x3a   :  { %1104 = vmatmul.msk.f32.gmra.mxu0 %vm284_vm1, %v225_v8  ;;  %v98_v8 = vmul.f32 %v1206_v2, %v30_v0  ;;  %v232_v56 = vmax.f32 %v168_v47, 0.0 }
  0x3c   :  { %1120 = vmatmul.msk.f32.gmra.mxu1 %vm284_vm1, %v241_v12  ;;  %v245_v12 = vmax.f32 %v181_v9, 0.0  ;;  %v166_v15 = vadd.f32 %v1211_v3, %v98_v8  ;;  %v62_v8 = vld [vmem:[%s2282_s0 + $0x158] sm:$0xff] }
  0x3d   :  { %v74_v9 = vld [vmem:[%s2282_s0 + $0x1b8] sm:$0xff] }
  0x3e   :  { %v230_v24 = vmax.f32 %v166_v15, 0.0  ;;  %v142_v13 = vmul.f32 %v1206_v2, %v74_v9 }
  0x40   :  { %1136 = vmatmul.msk.f32.gmra.mxu2 %vm284_vm1, %v257_v62  ;;  %1150 = vmatmul.msk.f32.gmra.mxu3 %vm284_vm1, %v271_v33  ;;  %v209_v62 = vadd.f32 %v1211_v3, %v141_v59  ;;  %v210_v16 = vadd.f32 %v1211_v3, %v142_v13  ;;  %v64_v33 = vld [vmem:[%s2282_s0 + $0x168] sm:$0xff] }
  0x42   :  { %1105 = vmatmul.msk.f32.gmra.mxu0 %vm284_vm1, %v226_v22  ;;  %v59_v22 = vld [vmem:[%s2282_s0 + $0x140] sm:$0xff]  ;;  %v273_v1 = vmax.f32 %v209_v62, 0.0  ;;  %v274_v19 = vmax.f32 %v210_v16, 0.0  ;;  %v78_v62 = vld [vmem:[%s2282_s0 + $0x1d8] sm:$0xff] }
  0x44   :  { %1121 = vmatmul.msk.f32.gmra.mxu1 %vm284_vm1, %v242_v26  ;;  %v127_v26 = vmul.f32 %v1206_v2, %v59_v22  ;;  %v63_v22 = vld [vmem:[%s2282_s0 + $0x160] sm:$0xff] }
  0x46   :  { %v195_v29 = vadd.f32 %v1211_v3, %v127_v26  ;;  %v131_v26 = vmul.f32 %v1206_v2, %v63_v22 }
  0x48   :  { %1137 = vmatmul.msk.f32.gmra.mxu2 %vm284_vm1, %v258_v17  ;;  %v259_v32 = vmax.f32 %v195_v29, 0.0  ;;  %1151 = vmatmul.msk.f32.gmra.mxu3 %vm284_vm1, %v272_v50  ;;  %v170_v17 = vadd.f32 %v1211_v3, %v102_v10  ;;  %v199_v29 = vadd.f32 %v1211_v3, %v131_v26 }
  0x4a   :  { %1106 = vmatmul.msk.f32.gmra.mxu0 %vm284_vm1, %v227_v35  ;;  %v47_v35 = vld [vmem:[%s2282_s0 + $0xe0] sm:$0xff]  ;;  %v263_v31 = vmax.f32 %v199_v29, 0.0 }
  0x4b   :  { %v115_v36 = vmul.f32 %v1206_v2, %v47_v35  ;;  %v132_v35 = vmul.f32 %v1206_v2, %v64_v33 }
  0x4c   :  { %1122 = vmatmul.msk.f32.gmra.mxu1 %vm284_vm1, %v243_v42  ;;  %v128_v42 = vmul.f32 %v1206_v2, %v60_v38 }
  0x4d   :  { %v183_v41 = vadd.f32 %v1211_v3, %v115_v36  ;;  %v144_v36 = vmul.f32 %v1206_v2, %v76_v34  ;;  %v200_v39 = vadd.f32 %v1211_v3, %v132_v35 }
  0x4e   :  { %v196_v45 = vadd.f32 %v1211_v3, %v128_v42 }
  0x4f   :  { %v247_v44 = vmax.f32 %v183_v41, 0.0  ;;  %v212_v40 = vadd.f32 %v1211_v3, %v144_v36  ;;  %v264_v41 = vmax.f32 %v200_v39, 0.0 }
  0x50   :  { %1138 = vmatmul.msk.f32.gmra.mxu2 %vm284_vm1, %v259_v32  ;;  %v260_v49 = vmax.f32 %v196_v45, 0.0  ;;  %1152 = vmatmul.msk.f32.gmra.mxu3 %vm284_vm1, %v273_v1  ;;  %v275_v32 = vmax.f32 %v211_v30, 0.0 }
  0x51   :  { %v276_v42 = vmax.f32 %v212_v40, 0.0 }
  0x52   :  { %1107 = vmatmul.msk.f32.gmra.mxu0 %vm284_vm1, %v228_v54  ;;  %v61_v54 = vld [vmem:[%s2282_s0 + $0x150] sm:$0xff] }
  0x54   :  { %1123 = vmatmul.msk.f32.gmra.mxu1 %vm284_vm1, %v244_v58  ;;  %v129_v58 = vmul.f32 %v1206_v2, %v61_v54 }
  0x56   :  { %v197_v61 = vadd.f32 %v1211_v3, %v129_v58  ;;  %v265_v58 = vmax.f32 %v201_v53, 0.0 }
  0x58   :  { %1139 = vmatmul.msk.f32.gmra.mxu2 %vm284_vm1, %v260_v49  ;;  %v261_v0 = vmax.f32 %v197_v61, 0.0  ;;  %1153 = vmatmul.msk.f32.gmra.mxu3 %vm284_vm1, %v274_v19  ;;  %v66_v61 = vld [vmem:[%s2282_s0 + $0x178] sm:$0xff] }
  0x59   :  { %v134_v63 = vmul.f32 %v1206_v2, %v66_v61 }
  0x5a   :  { %1108 = vmatmul.msk.f32.gmra.mxu0 %vm284_vm1, %v229_v5  ;;  %v49_v5 = vld [vmem:[%s2282_s0 + $0xf0] sm:$0xff] }
  0x5b   :  { %v117_v6 = vmul.f32 %v1206_v2, %v49_v5 }
  0x5c   :  { %1124 = vmatmul.msk.f32.gmra.mxu1 %vm284_vm1, %v245_v12  ;;  %v130_v12 = vmul.f32 %v1206_v2, %v62_v8 }
  0x5d   :  { %v185_v11 = vadd.f32 %v1211_v3, %v117_v6 }
  0x5e   :  { %v198_v15 = vadd.f32 %v1211_v3, %v130_v12 }
  0x5f   :  { %v249_v14 = vmax.f32 %v185_v11, 0.0 }
  0x60   :  { %1140 = vmatmul.msk.f32.gmra.mxu2 %vm284_vm1, %v261_v0  ;;  %v262_v18 = vmax.f32 %v198_v15, 0.0  ;;  %1154 = vmatmul.msk.f32.gmra.mxu3 %vm284_vm1, %v275_v32  ;;  %v146_v0 = vmul.f32 %v1206_v2, %v78_v62 }
  0x62   :  { %1109 = vmatmul.msk.f32.gmra.mxu0 %vm284_vm1, %v230_v24  ;;  %v234_v24 = vmax.f32 %v170_v17, 0.0  ;;  %v214_v8 = vadd.f32 %v1211_v3, %v146_v0 }
  0x64   :  { %1125 = vmatmul.msk.f32.gmra.mxu1 %vm284_vm1, %v246_v28  ;;  %v250_v28 = vmax.f32 %v186_v25, 0.0  ;;  %v278_v12 = vmax.f32 %v214_v8, 0.0  ;;  %v80_v25 = vld [vmem:[%s2282_s0 + $0x1e8] sm:$0xff] }
  0x65   :  { %v148_v26 = vmul.f32 %v1206_v2, %v80_v25 }
  0x67   :  { %v216_v33 = vadd.f32 %v1211_v3, %v148_v26 }
  0x68   :  { %1141 = vmatmul.msk.f32.gmra.mxu2 %vm284_vm1, %v262_v18  ;;  %1155 = vmatmul.msk.f32.gmra.mxu3 %vm284_vm1, %v276_v42 }
  0x69   :  { %v280_v36 = vmax.f32 %v216_v33, 0.0 }
  0x6a   :  { %1110 = vmatmul.msk.f32.gmra.mxu0 %vm284_vm1, %v231_v37 }
  0x6c   :  { %1126 = vmatmul.msk.f32.gmra.mxu1 %vm284_vm1, %v247_v44  ;;  %v77_v44 = vld [vmem:[%s2282_s0 + $0x1d0] sm:$0xff] }
  0x6d   :  { %v145_v47 = vmul.f32 %v1206_v2, %v77_v44 }
  0x6f   :  { %v213_v54 = vadd.f32 %v1211_v3, %v145_v47 }
  0x70   :  { %1142 = vmatmul.msk.f32.gmra.mxu2 %vm284_vm1, %v263_v31 }
  0x71   :  { %v277_v59 = vmax.f32 %v213_v54, 0.0 }
  0x72   :  { %1111 = vmatmul.msk.f32.gmra.mxu0 %vm284_vm1, %v232_v56 }
  0x73   :  { %1156 = vmatmul.msk.f32.gmra.mxu3 %vm284_vm1, %v277_v59 }
  0x74   :  { %1127 = vmatmul.msk.f32.gmra.mxu1 %vm284_vm1, %v248_v60 }
  0x78   :  { %1143 = vmatmul.msk.f32.gmra.mxu2 %vm284_vm1, %v264_v41 }
  0x7a   :  { %1112 = vmatmul.msk.f32.gmra.mxu0 %vm284_vm1, %v233_v7  ;;  %v202_v7 = vadd.f32 %v1211_v3, %v134_v63 }
  0x7b   :  { %1157 = vmatmul.msk.f32.gmra.mxu3 %vm284_vm1, %v278_v12 }
  0x7c   :  { %1128 = vmatmul.msk.f32.gmra.mxu1 %vm284_vm1, %v249_v14  ;;  %v266_v11 = vmax.f32 %v202_v7, 0.0  ;;  %v79_v14 = vld [vmem:[%s2282_s0 + $0x1e0] sm:$0xff] }
  0x7d   :  { %v147_v15 = vmul.f32 %v1206_v2, %v79_v14 }
  0x7f   :  { %v215_v20 = vadd.f32 %v1211_v3, %v147_v15 }
  0x80   :  { %1144 = vmatmul.msk.f32.gmra.mxu2 %vm284_vm1, %v265_v58 }
  0x81   :  { %v279_v23 = vmax.f32 %v215_v20, 0.0 }
  0x82   :  { %1113 = vmatmul.msk.f32.gmra.mxu0 %vm284_vm1, %v234_v24 }
  0x83   :  { %1158 = vmatmul.msk.f32.gmra.mxu3 %vm284_vm1, %v279_v23 }
  0x84   :  { %1129 = vmatmul.msk.f32.gmra.mxu1 %vm284_vm1, %v250_v28 }
  0x87   :  { %v498_v37 = vpop.f32.mrf.mxu0 }
  0x88   :  { %691 = vst.msk [vmem:[%s2285_s4] sm:$0xff] %vm690_vm2, %v498_v37  ;;  %v888_v45 = vmul.f32 %v498_v37, %v498_v37  ;;  %v755_v48 = vsel %vm690_vm2, %v498_v37, 0.0  ;;  %1145 = vmatmul.msk.f32.gmra.mxu2 %vm284_vm1, %v266_v11  ;;  %v81_v37 = vld [vmem:[%s2282_s0 + $0x1f0] sm:$0xff] }
  0x89   :  { %v1546_v38 = vpop.f32.mrf.mxu1  ;;  %v149_v39 = vmul.f32 %v1206_v2, %v81_v37 }
  0x8a   :  { %707 = vst.msk [vmem:[%s2285_s4 + $0x80] sm:$0xff] %vm690_vm2, %v1546_v38  ;;  %v952_v56 = vsel %vm690_vm2, %v888_v45, 0.0  ;;  %v82_v45 = vld [vmem:[%s2282_s0 + $0x1f8] sm:$0xff] }
  0x8b   :  { %1159 = vmatmul.msk.f32.gmra.mxu3 %vm284_vm1, %v280_v36  ;;  %v217_v43 = vadd.f32 %v1211_v3, %v149_v39  ;;  %v150_v46 = vmul.f32 %v1206_v2, %v82_v45 }
  0x8d   :  { %v281_v44 = vmax.f32 %v217_v43, 0.0 }
  0x8f   :  { %v501_v49 = vpop.f32.mrf.mxu0 }
  0x90   :  { %692 = vst.msk [vmem:[%s2285_s4 + $0x8] sm:$0xff] %vm690_vm2, %v501_v49  ;;  %v756_v50 = vsel %vm690_vm2, %v501_v49, 0.0  ;;  %v889_v51 = vmul.f32 %v501_v49, %v501_v49 }
  0x91   :  { %v1571_v52 = vpop.f32.mrf.mxu1  ;;  %v757_v55 = vadd.f32 %v756_v50, %v755_v48  ;;  %v218_v50 = vadd.f32 %v1211_v3, %v150_v46 }
  0x92   :  { %708 = vst.msk [vmem:[%s2285_s4 + $0x88] sm:$0xff] %vm690_vm2, %v1571_v52  ;;  %v953_v57 = vsel %vm690_vm2, %v889_v51, 0.0 }
  0x93   :  { %v954_v60 = vadd.f32 %v953_v57, %v952_v56  ;;  %v1632_v28 = vpop.f32.mrf.mxu2  ;;  %1160 = vmatmul.msk.f32.gmra.mxu3 %vm284_vm1, %v281_v44  ;;  %v282_v2 = vmax.f32 %v218_v50, 0.0 }
  0x94   :  { %723 = vst.msk [vmem:[%s2285_s4 + $0x100] sm:$0xff] %vm690_vm2, %v1632_v28 }
  0x97   :  { %v504_v1 = vpop.f32.mrf.mxu0 }
  0x98   :  { %693 = vst.msk [vmem:[%s2285_s4 + $0x10] sm:$0xff] %vm690_vm2, %v504_v1  ;;  %v758_v4 = vsel %vm690_vm2, %v504_v1, 0.0  ;;  %v890_v5 = vmul.f32 %v504_v1, %v504_v1 }
  0x99   :  { %v1597_v6 = vpop.f32.mrf.mxu1  ;;  %v759_v9 = vadd.f32 %v758_v4, %v757_v55 }
  0x9a   :  { %709 = vst.msk [vmem:[%s2285_s4 + $0x90] sm:$0xff] %vm690_vm2, %v1597_v6  ;;  %v955_v10 = vsel %vm690_vm2, %v890_v5, 0.0 }
  0x9b   :  { %v956_v13 = vadd.f32 %v955_v10, %v954_v60  ;;  %v1664_v41 = vpop.f32.mrf.mxu2  ;;  %1161 = vmatmul.msk.f32.gmra.mxu3 %vm284_vm1, %v282_v2 }
  0x9c   :  { %724 = vst.msk [vmem:[%s2285_s4 + $0x108] sm:$0xff] %vm690_vm2, %v1664_v41 }
  0x9f   :  { %v507_v16 = vpop.f32.mrf.mxu0 }
  0xa0   :  { %694 = vst.msk [vmem:[%s2285_s4 + $0x18] sm:$0xff] %vm690_vm2, %v507_v16  ;;  %v760_v17 = vsel %vm690_vm2, %v507_v16, 0.0  ;;  %v891_v18 = vmul.f32 %v507_v16, %v507_v16 }
  0xa1   :  { %v1618_v19 = vpop.f32.mrf.mxu1  ;;  %v761_v21 = vadd.f32 %v760_v17, %v759_v9 }
  0xa2   :  { %710 = vst.msk [vmem:[%s2285_s4 + $0x98] sm:$0xff] %vm690_vm2, %v1618_v19  ;;  %v957_v22 = vsel %vm690_vm2, %v891_v18, 0.0 }
  0xa3   :  { %v958_v24 = vadd.f32 %v957_v22, %v956_v13  ;;  %v1689_v48 = vpop.f32.mrf.mxu2  ;;  %v1735_v57 = vpop.f32.mrf.mxu3 }
  0xa4   :  { %725 = vst.msk [vmem:[%s2285_s4 + $0x110] sm:$0xff] %vm690_vm2, %v1689_v48 }
  0xa5   :  { %739 = vst.msk [vmem:[%s2285_s4 + $0x180] sm:$0xff] %vm690_vm2, %v1735_v57 }
  0xa7   :  { %v510_v27 = vpop.f32.mrf.mxu0 }
  0xa8   :  { %695 = vst.msk [vmem:[%s2285_s4 + $0x20] sm:$0xff] %vm690_vm2, %v510_v27  ;;  %v762_v29 = vsel %vm690_vm2, %v510_v27, 0.0  ;;  %v892_v30 = vmul.f32 %v510_v27, %v510_v27 }
  0xa9   :  { %v1639_v31 = vpop.f32.mrf.mxu1  ;;  %v1641_v32 = vadd.f32 %v762_v29, %v761_v21 }
  0xaa   :  { %711 = vst.msk [vmem:[%s2285_s4 + $0xa0] sm:$0xff] %vm690_vm2, %v1639_v31  ;;  %v959_v34 = vsel %vm690_vm2, %v892_v30, 0.0 }
  0xab   :  { %v1655_v35 = vadd.f32 %v959_v34, %v958_v24  ;;  %v1709_v53 = vpop.f32.mrf.mxu2  ;;  %v1760_v61 = vpop.f32.mrf.mxu3 }
  0xac   :  { %726 = vst.msk [vmem:[%s2285_s4 + $0x118] sm:$0xff] %vm690_vm2, %v1709_v53 }
  0xad   :  { %740 = vst.msk [vmem:[%s2285_s4 + $0x188] sm:$0xff] %vm690_vm2, %v1760_v61 }
  0xaf   :  { %v1662_v40 = vpop.f32.mrf.mxu0 }
  0xb0   :  { %696 = vst.msk [vmem:[%s2285_s4 + $0x28] sm:$0xff] %vm690_vm2, %v1662_v40  ;;  %v893_v11 = vmul.f32 %v1662_v40, %v1662_v40  ;;  %v764_v14 = vsel %vm690_vm2, %v1662_v40, 0.0 }
  0xb1   :  { %v1671_v42 = vpop.f32.mrf.mxu1  ;;  %v765_v20 = vadd.f32 %v764_v14, %v1641_v32 }
  0xb2   :  { %712 = vst.msk [vmem:[%s2285_s4 + $0xa8] sm:$0xff] %vm690_vm2, %v1671_v42  ;;  %v961_v16 = vsel %vm690_vm2, %v893_v11, 0.0 }
  0xb3   :  { %v1727_v55 = vpop.f32.mrf.mxu2  ;;  %v1785_v1 = vpop.f32.mrf.mxu3  ;;  %v962_v24 = vadd.f32 %v961_v16, %v1655_v35 }
  0xb4   :  { %727 = vst.msk [vmem:[%s2285_s4 + $0x120] sm:$0xff] %vm690_vm2, %v1727_v55 }
  0xb5   :  { %741 = vst.msk [vmem:[%s2285_s4 + $0x190] sm:$0xff] %vm690_vm2, %v1785_v1 }
  0xb7   :  { %v516_v47 = vpop.f32.mrf.mxu0 }
  0xb8   :  { %697 = vst.msk [vmem:[%s2285_s4 + $0x30] sm:$0xff] %vm690_vm2, %v516_v47  ;;  %v894_v15 = vmul.f32 %v516_v47, %v516_v47  ;;  %v766_v17 = vsel %vm690_vm2, %v516_v47, 0.0 }
  0xb9   :  { %v1695_v49 = vpop.f32.mrf.mxu1  ;;  %v767_v25 = vadd.f32 %v766_v17, %v765_v20 }
  0xba   :  { %713 = vst.msk [vmem:[%s2285_s4 + $0xb0] sm:$0xff] %vm690_vm2, %v1695_v49  ;;  %v963_v21 = vsel %vm690_vm2, %v894_v15, 0.0 }
  0xbb   :  { %v1752_v59 = vpop.f32.mrf.mxu2  ;;  %v1810_v8 = vpop.f32.mrf.mxu3  ;;  %v964_v36 = vadd.f32 %v963_v21, %v962_v24 }
  0xbc   :  { %728 = vst.msk [vmem:[%s2285_s4 + $0x128] sm:$0xff] %vm690_vm2, %v1752_v59 }
  0xbd   :  { %742 = vst.msk [vmem:[%s2285_s4 + $0x198] sm:$0xff] %vm690_vm2, %v1810_v8 }
  0xbf   :  { %v519_v51 = vpop.f32.mrf.mxu0 }
  0xc0   :  { %698 = vst.msk [vmem:[%s2285_s4 + $0x38] sm:$0xff] %vm690_vm2, %v519_v51  ;;  %v895_v18 = vmul.f32 %v519_v51, %v519_v51  ;;  %v768_v22 = vsel %vm690_vm2, %v519_v51, 0.0 }
  0xc1   :  { %v1715_v54 = vpop.f32.mrf.mxu1  ;;  %v769_v35 = vadd.f32 %v768_v22, %v767_v25 }
  0xc2   :  { %714 = vst.msk [vmem:[%s2285_s4 + $0xb8] sm:$0xff] %vm690_vm2, %v1715_v54  ;;  %v965_v29 = vsel %vm690_vm2, %v895_v18, 0.0 }
  0xc3   :  { %v1777_v63 = vpop.f32.mrf.mxu2  ;;  %v1837_v13 = vpop.f32.mrf.mxu3  ;;  %v966_v43 = vadd.f32 %v965_v29, %v964_v36 }
  0xc4   :  { %729 = vst.msk [vmem:[%s2285_s4 + $0x130] sm:$0xff] %vm690_vm2, %v1777_v63 }
  0xc5   :  { %743 = vst.msk [vmem:[%s2285_s4 + $0x1a0] sm:$0xff] %vm690_vm2, %v1837_v13 }
  0xc7   :  { %v522_v3 = vpop.f32.mrf.mxu0 }
  0xc8   :  { %699 = vst.msk [vmem:[%s2285_s4 + $0x40] sm:$0xff] %vm690_vm2, %v522_v3  ;;  %v896_v23 = vmul.f32 %v522_v3, %v522_v3  ;;  %v770_v30 = vsel %vm690_vm2, %v522_v3, 0.0 }
  0xc9   :  { %v1733_v56 = vpop.f32.mrf.mxu1  ;;  %v771_v44 = vadd.f32 %v770_v30, %v769_v35 }
  0xca   :  { %715 = vst.msk [vmem:[%s2285_s4 + $0xc0] sm:$0xff] %vm690_vm2, %v1733_v56  ;;  %v967_v37 = vsel %vm690_vm2, %v896_v23, 0.0 }
  0xcb   :  { %v1802_v5 = vpop.f32.mrf.mxu2  ;;  %v1872_v34 = vpop.f32.mrf.mxu3  ;;  %v968_v50 = vadd.f32 %v967_v37, %v966_v43 }
  0xcc   :  { %730 = vst.msk [vmem:[%s2285_s4 + $0x138] sm:$0xff] %vm690_vm2, %v1802_v5 }
  0xcd   :  { %744 = vst.msk [vmem:[%s2285_s4 + $0x1a8] sm:$0xff] %vm690_vm2, %v1872_v34 }
  0xcf   :  { %v525_v58 = vpop.f32.mrf.mxu0 }
  0xd0   :  { %700 = vst.msk [vmem:[%s2285_s4 + $0x48] sm:$0xff] %vm690_vm2, %v525_v58  ;;  %v897_v33 = vmul.f32 %v525_v58, %v525_v58  ;;  %v772_v39 = vsel %vm690_vm2, %v525_v58, 0.0 }
  0xd1   :  { %v1758_v60 = vpop.f32.mrf.mxu1  ;;  %v773_v2 = vadd.f32 %v772_v39, %v771_v44  ;;  %v904_v44 = vmul.f32 %v1546_v38, %v1546_v38 }
  0xd2   :  { %716 = vst.msk [vmem:[%s2285_s4 + $0xc8] sm:$0xff] %vm690_vm2, %v1758_v60  ;;  %v969_v45 = vsel %vm690_vm2, %v897_v33, 0.0 }
  0xd3   :  { %v1827_v10 = vpop.f32.mrf.mxu2  ;;  %v970_v11 = vadd.f32 %v969_v45, %v968_v50  ;;  %v1905_v21 = vpop.f32.mrf.mxu3 }
  0xd4   :  { %731 = vst.msk [vmem:[%s2285_s4 + $0x140] sm:$0xff] %vm690_vm2, %v1827_v10 }
  0xd5   :  { %745 = vst.msk [vmem:[%s2285_s4 + $0x1b0] sm:$0xff] %vm690_vm2, %v1905_v21 }
  0xd7   :  { %v528_v62 = vpop.f32.mrf.mxu0 }
  0xd8   :  { %701 = vst.msk [vmem:[%s2285_s4 + $0x50] sm:$0xff] %vm690_vm2, %v528_v62  ;;  %v898_v40 = vmul.f32 %v528_v62, %v528_v62  ;;  %v774_v46 = vsel %vm690_vm2, %v528_v62, 0.0 }
  0xd9   :  { %v1783_v0 = vpop.f32.mrf.mxu1  ;;  %v775_v14 = vadd.f32 %v774_v46, %v773_v2 }
  0xda   :  { %717 = vst.msk [vmem:[%s2285_s4 + $0xd0] sm:$0xff] %vm690_vm2, %v1783_v0  ;;  %v971_v51 = vsel %vm690_vm2, %v898_v40, 0.0 }
  0xdb   :  { %v1862_v27 = vpop.f32.mrf.mxu2  ;;  %v1938_v50 = vpop.f32.mrf.mxu3 }
  0xdc   :  { %732 = vst.msk [vmem:[%s2285_s4 + $0x148] sm:$0xff] %vm690_vm2, %v1862_v27 }
  0xdd   :  { %746 = vst.msk [vmem:[%s2285_s4 + $0x1b8] sm:$0xff] %vm690_vm2, %v1938_v50 }
  0xdf   :  { %v531_v4 = vpop.f32.mrf.mxu0 }
  0xe0   :  { %702 = vst.msk [vmem:[%s2285_s4 + $0x58] sm:$0xff] %vm690_vm2, %v531_v4  ;;  %v899_v47 = vmul.f32 %v531_v4, %v531_v4  ;;  %v776_v3 = vsel %vm690_vm2, %v531_v4, 0.0  ;;  %v972_v4 = vadd.f32 %v971_v51, %v970_v11 }
  0xe1   :  { %v1808_v7 = vpop.f32.mrf.mxu1  ;;  %v777_v22 = vadd.f32 %v776_v3, %v775_v14  ;;  %v786_v3 = vsel %vm690_vm2, %v1546_v38, 0.0  ;;  %v983_v38 = vsel %vm690_vm2, %v904_v44, 0.0 }
  0xe2   :  { %718 = vst.msk [vmem:[%s2285_s4 + $0xd8] sm:$0xff] %vm690_vm2, %v1808_v7  ;;  %v973_v17 = vsel %vm690_vm2, %v899_v47, 0.0 }
  0xe3   :  { %v1895_v16 = vpop.f32.mrf.mxu2  ;;  %v974_v25 = vadd.f32 %v973_v17, %v972_v4  ;;  %v788_v17 = vsel %vm690_vm2, %v1571_v52, 0.0 }
  0xe4   :  { %733 = vst.msk [vmem:[%s2285_s4 + $0x150] sm:$0xff] %vm690_vm2, %v1895_v16 }
  0xe7   :  { %v534_v9 = vpop.f32.mrf.mxu0 }
  0xe8   :  { %703 = vst.msk [vmem:[%s2285_s4 + $0x60] sm:$0xff] %vm690_vm2, %v534_v9  ;;  %v900_v58 = vmul.f32 %v534_v9, %v534_v9  ;;  %v778_v18 = vsel %vm690_vm2, %v534_v9, 0.0 }
  0xe9   :  { %v1835_v12 = vpop.f32.mrf.mxu1  ;;  %v779_v29 = vadd.f32 %v778_v18, %v777_v22  ;;  %v906_v18 = vmul.f32 %v1597_v6, %v1597_v6 }
  0xea   :  { %719 = vst.msk [vmem:[%s2285_s4 + $0xe0] sm:$0xff] %vm690_vm2, %v1835_v12  ;;  %v975_v9 = vsel %vm690_vm2, %v900_v58, 0.0  ;;  %v905_v58 = vmul.f32 %v1571_v52, %v1571_v52  ;;  %v792_v52 = vsel %vm690_vm2, %v1618_v19, 0.0 }
  0xeb   :  { %v1927_v43 = vpop.f32.mrf.mxu2 }
  0xec   :  { %734 = vst.msk [vmem:[%s2285_s4 + $0x158] sm:$0xff] %vm690_vm2, %v1927_v43  ;;  %v985_v22 = vsel %vm690_vm2, %v905_v58, 0.0  ;;  %v911_v58 = vmul.f32 %v1715_v54, %v1715_v54 }
  0xef   :  { %v537_v26 = vpop.f32.mrf.mxu0 }
  0xf0   :  { %704 = vst.msk [vmem:[%s2285_s4 + $0x68] sm:$0xff] %vm690_vm2, %v537_v26  ;;  %v901_v20 = vmul.f32 %v537_v26, %v537_v26  ;;  %v780_v23 = vsel %vm690_vm2, %v537_v26, 0.0  ;;  %v976_v26 = vadd.f32 %v975_v9, %v974_v25  ;;  %v790_v9 = vsel %vm690_vm2, %v1597_v6, 0.0  ;;  %v1982_v6 = vpop.f32.mrf.mxu3 }
  0xf1   :  { %v1870_v32 = vpop.f32.mrf.mxu1  ;;  %v781_v36 = vadd.f32 %v780_v23, %v779_v29  ;;  %v907_v23 = vmul.f32 %v1618_v19, %v1618_v19  ;;  %747 = vst.msk [vmem:[%s2285_s4 + $0x1c0] sm:$0xff] %vm690_vm2, %v1982_v6 }
  0xf2   :  { %720 = vst.msk [vmem:[%s2285_s4 + $0xe8] sm:$0xff] %vm690_vm2, %v1870_v32  ;;  %v977_v30 = vsel %vm690_vm2, %v901_v20, 0.0 }
  0xf3   :  { %v978_v37 = vadd.f32 %v977_v30, %v976_v26  ;;  %v1970_v29 = vpop.f32.mrf.mxu2  ;;  %v987_v30 = vsel %vm690_vm2, %v906_v18, 0.0  ;;  %v989_v19 = vsel %vm690_vm2, %v907_v23, 0.0 }
  0xf4   :  { %735 = vst.msk [vmem:[%s2285_s4 + $0x160] sm:$0xff] %vm690_vm2, %v1970_v29 }
  0xf7   :  { %v540_v15 = vpop.f32.mrf.mxu0 }
  0xf8   :  { %705 = vst.msk [vmem:[%s2285_s4 + $0x70] sm:$0xff] %vm690_vm2, %v540_v15  ;;  %v902_v24 = vmul.f32 %v540_v15, %v540_v15  ;;  %v782_v33 = vsel %vm690_vm2, %v540_v15, 0.0 }
  0xf9   :  { %v1903_v62 = vpop.f32.mrf.mxu1  ;;  %v783_v39 = vadd.f32 %v782_v33, %v781_v36  ;;  %v908_v33 = vmul.f32 %v1639_v31, %v1639_v31 }
  0xfa   :  { %721 = vst.msk [vmem:[%s2285_s4 + $0xf0] sm:$0xff] %vm690_vm2, %v1903_v62  ;;  %v979_v35 = vsel %vm690_vm2, %v902_v24, 0.0 }
  0xfb   :  { %v980_v2 = vadd.f32 %v979_v35, %v978_v37  ;;  %v794_v35 = vsel %vm690_vm2, %v1639_v31, 0.0  ;;  %v909_v37 = vmul.f32 %v1671_v42, %v1671_v42  ;;  %v991_v44 = vsel %vm690_vm2, %v908_v33, 0.0 }
  0xfc   :  { %v798_v31 = vsel %vm690_vm2, %v1695_v49, 0.0 }
  0xff   :  { %v543_v40 = vpop.f32.mrf.mxu0 }
 0x100   :  { %706 = vst.msk [vmem:[%s2285_s4 + $0x78] sm:$0xff] %vm690_vm2, %v543_v40  ;;  %v784_v45 = vsel %vm690_vm2, %v543_v40, 0.0  ;;  %v903_v46 = vmul.f32 %v543_v40, %v543_v40 }
 0x101   :  { %v1936_v47 = vpop.f32.mrf.mxu1  ;;  %v785_v51 = vadd.f32 %v784_v45, %v783_v39  ;;  %v796_v45 = vsel %vm690_vm2, %v1671_v42, 0.0  ;;  %v800_v42 = vsel %vm690_vm2, %v1715_v54, 0.0  ;;  %v997_v54 = vsel %vm690_vm2, %v911_v58, 0.0 }
 0x102   :  { %722 = vst.msk [vmem:[%s2285_s4 + $0xf8] sm:$0xff] %vm690_vm2, %v1936_v47  ;;  %v981_v11 = vsel %vm690_vm2, %v903_v46, 0.0  ;;  %v910_v46 = vmul.f32 %v1695_v49, %v1695_v49  ;;  %v2016_v49 = vpop.f32.mrf.mxu3  ;;  %v812_v58 = vsel %vm690_vm2, %v1870_v32, 0.0 }
 0x103   :  { %v787_v14 = vadd.f32 %v786_v3, %v785_v51  ;;  %v982_v15 = vadd.f32 %v981_v11, %v980_v2  ;;  %v993_v3 = vsel %vm690_vm2, %v909_v37, 0.0  ;;  %748 = vst.msk [vmem:[%s2285_s4 + $0x1c8] sm:$0xff] %vm690_vm2, %v2016_v49 }
 0x105   :  { %v789_v20 = vadd.f32 %v788_v17, %v787_v14  ;;  %v984_v4 = vadd.f32 %v983_v38, %v982_v15  ;;  %v2004_v15 = vpop.f32.mrf.mxu2  ;;  %v995_v38 = vsel %vm690_vm2, %v910_v46, 0.0  ;;  %v912_v17 = vmul.f32 %v1733_v56, %v1733_v56 }
 0x106   :  { %736 = vst.msk [vmem:[%s2285_s4 + $0x168] sm:$0xff] %vm690_vm2, %v2004_v15  ;;  %v810_v46 = vsel %vm690_vm2, %v1835_v12, 0.0 }
 0x107   :  { %v791_v24 = vadd.f32 %v790_v9, %v789_v20  ;;  %v986_v25 = vadd.f32 %v985_v22, %v984_v4  ;;  %v802_v4 = vsel %vm690_vm2, %v1733_v56, 0.0  ;;  %v913_v22 = vmul.f32 %v1758_v60, %v1758_v60 }
 0x108   :  { %v806_v56 = vsel %vm690_vm2, %v1783_v0, 0.0 }
 0x109   :  { %v793_v26 = vadd.f32 %v792_v52, %v791_v24  ;;  %v988_v36 = vadd.f32 %v987_v30, %v986_v25  ;;  %v999_v24 = vsel %vm690_vm2, %v912_v17, 0.0  ;;  %v804_v25 = vsel %vm690_vm2, %v1758_v60, 0.0 }
 0x10a   :  { %v914_v30 = vmul.f32 %v1783_v0, %v1783_v0  ;;  %v808_v60 = vsel %vm690_vm2, %v1808_v7, 0.0  ;;  %v2050_v0 = vpop.f32.mrf.mxu3  ;;  %v814_v17 = vsel %vm690_vm2, %v1903_v62, 0.0 }
 0x10b   :  { %v795_v39 = vadd.f32 %v794_v35, %v793_v26  ;;  %v990_v40 = vadd.f32 %v989_v19, %v988_v36  ;;  %v1001_v26 = vsel %vm690_vm2, %v913_v22, 0.0  ;;  %v915_v36 = vmul.f32 %v1808_v7, %v1808_v7  ;;  %749 = vst.msk [vmem:[%s2285_s4 + $0x1d0] sm:$0xff] %vm690_vm2, %v2050_v0 }
 0x10d   :  { %v797_v2 = vadd.f32 %v796_v45, %v795_v39  ;;  %v992_v51 = vadd.f32 %v991_v44, %v990_v40  ;;  %v2038_v37 = vpop.f32.mrf.mxu2  ;;  %v1003_v39 = vsel %vm690_vm2, %v914_v30, 0.0  ;;  %v916_v40 = vmul.f32 %v1835_v12, %v1835_v12 }
 0x10e   :  { %737 = vst.msk [vmem:[%s2285_s4 + $0x170] sm:$0xff] %vm690_vm2, %v2038_v37  ;;  %v1005_v7 = vsel %vm690_vm2, %v915_v36, 0.0 }
 0x10f   :  { %v994_v11 = vadd.f32 %v993_v3, %v992_v51  ;;  %v799_v14 = vadd.f32 %v798_v31, %v797_v2  ;;  %v917_v2 = vmul.f32 %v1870_v32, %v1870_v32  ;;  %v1007_v31 = vsel %vm690_vm2, %v916_v40, 0.0 }
 0x110   :  { %v920_v32 = vmul.f32 %v1632_v28, %v1632_v28 }
 0x111   :  { %v801_v18 = vadd.f32 %v800_v42, %v799_v14  ;;  %v996_v20 = vadd.f32 %v995_v38, %v994_v11  ;;  %v918_v11 = vmul.f32 %v1903_v62, %v1903_v62  ;;  %v919_v14 = vmul.f32 %v1936_v47, %v1936_v47 }
 0x112   :  { %v1009_v12 = vsel %vm690_vm2, %v917_v2, 0.0  ;;  %v2085_v62 = vpop.f32.mrf.mxu3 }
 0x113   :  { %v803_v9 = vadd.f32 %v802_v4, %v801_v18  ;;  %v998_v23 = vadd.f32 %v997_v54, %v996_v20  ;;  %v816_v18 = vsel %vm690_vm2, %v1936_v47, 0.0  ;;  %v1011_v22 = vsel %vm690_vm2, %v918_v11, 0.0  ;;  %750 = vst.msk [vmem:[%s2285_s4 + $0x1d8] sm:$0xff] %vm690_vm2, %v2085_v62 }
 0x114   :  { %v828_v11 = vsel %vm690_vm2, %v1752_v59, 0.0 }
 0x115   :  { %v805_v52 = vadd.f32 %v804_v25, %v803_v9  ;;  %v1000_v33 = vadd.f32 %v999_v24, %v998_v23  ;;  %v2074_v4 = vpop.f32.mrf.mxu2  ;;  %v1013_v9 = vsel %vm690_vm2, %v919_v14, 0.0  ;;  %v818_v24 = vsel %vm690_vm2, %v1632_v28, 0.0 }
 0x116   :  { %738 = vst.msk [vmem:[%s2285_s4 + $0x178] sm:$0xff] %vm690_vm2, %v2074_v4  ;;  %v921_v25 = vmul.f32 %v1664_v41, %v1664_v41  ;;  %v822_v28 = vsel %vm690_vm2, %v1689_v48, 0.0  ;;  %v926_v14 = vmul.f32 %v1777_v63, %v1777_v63 }
 0x117   :  { %v807_v19 = vadd.f32 %v806_v56, %v805_v52  ;;  %v1002_v35 = vadd.f32 %v1001_v26, %v1000_v33  ;;  %v1015_v33 = vsel %vm690_vm2, %v920_v32, 0.0  ;;  %v820_v26 = vsel %vm690_vm2, %v1664_v41, 0.0 }
 0x118   :  { %v922_v56 = vmul.f32 %v1689_v48, %v1689_v48  ;;  %v824_v41 = vsel %vm690_vm2, %v1709_v53, 0.0  ;;  %v928_v32 = vmul.f32 %v1827_v10, %v1827_v10 }
 0x119   :  { %v809_v44 = vadd.f32 %v808_v60, %v807_v19  ;;  %v1004_v45 = vadd.f32 %v1003_v39, %v1002_v35  ;;  %v1017_v35 = vsel %vm690_vm2, %v921_v25, 0.0  ;;  %v923_v39 = vmul.f32 %v1709_v53, %v1709_v53 }
 0x11a   :  { %v925_v53 = vmul.f32 %v1752_v59, %v1752_v59  ;;  %v832_v59 = vsel %vm690_vm2, %v1802_v5, 0.0 }
 0x11b   :  { %v1006_v51 = vadd.f32 %v1005_v7, %v1004_v45  ;;  %v811_v3 = vadd.f32 %v810_v46, %v809_v44  ;;  %v1019_v44 = vsel %vm690_vm2, %v922_v56, 0.0  ;;  %v924_v45 = vmul.f32 %v1727_v55, %v1727_v55  ;;  %v2111_v7 = vpop.f32.mrf.mxu3 }
 0x11c   :  { %751 = vst.msk [vmem:[%s2285_s4 + $0x1e0] sm:$0xff] %vm690_vm2, %v2111_v7  ;;  %v1021_v48 = vsel %vm690_vm2, %v923_v39, 0.0 }
 0x11d   :  { %v1008_v38 = vadd.f32 %v1007_v31, %v1006_v51  ;;  %v813_v42 = vadd.f32 %v812_v58, %v811_v3  ;;  %v826_v51 = vsel %vm690_vm2, %v1727_v55, 0.0  ;;  %v1023_v58 = vsel %vm690_vm2, %v924_v45, 0.0 }
 0x11e   :  { %v830_v55 = vsel %vm690_vm2, %v1777_v63, 0.0  ;;  %v842_v45 = vsel %vm690_vm2, %v1970_v29, 0.0 }
 0x11f   :  { %v1010_v20 = vadd.f32 %v1009_v12, %v1008_v38  ;;  %v815_v54 = vadd.f32 %v814_v17, %v813_v42  ;;  %v1025_v12 = vsel %vm690_vm2, %v925_v53, 0.0  ;;  %v927_v17 = vmul.f32 %v1802_v5, %v1802_v5 }
 0x120   :  { %v929_v5 = vmul.f32 %v1862_v27, %v1862_v27  ;;  %v934_v53 = vmul.f32 %v2038_v37, %v2038_v37 }
 0x121   :  { %v1012_v47 = vadd.f32 %v1011_v22, %v1010_v20  ;;  %v817_v23 = vadd.f32 %v816_v18, %v815_v54  ;;  %v1027_v54 = vsel %vm690_vm2, %v926_v14, 0.0  ;;  %v1029_v63 = vsel %vm690_vm2, %v927_v17, 0.0 }
 0x122   :  { %v848_v14 = vsel %vm690_vm2, %v2074_v4, 0.0 }
 0x123   :  { %v819_v30 = vadd.f32 %v818_v24, %v817_v23  ;;  %v1014_v52 = vadd.f32 %v1013_v9, %v1012_v47  ;;  %v2138_v22 = vpop.f32.mrf.mxu3  ;;  %v834_v23 = vsel %vm690_vm2, %v1827_v10, 0.0  ;;  %v838_v10 = vsel %vm690_vm2, %v1895_v16, 0.0 }
 0x124   :  { %752 = vst.msk [vmem:[%s2285_s4 + $0x1e8] sm:$0xff] %vm690_vm2, %v2138_v22 }
 0x125   :  { %v821_v36 = vadd.f32 %v820_v26, %v819_v30  ;;  %v1016_v19 = vadd.f32 %v1015_v33, %v1014_v52  ;;  %v1031_v30 = vsel %vm690_vm2, %v928_v32, 0.0  ;;  %v836_v52 = vsel %vm690_vm2, %v1862_v27, 0.0 }
 0x126   :  { %v930_v33 = vmul.f32 %v1895_v16, %v1895_v16  ;;  %v840_v27 = vsel %vm690_vm2, %v1927_v43, 0.0 }
 0x127   :  { %v823_v60 = vadd.f32 %v822_v28, %v821_v36  ;;  %v1018_v40 = vadd.f32 %v1017_v35, %v1016_v19  ;;  %v1033_v36 = vsel %vm690_vm2, %v929_v5, 0.0  ;;  %v931_v19 = vmul.f32 %v1927_v43, %v1927_v43 }
 0x128   :  { %v1035_v39 = vsel %vm690_vm2, %v930_v33, 0.0  ;;  %v933_v43 = vmul.f32 %v2004_v15, %v2004_v15  ;;  %v940_v33 = vmul.f32 %v1837_v13, %v1837_v13 }
 0x129   :  { %v825_v46 = vadd.f32 %v824_v41, %v823_v60  ;;  %v1020_v2 = vadd.f32 %v1019_v44, %v1018_v40  ;;  %v932_v60 = vmul.f32 %v1970_v29, %v1970_v29  ;;  %v1037_v16 = vsel %vm690_vm2, %v931_v19, 0.0 }
 0x12a   :  { %v1041_v29 = vsel %vm690_vm2, %v933_v43, 0.0 }
 0x12b   :  { %v827_v3 = vadd.f32 %v826_v51, %v825_v46  ;;  %v1022_v31 = vadd.f32 %v1021_v48, %v1020_v2  ;;  %v2165_v40 = vpop.f32.mrf.mxu3  ;;  %v1039_v48 = vsel %vm690_vm2, %v932_v60, 0.0  ;;  %v844_v51 = vsel %vm690_vm2, %v2004_v15, 0.0 }
 0x12c   :  { %753 = vst.msk [vmem:[%s2285_s4 + $0x1f0] sm:$0xff] %vm690_vm2, %v2165_v40  ;;  %v936_v15 = vmul.f32 %v1735_v57, %v1735_v57 }
 0x12d   :  { %v829_v38 = vadd.f32 %v828_v11, %v827_v3  ;;  %v1024_v42 = vadd.f32 %v1023_v58, %v1022_v31  ;;  %v935_v3 = vmul.f32 %v2074_v4, %v2074_v4  ;;  %v846_v11 = vsel %vm690_vm2, %v2038_v37, 0.0 }
 0x12e   :  { %v850_v37 = vsel %vm690_vm2, %v1735_v57, 0.0  ;;  %v937_v4 = vmul.f32 %v1760_v61, %v1760_v61  ;;  %v1047_v32 = vsel %vm690_vm2, %v936_v15, 0.0  ;;  %v854_v57 = vsel %vm690_vm2, %v1785_v1, 0.0 }
 0x12f   :  { %v1026_v18 = vadd.f32 %v1025_v12, %v1024_v42  ;;  %v831_v20 = vadd.f32 %v830_v55, %v829_v38  ;;  %v1043_v12 = vsel %vm690_vm2, %v934_v53, 0.0  ;;  %v1045_v55 = vsel %vm690_vm2, %v935_v3, 0.0 }
 0x130   :  { %v1049_v5 = vsel %vm690_vm2, %v937_v4, 0.0  ;;  %v945_v53 = vmul.f32 %v2016_v49, %v2016_v49 }
 0x131   :  { %v833_v9 = vadd.f32 %v832_v59, %v831_v20  ;;  %v1028_v47 = vadd.f32 %v1027_v54, %v1026_v18 }
 0x133   :  { %v835_v24 = vadd.f32 %v834_v23, %v833_v9  ;;  %v1030_v25 = vadd.f32 %v1029_v63, %v1028_v47  ;;  %v2193_v17 = vpop.f32.mrf.mxu3  ;;  %v852_v9 = vsel %vm690_vm2, %v1760_v61, 0.0  ;;  %v938_v47 = vmul.f32 %v1785_v1, %v1785_v1 }
 0x134   :  { %754 = vst.msk [vmem:[%s2285_s4 + $0x1f8] sm:$0xff] %vm690_vm2, %v2193_v17  ;;  %v856_v61 = vsel %vm690_vm2, %v1810_v8, 0.0  ;;  %v858_v1 = vsel %vm690_vm2, %v1837_v13, 0.0  ;;  %v862_v13 = vsel %vm690_vm2, %v1905_v21, 0.0 }
 0x135   :  { %v837_v26 = vadd.f32 %v836_v52, %v835_v24  ;;  %v1032_v56 = vadd.f32 %v1031_v30, %v1030_v25  ;;  %v939_v24 = vmul.f32 %v1810_v8, %v1810_v8  ;;  %v1051_v52 = vsel %vm690_vm2, %v938_v47, 0.0 }
 0x136   :  { %v860_v8 = vsel %vm690_vm2, %v1872_v34, 0.0  ;;  %v950_v47 = vmul.f32 %v2165_v40, %v2165_v40 }
 0x137   :  { %v839_v35 = vadd.f32 %v838_v10, %v837_v26  ;;  %v1034_v28 = vadd.f32 %v1033_v36, %v1032_v56  ;;  %v1053_v36 = vsel %vm690_vm2, %v939_v24, 0.0  ;;  %v941_v10 = vmul.f32 %v1872_v34, %v1872_v34 }
 0x138   :  { %v864_v34 = vsel %vm690_vm2, %v1938_v50, 0.0  ;;  %v880_v24 = vsel %vm690_vm2, %v2193_v17, 0.0 }
 0x139   :  { %v841_v44 = vadd.f32 %v840_v27, %v839_v35  ;;  %v1036_v41 = vadd.f32 %v1035_v39, %v1034_v28  ;;  %v1055_v28 = vsel %vm690_vm2, %v940_v33, 0.0  ;;  %v942_v39 = vmul.f32 %v1905_v21, %v1905_v21 }
 0x13a   :  { %v866_v21 = vsel %vm690_vm2, %v1982_v6, 0.0 }
 0x13b   :  { %v1038_v46 = vadd.f32 %v1037_v16, %v1036_v41  ;;  %v843_v2 = vadd.f32 %v842_v45, %v841_v44  ;;  %v1057_v44 = vsel %vm690_vm2, %v941_v10, 0.0  ;;  %v943_v41 = vmul.f32 %v1938_v50, %v1938_v50 }
 0x13c   :  { %v1059_v43 = vsel %vm690_vm2, %v942_v39, 0.0  ;;  %v868_v50 = vsel %vm690_vm2, %v2016_v49, 0.0  ;;  %v872_v49 = vsel %vm690_vm2, %v2085_v62, 0.0 }
 0x13d   :  { %v1040_v31 = vadd.f32 %v1039_v48, %v1038_v46  ;;  %v845_v58 = vadd.f32 %v844_v51, %v843_v2  ;;  %v944_v46 = vmul.f32 %v1982_v6, %v1982_v6  ;;  %v1061_v51 = vsel %vm690_vm2, %v943_v41, 0.0 }
 0x13e   :  { %v870_v6 = vsel %vm690_vm2, %v2050_v0, 0.0 }
 0x13f   :  { %v1042_v38 = vadd.f32 %v1041_v29, %v1040_v31  ;;  %v847_v42 = vadd.f32 %v846_v11, %v845_v58  ;;  %v1063_v58 = vsel %vm690_vm2, %v944_v46, 0.0  ;;  %v946_v29 = vmul.f32 %v2050_v0, %v2050_v0 }
 0x140   :  { %v874_v0 = vsel %vm690_vm2, %v2111_v7, 0.0 }
 0x141   :  { %v1044_v18 = vadd.f32 %v1043_v12, %v1042_v38  ;;  %v849_v20 = vadd.f32 %v848_v14, %v847_v42  ;;  %v1065_v38 = vsel %vm690_vm2, %v945_v53, 0.0  ;;  %v947_v42 = vmul.f32 %v2085_v62, %v2085_v62 }
 0x142   :  { %v876_v62 = vsel %vm690_vm2, %v2138_v22, 0.0 }
 0x143   :  { %v851_v54 = vadd.f32 %v850_v37, %v849_v20  ;;  %v1046_v59 = vadd.f32 %v1045_v55, %v1044_v18  ;;  %v1067_v55 = vsel %vm690_vm2, %v946_v29, 0.0  ;;  %v948_v18 = vmul.f32 %v2111_v7, %v2111_v7 }
 0x144   :  { %v1069_v4 = vsel %vm690_vm2, %v947_v42, 0.0 }
 0x145   :  { %v853_v63 = vadd.f32 %v852_v9, %v851_v54  ;;  %v1048_v23 = vadd.f32 %v1047_v32, %v1046_v59  ;;  %v949_v54 = vmul.f32 %v2138_v22, %v2138_v22  ;;  %v1071_v9 = vsel %vm690_vm2, %v948_v18, 0.0 }
 0x146   :  { %v1075_v22 = vsel %vm690_vm2, %v950_v47, 0.0 }
 0x147   :  { %v855_v25 = vadd.f32 %v854_v57, %v853_v63  ;;  %v1050_v30 = vadd.f32 %v1049_v5, %v1048_v23  ;;  %v951_v63 = vmul.f32 %v2193_v17, %v2193_v17  ;;  %v1073_v7 = vsel %vm690_vm2, %v949_v54, 0.0 }
 0x148   :  { %v878_v57 = vsel %vm690_vm2, %v2165_v40, 0.0 }
 0x149   :  { %v857_v26 = vadd.f32 %v856_v61, %v855_v25  ;;  %v1052_v56 = vadd.f32 %v1051_v52, %v1050_v30  ;;  %v1077_v52 = vsel %vm690_vm2, %v951_v63, 0.0 }
 0x14b   :  { %v859_v19 = vadd.f32 %v858_v1, %v857_v26  ;;  %v1054_v35 = vadd.f32 %v1053_v36, %v1052_v56 }
 0x14d   :  { %v861_v27 = vadd.f32 %v860_v8, %v859_v19  ;;  %v1056_v60 = vadd.f32 %v1055_v28, %v1054_v35 }
 0x14f   :  { %v1058_v16 = vadd.f32 %v1057_v44, %v1056_v60  ;;  %v863_v45 = vadd.f32 %v862_v13, %v861_v27 }
 0x151   :  { %v865_v2 = vadd.f32 %v864_v34, %v863_v45  ;;  %v1060_v48 = vadd.f32 %v1059_v43, %v1058_v16 }
 0x153   :  { %v867_v3 = vadd.f32 %v866_v21, %v865_v2  ;;  %v1062_v31 = vadd.f32 %v1061_v51, %v1060_v48 }
 0x155   :  { %v869_v11 = vadd.f32 %v868_v50, %v867_v3  ;;  %v1064_v14 = vadd.f32 %v1063_v58, %v1062_v31 }
 0x157   :  { %v871_v15 = vadd.f32 %v870_v6, %v869_v11  ;;  %v1066_v12 = vadd.f32 %v1065_v38, %v1064_v14 }
 0x159   :  { %v873_v20 = vadd.f32 %v872_v49, %v871_v15  ;;  %v1068_v37 = vadd.f32 %v1067_v55, %v1066_v12 }
 0x15b   :  { %v1070_v59 = vadd.f32 %v1069_v4, %v1068_v37  ;;  %v875_v32 = vadd.f32 %v874_v0, %v873_v20 }
 0x15d   :  { %v1072_v23 = vadd.f32 %v1071_v9, %v1070_v59  ;;  %v877_v5 = vadd.f32 %v876_v62, %v875_v32 }
 0x15f   :  { %v1074_v25 = vadd.f32 %v1073_v7, %v1072_v23  ;;  %v879_v30 = vadd.f32 %v878_v57, %v877_v5 }
 0x161   :  { %v1076_v61 = vadd.f32 %v1075_v22, %v1074_v25  ;;  %v881_v33 = vadd.f32 %v880_v24, %v879_v30 }
 0x163   :  { %v882_v26 = vrot.slane %v881_v33, 4  ;;  %v1078_v56 = vadd.f32 %v1077_v52, %v1076_v61 }
 0x165   :  { %v883_v36 = vadd.f32 %v882_v26, %v881_v33  ;;  %v1079_v1 = vrot.slane %v1078_v56, 4 }
 0x167   :  { %v884_v10 = vrot.slane %v883_v36, 2  ;;  %v1080_v19 = vadd.f32 %v1079_v1, %v1078_v56 }
 0x169   :  { %v885_v35 = vadd.f32 %v884_v10, %v883_v36  ;;  %v1081_v28 = vrot.slane %v1080_v19, 2 }
 0x16b   :  { %v886_v40 = vrot.slane %v885_v35, 1  ;;  %v1082_v8 = vadd.f32 %v1081_v28, %v1080_v19 }
 0x16d   :  { %v1083_v39 = vrot.slane %v1082_v8, 1  ;;  %v887_v17 = vadd.f32 %v886_v40, %v885_v35 }
 0x16f   :  { %v1084_v27 = vadd.f32 %v1083_v39, %v1082_v8 }
 0x171   :  { %v1086_v60 = vsel %vm1085_vm3, %v887_v17, %v1084_v27 }
 0x172   :  { %1088 = vst.msk [vmem:[%s2286_s5] sm:$0x3] %vm1087_vm4, %v1086_v60 }

// kernel: bottleneck_forward.5
= control target key start
LH: loop header
LB: loop body
LE: loop exit
PB: predicated region body
PF: predicated region fallthrough
CT: control target
= control target key end

     0   :  { %s2861_s24 = smov 0   ;;  %s2863_s25 = smov 0   ;;  %s3749_s0 = inlined_call_operand.vmem [shape: f32[2,16,16,4], index: 0, kind: input, shape index: {}, may-alias: {0,1,2}]   ;;  %s3750_s1 = inlined_call_operand.vmem [shape: f32[2,16,16,4], index: 1, kind: input, shape index: {}, may-alias: {0,1,2}]   ;;  %s3751_s2 = inlined_call_operand.vmem [shape: f32[2,16,16,4], index: 2, kind: input, shape index: {}, may-alias: {0,1,2}]   ;;  %s3752_s3 = inlined_call_operand.vmem [shape: f32[1,4], index: 3, kind: input, shape index: {}]   ;;  %s3753_s4 = inlined_call_operand.vmem [shape: f32[1,4], index: 4, kind: input, shape index: {}]   ;;  %s3754_s5 = inlined_call_operand.vmem [shape: f32[9,4,4], index: 5, kind: input, shape index: {}]   ;;  %s3755_s6 = inlined_call_operand.vmem [shape: f32[2,16,16,4], index: 6, kind: output, shape index: {0}]   ;;  %s3756_s7 = inlined_call_operand.vmem [shape: f32[2,2,2,4], index: 7, kind: output, shape index: {1}]  }
   0x1   :  { %s2865_s26 = smov 0   ;;  %s2867_s27 = smov 0  }
   0x2   :  { %s2869_s28 = smov 0  }
   0x3 LB: > { %s27_s29 = sadd.s32 1, %s2810_s26  ;;  %s30_s30 = sadd.s32 1, %s2814_s27  ;;  %s2818_s28 = sphi %s2869_s28, %s18_s28   ;;  %s2814_s27 = sphi %s2867_s27, %s3761_s27   ;;  %s2810_s26 = sphi %s2865_s26, %s3760_s26   ;;  %s2806_s25 = sphi %s2863_s25, %s3759_s25   ;;  %s2802_s24 = sphi %s2861_s24, %s3758_s24  }
   0x4   : > { %p28_p0 = scmp.ge.s32.totalorder %s27_s29, 2  ;;  %p2543_p1 = scmp.ge.s32.totalorder %s2818_s28, 1 }
   0x5   : > { %p328_p2 = scmp.lt.s32.totalorder %s2818_s28, 5 }
   0x6   : > { %s3763_s29 = smov (%p28_p0, %s27_s29), 0  ;;  %s3765_s30 = smov (!%p28_p0, %s30_s30), %s2814_s27 }
   0x7   : > { %p329_p3 = pnand %p2543_p1, %p328_p2  ;;  %p32_p4 = scmp.ge.s32.totalorder %s3765_s30, 2 }
   0x8   : > { %s2897_s10 = sshll.u32 (!%p329_p3), %s2802_s24, 3  ;;  %p405_p5 = scmp.lt.s32.totalorder (!%p329_p3), %s2806_s25, 1 }
   0x9   : > { %s3767_s30 = smov (%p32_p4, %s3765_s30), 0  ;;  %332 = sbr.rel (%p329_p3) target bundleno = 506 (0x1fa), region = 44 }
   0xa   : > { %p407_p6 = scmp.lt.s32.totalorder (!%p329_p3), %s2897_s10, 15  ;;  %s2927_s19 = sadd.s32 (!%p329_p3), 4294967295, %s2897_s10 }
   0xb   : > { %p417_p7 = scmp.gt.s32.totalorder (!%p329_p3), %s2927_s19, 0  ;;  %p2550_p8 = scmp.lt.s32.totalorder (!%p329_p3), %s2927_s19, 15 }
   0xc   : > { %p505_p9 = scmp.ne.s32.totalorder (!%p329_p3), %s2802_s24, 0  ;;  %p519_p11 = scmp.ne.s32.totalorder (!%p329_p3), %s2802_s24, 1 }
   0xd   : > { %p462_p12 = scmp.lt.s32.totalorder (!%p329_p3), %s2802_s24, 1 }
   0xe   : > { %v628_v0 = vld [vmem:[%s3754_s5] sm:$0xf]  ;;  %vm677_vm0 = vcmask 1043456   ;;  %vm470_vm1 = vcmask 24576   ;;  %s3769_s25 = smov (!%p405_p5, %s2806_s25), 1  ;;  %v2820_v2 = vmov 0.0  }
   0xf   : > { %2736 = vmatpush.msk.msra.mxu1 %vm677_vm0, %v628_v0  ;;  %2737 = vmatpush.msk.msra.mxu2 %vm677_vm0, %v628_v0  ;;  %v468_v1 = vld [vmem:[%s3752_s3] sm:$0x1]  ;;  %473 = vst.msk [vmem:[#allocation2 + $0x30] sm:$0x1] %vm470_vm1, %v2820_v2  ;;  %s408_s13 = scalar_select %p407_p6, %s2897_s10, 15  ;;  %vm525_vm2 = vcmask 31744  }
  0x10   : > { %2738 = vmatpush.msk.msra.mxu3 %vm677_vm0, %v628_v0  ;;  %2571 = vmatpush.msk.msra.mxu0 %vm677_vm0, %v628_v0  ;;  %471 = vst.msk [vmem:[#allocation2] sm:$0x1] %vm470_vm1, %v2820_v2  ;;  %v2588_v3 = vld [vmem:[%s3754_s5 + $0x4] sm:$0xf]  ;;  %s2918_s16 = sshll.u32 %s3769_s25, 5  ;;  %v2939_v6 = vperm.slane %v468_v1, 0 }
  0x11   : > { %472 = vst.msk [vmem:[#allocation2 + $0x18] sm:$0x1] %vm470_vm1, %v2820_v2  ;;  %2589 = vmatpush.msk.msrb.mxu1 %vm677_vm0, %v2588_v3  ;;  %v2606_v4 = vld [vmem:[%s3754_s5 + $0x8] sm:$0xf]  ;;  %s2545_s20 = sshll.u32 %s408_s13, 1  ;;  %s3777_s24 = smov (!%p462_p12, %s2802_s24), 1 }
  0x12   : > { %v469_v5 = vld [vmem:[%s3753_s4] sm:$0x1]  ;;  %474 = vst.msk [vmem:[#allocation2 + $0x48] sm:$0x1] %vm470_vm1, %v2820_v2  ;;  %2607 = vmatpush.msk.msrb.mxu2 %vm677_vm0, %v2606_v4  ;;  %s2937_s23 = sadd.s32 %s2918_s16, %s2545_s20  ;;  %v2624_v7 = vld [vmem:[%s3754_s5 + $0xc] sm:$0xf] }
  0x13   : > { %475 = vst.msk [vmem:[#allocation2 + $0x60] sm:$0x1] %vm470_vm1, %v2820_v2  ;;  %s2547_s8 = sshll.u32 %s2937_s23, 3  ;;  %v2957_v8 = vperm.slane %v469_v5, 0  ;;  %2625 = vmatpush.msk.msrb.mxu3 %vm677_vm0, %v2624_v7  ;;  %v2642_v57 = vld [vmem:[%s3754_s5 + $0x10] sm:$0xf] }
  0x14   : > { %476 = vst.msk [vmem:[#allocation2 + $0x78] sm:$0x1] %vm470_vm1, %v2820_v2  ;;  %s2955_s14 = scalar_lea.vmem %s3749_s0, %s2547_s8  ;;  %2643 = vmatpush.msk.msrb.mxu0 %vm677_vm0, %v2642_v57  ;;  %v2660_v61 = vld [vmem:[%s3754_s5 + $0x14] sm:$0xf]  ;;  %s3568_s22 = scalar_lea.vmem %s3755_s6, %s2547_s8  ;;  %vm2325_vm3 = vcmask 1040384   ;;  %vm2327_vm4 = vcmask 25600  }
  0x15   : > { %477 = vst.msk [vmem:[#allocation2 + $0x90] sm:$0x1] %vm470_vm1, %v2820_v2  ;;  %v533_v9 = vld [vmem:[%s2955_s14 + $0x10] sm:$0xff]  ;;  %v534_v11 = vld [vmem:[%s2955_s14 + $0x18] sm:$0xff]  ;;  %s418_s15 = scalar_select %p417_p7, %s2927_s19, 0  ;;  %v535_v18 = vld [vmem:[%s2955_s14 + $0x20] sm:$0xff] }
  0x16   : > { %478 = vst.msk [vmem:[#allocation2 + $0xa8] sm:$0x1] %vm470_vm1, %v2820_v2  ;;  %v537_v10 = vld [vmem:[%s2955_s14 + $0x30] sm:$0xff]  ;;  %v549_v12 = vmul.f32 %v533_v9, %v2939_v6  ;;  %v538_v13 = vld [vmem:[%s2955_s14 + $0x38] sm:$0xff]  ;;  %v550_v17 = vmul.f32 %v534_v11, %v2939_v6  ;;  %s2988_s17 = scalar_select %p505_p9, 1, 0  ;;  %v551_v25 = vmul.f32 %v535_v18, %v2939_v6 }
  0x17   : > { %479 = vst.msk [vmem:[#allocation2 + $0xc0] sm:$0x1] %vm470_vm1, %v2820_v2  ;;  %v553_v14 = vmul.f32 %v537_v10, %v2939_v6  ;;  %v541_v15 = vld [vmem:[%s2955_s14 + $0x50] sm:$0xff]  ;;  %s3771_s15 = smov (!%p2550_p8, %s418_s15), 15  ;;  %v554_v19 = vmul.f32 %v538_v13, %v2939_v6  ;;  %v539_v20 = vld [vmem:[%s2955_s14 + $0x40] sm:$0xff]  ;;  %v542_v23 = vld [vmem:[%s2955_s14 + $0x58] sm:$0xff] }
  0x18   : > { %480 = vst.msk [vmem:[#allocation2 + $0xd8] sm:$0x1] %vm470_vm1, %v2820_v2  ;;  %v565_v16 = vadd.f32 %v549_v12, %v2957_v8  ;;  %s2555_s18 = sshll.u32 %s3771_s15, 1  ;;  %v557_v22 = vmul.f32 %v541_v15, %v2939_v6  ;;  %v566_v26 = vadd.f32 %v550_v17, %v2957_v8  ;;  %v555_v27 = vmul.f32 %v539_v20, %v2939_v6  ;;  %v536_v28 = vld [vmem:[%s2955_s14 + $0x28] sm:$0xff]  ;;  %v543_v36 = vld [vmem:[%s2955_s14 + $0x60] sm:$0xff]  ;;  %s507_s11 = scvt.s32.f32 %s2988_s17  ;;  %v545_v57 = vld [vmem:[%s2955_s14 + $0x70] sm:$0xff] }
  0x19   : > { %481 = vst.msk [vmem:[#allocation2 + $0x11] sm:$0x1] %vm470_vm1, %v2820_v2  ;;  %s425_s19 = sadd.s32 %s2555_s18, %s2918_s16  ;;  %v569_v24 = vadd.f32 %v553_v14, %v2957_v8  ;;  %v570_v29 = vadd.f32 %v554_v19, %v2957_v8  ;;  %v558_v30 = vmul.f32 %v542_v23, %v2939_v6  ;;  %v540_v32 = vld [vmem:[%s2955_s14 + $0x48] sm:$0xff]  ;;  %v567_v39 = vadd.f32 %v551_v25, %v2957_v8  ;;  %v531_v49 = vld [vmem:[%s2955_s14] sm:$0xff]  ;;  %v2678_v15 = vld [vmem:[%s3754_s5 + $0x18] sm:$0xf] }
  0x1a   : > { %482 = vst.msk [vmem:[#allocation2 + $0x29] sm:$0x1] %vm470_vm1, %v2820_v2  ;;  %v581_v21 = vmax.f32 %v565_v16, 0.0  ;;  %s2557_s20 = sshll.u32 %s425_s19, 3  ;;  %v573_v34 = vadd.f32 %v557_v22, %v2957_v8  ;;  %v552_v40 = vmul.f32 %v536_v28, %v2939_v6  ;;  %v582_v41 = vmax.f32 %v566_v26, 0.0  ;;  %v544_v45 = vld [vmem:[%s2955_s14 + $0x68] sm:$0xff] }
  0x1b   : > { %483 = vst.msk [vmem:[#allocation2 + $0x41] sm:$0x1] %vm470_vm1, %v2820_v2  ;;  %s427_s9 = scalar_lea.vmem %s3750_s1, %s2557_s20  ;;  %v585_v38 = vmax.f32 %v569_v24, 0.0  ;;  %v571_v42 = vadd.f32 %v555_v27, %v2957_v8  ;;  %v556_v44 = vmul.f32 %v540_v32, %v2939_v6  ;;  %v586_v46 = vmax.f32 %v570_v29, 0.0  ;;  %v532_v9 = vld [vmem:[%s2955_s14 + $0x8] sm:$0xff]  ;;  %s2569_s23 = sshll.u32 %s3769_s25, 1 }
  0x1c   : > { %484 = vst.msk [vmem:[#allocation2 + $0x59] sm:$0x1] %vm470_vm1, %v2820_v2  ;;  %v491_v31 = vld [vmem:[%s427_s9] sm:$0xff]  ;;  %v492_v33 = vld [vmem:[%s427_s9 + $0x8] sm:$0xff]  ;;  %v574_v47 = vadd.f32 %v558_v30, %v2957_v8  ;;  %v559_v48 = vmul.f32 %v543_v36, %v2939_v6  ;;  %v589_v50 = vmax.f32 %v573_v34, 0.0  ;;  %v583_v54 = vmax.f32 %v567_v39, 0.0  ;;  %s465_s8 = sadd.s32 %s2569_s23, %s3777_s24 }
  0x1d   : > { %598 = vst.msk [vmem:[#allocation2 + $0x31] sm:$0xff] %vm525_vm2, %v581_v21  ;;  %v496_v35 = vmul.f32 %v2939_v6, %v491_v31  ;;  %v497_v37 = vmul.f32 %v2939_v6, %v492_v33  ;;  %v508_v55 = vstv %s507_s11  ;;  %v568_v56 = vadd.f32 %v552_v40, %v2957_v8  ;;  %v2696_v25 = vld [vmem:[%s3754_s5 + $0x1c] sm:$0xf]  ;;  %v2714_v34 = vld [vmem:[%s3754_s5 + $0x20] sm:$0xf]  ;;  %s2570_s9 = sshll.u32 %s465_s8, 1 }
  0x1e   : > { %485 = vst.msk [vmem:[#allocation2 + $0x71] sm:$0x1] %vm470_vm1, %v2820_v2  ;;  %v560_v58 = vmul.f32 %v544_v45, %v2939_v6  ;;  %v587_v59 = vmax.f32 %v571_v42, 0.0  ;;  %v572_v60 = vadd.f32 %v556_v44, %v2957_v8  ;;  %v547_v62 = vmul.f32 %v531_v49, %v2939_v6  ;;  %s520_s18 = scalar_select %p519_p11, 1, 0 }
  0x1f   : > { %486 = vst.msk [vmem:[#allocation2 + $0x89] sm:$0x1] %vm470_vm1, %v2820_v2  ;;  %v501_v43 = vadd.f32 %v2957_v8, %v496_v35  ;;  %v502_v52 = vadd.f32 %v2957_v8, %v497_v37  ;;  %v590_v63 = vmax.f32 %v574_v47, 0.0  ;;  %v575_v0 = vadd.f32 %v559_v48, %v2957_v8 }
  0x20   : > { %487 = vst.msk [vmem:[#allocation2 + $0xa1] sm:$0x1] %vm470_vm1, %v2820_v2  ;;  %v584_v3 = vmax.f32 %v568_v56, 0.0  ;;  %v576_v4 = vadd.f32 %v560_v58, %v2957_v8  ;;  %v588_v5 = vmax.f32 %v572_v60, 0.0  ;;  %v563_v7 = vadd.f32 %v547_v62, %v2957_v8  ;;  %s521_s19 = scvt.s32.f32 %s520_s18 }
  0x21   : > { %488 = vst.msk [vmem:[#allocation2 + $0xb9] sm:$0x1] %vm470_vm1, %v2820_v2  ;;  %v503_v51 = vmax.f32 %v501_v43, 0.0  ;;  %v591_v10 = vmax.f32 %v575_v0, 0.0  ;;  %v548_v11 = vmul.f32 %v532_v9, %v2939_v6  ;;  %v561_v58 = vmul.f32 %v545_v57, %v2939_v6 }
  0x22   : > { %489 = vst.msk [vmem:[#allocation2 + $0xd1] sm:$0x1] %vm470_vm1, %v2820_v2  ;;  %v592_v16 = vmax.f32 %v576_v4, 0.0  ;;  %v579_v18 = vmax.f32 %v563_v7, 0.0 }
  0x23   : > { %490 = vst.msk [vmem:[#allocation2 + $0xe9] sm:$0x1] %vm470_vm1, %v2820_v2  ;;  %v509_v1 = vmul.f32 %v508_v55, %v503_v51  ;;  %v504_v2 = vmax.f32 %v502_v52, 0.0  ;;  %v564_v17 = vadd.f32 %v548_v11, %v2957_v8 }
  0x24   : > { %v3040_v53 = vld [vmem:[#allocation2 + $0x30] sm:$0xff]  ;;  %602 = vst.msk [vmem:[#allocation2 + $0x61] sm:$0xff] %vm525_vm2, %v585_v38 }
  0x25   : > { %2576 = vmatmul.msk.f32.vlgmr.msra.gmra.mxu1 %vm525_vm2, %v3040_v53  ;;  %599 = vst.msk [vmem:[#allocation2 + $0x39] sm:$0xff] %vm525_vm2, %v582_v41  ;;  %v510_v13 = vmul.f32 %v508_v55, %v504_v2  ;;  %v580_v20 = vmax.f32 %v564_v17, 0.0  ;;  %v3155_v43 = vld [vmem:[#allocation2 + $0x31] sm:$0xff] }
  0x26   : > { %603 = vst.msk [vmem:[#allocation2 + $0x69] sm:$0xff] %vm525_vm2, %v586_v46  ;;  %2661 = vmatpush.msk.msra.mxu1 %vm677_vm0, %v2660_v61  ;;  %v577_v61 = vadd.f32 %v561_v58, %v2957_v8 }
  0x27   : > { %606 = vst.msk [vmem:[#allocation2 + $0x91] sm:$0xff] %vm525_vm2, %v589_v50 }
  0x28   : > { %600 = vst.msk [vmem:[#allocation2 + $0x49] sm:$0xff] %vm525_vm2, %v583_v54  ;;  %v593_v62 = vmax.f32 %v577_v61, 0.0 }
  0x29   : > { %604 = vst.msk [vmem:[#allocation2 + $0x79] sm:$0xff] %vm525_vm2, %v587_v59 }
  0x2a   : > { %607 = vst.msk [vmem:[#allocation2 + $0x99] sm:$0xff] %vm525_vm2, %v590_v63  ;;  %v546_v63 = vld [vmem:[%s2955_s14 + $0x78] sm:$0xff]  ;;  %s433_s14 = sadd.s32 8, %s2897_s10 }
  0x2b   : > { %v3068_v12 = vld [vmem:[#allocation2 + $0x60] sm:$0xff]  ;;  %526 = vst.msk [vmem:[#allocation2 + $0x1] sm:$0xff] %vm525_vm2, %v509_v1  ;;  %v562_v0 = vmul.f32 %v546_v63, %v2939_v6  ;;  %p3398_p10 = scmp.lt.s32.totalorder %s433_s14, 15 }
  0x2c   : > { %2580 = vmatmul.msk.f32.vlgmr.msra.gmra.mxu2 %vm525_vm2, %v3068_v12  ;;  %v3073_v14 = vld [vmem:[#allocation2 + $0x38] sm:$0xff]  ;;  %601 = vst.msk [vmem:[#allocation2 + $0x51] sm:$0xff] %vm525_vm2, %v584_v3  ;;  %v3203_v51 = vld [vmem:[#allocation2 + $0x61] sm:$0xff] }
  0x2d   : > { %2577 = vmatmul.msk.f32.gmra.mxu1 %vm525_vm2, %v3073_v14  ;;  %605 = vst.msk [vmem:[#allocation2 + $0x81] sm:$0xff] %vm525_vm2, %v588_v5  ;;  %2679 = vmatpush.msk.msra.mxu2 %vm677_vm0, %v2678_v15  ;;  %v3091_v21 = vld [vmem:[#allocation2 + $0x68] sm:$0xff]  ;;  %v3165_v44 = vld [vmem:[#allocation2 + $0x32] sm:$0xff]  ;;  %v3177_v46 = vld [vmem:[#allocation2 + $0x3a] sm:$0xff]  ;;  %v578_v4 = vadd.f32 %v562_v0, %v2957_v8  ;;  %s3773_s14 = smov (!%p3398_p10, %s433_s14), 15 }
  0x2e   : > { %v3084_v19 = vld [vmem:[#allocation2 + $0x90] sm:$0xff]  ;;  %608 = vst.msk [vmem:[#allocation2 + $0xa9] sm:$0xff] %vm525_vm2, %v591_v10  ;;  %v3167_v45 = vld [vmem:[#allocation2 + $0x39] sm:$0xff]  ;;  %v3213_v52 = vld [vmem:[#allocation2 + $0x62] sm:$0xff]  ;;  %s3775_s14 = smov (!%p3398_p10, %s3773_s14), 15 }
  0x2f   : > { %2584 = vmatmul.msk.f32.vlgmr.msra.gmra.mxu3 %vm525_vm2, %v3084_v19  ;;  %527 = vst.msk [vmem:[#allocation2 + $0x9] sm:$0xff] %vm525_vm2, %v510_v13  ;;  %v3094_v22 = vld [vmem:[#allocation2 + $0x48] sm:$0xff]  ;;  %v3257_v3 = vld [vmem:[#allocation2 + $0x91] sm:$0xff]  ;;  %v594_v5 = vmax.f32 %v578_v4, 0.0  ;;  %s2562_s10 = sshll.u32 %s3775_s14, 1 }
  0x30   : > { %609 = vst.msk [vmem:[#allocation2 + $0xb1] sm:$0xff] %vm525_vm2, %v592_v16  ;;  %2697 = vmatpush.msk.msra.mxu3 %vm677_vm0, %v2696_v25  ;;  %v3110_v27 = vld [vmem:[#allocation2 + $0x78] sm:$0xff]  ;;  %v3179_v47 = vld [vmem:[#allocation2 + $0x49] sm:$0xff]  ;;  %s442_s12 = sadd.s32 %s2562_s10, %s2918_s16  ;;  %s467_s10 = scalar_lea.vmem %s3756_s7, %s2570_s9 }
  0x31   : > { %596 = vst.msk [vmem:[#allocation2 + $0x19] sm:$0xff] %vm525_vm2, %v579_v18  ;;  %v3100_v24 = vld [vmem:[#allocation2 + $0x98] sm:$0xff]  ;;  %v3215_v54 = vld [vmem:[#allocation2 + $0x69] sm:$0xff]  ;;  %s2564_s13 = sshll.u32 %s442_s12, 3 }
  0x32   : > { %v612_v23 = vld [vmem:[#allocation2] sm:$0xff]  ;;  %597 = vst.msk [vmem:[#allocation2 + $0x21] sm:$0xff] %vm525_vm2, %v580_v20  ;;  %v3225_v55 = vld [vmem:[#allocation2 + $0x6a] sm:$0xff]  ;;  %v3270_v7 = vld [vmem:[#allocation2 + $0x92] sm:$0xff]  ;;  %s3448_s17 = scalar_lea.vmem %s3751_s2, %s2564_s13 }
  0x33   : > { %2572 = vmatmul.msk.f32.vlgmr.msra.gmra.mxu0 %vm525_vm2, %v612_v23  ;;  %v3112_v28 = vld [vmem:[#allocation2 + $0x50] sm:$0xff]  ;;  %v762_v32 = vld [vmem:[#allocation2 + $0x1] sm:$0xff]  ;;  %v3227_v56 = vld [vmem:[#allocation2 + $0x79] sm:$0xff]  ;;  %610 = vst.msk [vmem:[#allocation2 + $0xc1] sm:$0xff] %vm525_vm2, %v593_v62 }
  0x34   : > { %2581 = vmatmul.msk.f32.gmra.mxu2 %vm525_vm2, %v3091_v21  ;;  %v3123_v31 = vld [vmem:[#allocation2 + $0x80] sm:$0xff]  ;;  %2715 = vmatpush.msk.msra.mxu0 %vm677_vm0, %v2714_v34  ;;  %v3189_v48 = vld [vmem:[#allocation2 + $0x4a] sm:$0xff]  ;;  %v3201_v50 = vld [vmem:[#allocation2 + $0x52] sm:$0xff]  ;;  %611 = vst.msk [vmem:[#allocation2 + $0xc9] sm:$0xff] %vm525_vm2, %v594_v5 }
  0x35   : > { %2578 = vmatmul.msk.f32.gmra.mxu1 %vm525_vm2, %v3094_v22  ;;  %v3117_v29 = vld [vmem:[#allocation2 + $0xa8] sm:$0xff]  ;;  %v3191_v49 = vld [vmem:[#allocation2 + $0x51] sm:$0xff]  ;;  %v3239_v59 = vld [vmem:[#allocation2 + $0x7a] sm:$0xff] }
  0x36   : > { %v613_v26 = vld [vmem:[#allocation2 + $0x8] sm:$0xff]  ;;  %v3272_v10 = vld [vmem:[#allocation2 + $0x99] sm:$0xff] }
  0x37   : > { %2585 = vmatmul.msk.f32.gmra.mxu3 %vm525_vm2, %v3100_v24  ;;  %v3128_v33 = vld [vmem:[#allocation2 + $0xb0] sm:$0xff]  ;;  %v944_v36 = vld [vmem:[#allocation2 + $0x2] sm:$0xff]  ;;  %v3284_v15 = vld [vmem:[#allocation2 + $0x9a] sm:$0xff] }
  0x38   : > { %v614_v30 = vld [vmem:[#allocation2 + $0x18] sm:$0xff]  ;;  %v763_v37 = vld [vmem:[#allocation2 + $0x9] sm:$0xff]  ;;  %v3241_v60 = vld [vmem:[#allocation2 + $0x81] sm:$0xff] }
  0x39   : > { %v615_v35 = vld [vmem:[#allocation2 + $0x20] sm:$0xff]  ;;  %v945_v38 = vld [vmem:[#allocation2 + $0xa] sm:$0xff] }
  0x3a   : > { %v764_v39 = vld [vmem:[#allocation2 + $0x19] sm:$0xff]  ;;  %v765_v41 = vld [vmem:[#allocation2 + $0x21] sm:$0xff]  ;;  %v3287_v17 = vld [vmem:[#allocation2 + $0xa9] sm:$0xff] }
  0x3b   : > { %2573 = vmatmul.msk.f32.gmra.mxu0 %vm525_vm2, %v613_v26  ;;  %v3145_v40 = vld [vmem:[#allocation2 + $0x1a] sm:$0xff]  ;;  %v3153_v42 = vld [vmem:[#allocation2 + $0x22] sm:$0xff]  ;;  %v3300_v25 = vld [vmem:[#allocation2 + $0xaa] sm:$0xff] }
  0x3c   : > { %2582 = vmatmul.msk.f32.gmra.mxu2 %vm525_vm2, %v3110_v27  ;;  %v3255_v1 = vld [vmem:[#allocation2 + $0x82] sm:$0xff] }
  0x3d   : > { %2579 = vmatmul.msk.f32.gmra.mxu1 %vm525_vm2, %v3112_v28  ;;  %v3311_v34 = vld [vmem:[#allocation2 + $0xc0] sm:$0xff]  ;;  %v3328_v61 = vld [vmem:[#allocation2 + $0xc8] sm:$0xff] }
  0x3f   : > { %2586 = vmatmul.msk.f32.gmra.mxu3 %vm525_vm2, %v3117_v29 }
  0x43   : > { %2574 = vmatmul.msk.f32.gmra.mxu0 %vm525_vm2, %v614_v30 }
  0x44   : > { %2583 = vmatmul.msk.f32.gmra.mxu2 %vm525_vm2, %v3123_v31 }
  0x45   : > { %2590 = vmatmul.msk.f32.vlgmr.msrb.gmra.mxu1 %vm525_vm2, %v762_v32 }
  0x47   : > { %2587 = vmatmul.msk.f32.gmra.mxu3 %vm525_vm2, %v3128_v33 }
  0x4b   : > { %2575 = vmatmul.msk.f32.gmra.mxu0 %vm525_vm2, %v615_v35 }
  0x4c   : > { %2608 = vmatmul.msk.f32.vlgmr.msrb.gmra.mxu2 %vm525_vm2, %v944_v36 }
  0x4d   : > { %2591 = vmatmul.msk.f32.gmra.mxu1 %vm525_vm2, %v763_v37 }
  0x4f   : > { %2626 = vmatmul.msk.f32.vlgmr.msrb.gmra.mxu3 %vm525_vm2, %v614_v30  ;;  %v3303_v30 = vld [vmem:[#allocation2 + $0xb1] sm:$0xff] }
  0x53   : > { %2644 = vmatmul.msk.f32.vlgmr.msrb.gmra.mxu0 %vm525_vm2, %v764_v39 }
  0x54   : > { %2609 = vmatmul.msk.f32.gmra.mxu2 %vm525_vm2, %v945_v38  ;;  %v3318_v38 = vld [vmem:[#allocation2 + $0xc1] sm:$0xff] }
  0x55   : > { %2592 = vmatmul.msk.f32.gmra.mxu1 %vm525_vm2, %v764_v39  ;;  %v3320_v39 = vld [vmem:[#allocation2 + $0xb2] sm:$0xff] }
  0x57   : > { %2627 = vmatmul.msk.f32.gmra.mxu3 %vm525_vm2, %v615_v35 }
  0x5b   : > { %2645 = vmatmul.msk.f32.gmra.mxu0 %vm525_vm2, %v765_v41 }
  0x5c   : > { %2610 = vmatmul.msk.f32.gmra.mxu2 %vm525_vm2, %v3145_v40 }
  0x5d   : > { %2593 = vmatmul.msk.f32.gmra.mxu1 %vm525_vm2, %v765_v41 }
  0x5f   : > { %2628 = vmatmul.msk.f32.gmra.mxu3 %vm525_vm2, %v3040_v53 }
  0x63   : > { %2646 = vmatmul.msk.f32.gmra.mxu0 %vm525_vm2, %v3155_v43 }
  0x64   : > { %2611 = vmatmul.msk.f32.gmra.mxu2 %vm525_vm2, %v3153_v42 }
  0x65   : > { %2594 = vmatmul.msk.f32.gmra.mxu1 %vm525_vm2, %v3155_v43 }
  0x67   : > { %2629 = vmatmul.msk.f32.gmra.mxu3 %vm525_vm2, %v3073_v14 }
  0x6b   : > { %2647 = vmatmul.msk.f32.gmra.mxu0 %vm525_vm2, %v3167_v45 }
  0x6c   : > { %2612 = vmatmul.msk.f32.gmra.mxu2 %vm525_vm2, %v3165_v44 }
  0x6d   : > { %2595 = vmatmul.msk.f32.gmra.mxu1 %vm525_vm2, %v3167_v45 }
  0x6f   : > { %2630 = vmatmul.msk.f32.gmra.mxu3 %vm525_vm2, %v3094_v22 }
  0x73   : > { %2648 = vmatmul.msk.f32.gmra.mxu0 %vm525_vm2, %v3179_v47 }
  0x74   : > { %2613 = vmatmul.msk.f32.gmra.mxu2 %vm525_vm2, %v3177_v46 }
  0x75   : > { %2596 = vmatmul.msk.f32.gmra.mxu1 %vm525_vm2, %v3179_v47 }
  0x77   : > { %2631 = vmatmul.msk.f32.gmra.mxu3 %vm525_vm2, %v3112_v28 }
  0x7b   : > { %2649 = vmatmul.msk.f32.gmra.mxu0 %vm525_vm2, %v3191_v49 }
  0x7c   : > { %2614 = vmatmul.msk.f32.gmra.mxu2 %vm525_vm2, %v3189_v48 }
  0x7d   : > { %2597 = vmatmul.msk.f32.gmra.mxu1 %vm525_vm2, %v3191_v49 }
  0x7f   : > { %2632 = vmatmul.msk.f32.gmra.mxu3 %vm525_vm2, %v3068_v12 }
  0x83   : > { %2650 = vmatmul.msk.f32.gmra.mxu0 %vm525_vm2, %v3203_v51 }
  0x84   : > { %2615 = vmatmul.msk.f32.gmra.mxu2 %vm525_vm2, %v3201_v50 }
  0x85   : > { %2598 = vmatmul.msk.f32.gmra.mxu1 %vm525_vm2, %v3203_v51 }
  0x87   : > { %2633 = vmatmul.msk.f32.gmra.mxu3 %vm525_vm2, %v3091_v21 }
  0x8b   : > { %2651 = vmatmul.msk.f32.gmra.mxu0 %vm525_vm2, %v3215_v54 }
  0x8c   : > { %2616 = vmatmul.msk.f32.gmra.mxu2 %vm525_vm2, %v3213_v52 }
  0x8d   : > { %2599 = vmatmul.msk.f32.gmra.mxu1 %vm525_vm2, %v3215_v54 }
  0x8f   : > { %2634 = vmatmul.msk.f32.gmra.mxu3 %vm525_vm2, %v3110_v27 }
  0x93   : > { %2652 = vmatmul.msk.f32.gmra.mxu0 %vm525_vm2, %v3227_v56 }
  0x94   : > { %2617 = vmatmul.msk.f32.gmra.mxu2 %vm525_vm2, %v3225_v55 }
  0x95   : > { %2600 = vmatmul.msk.f32.gmra.mxu1 %vm525_vm2, %v3227_v56 }
  0x97   : > { %2635 = vmatmul.msk.f32.gmra.mxu3 %vm525_vm2, %v3123_v31 }
  0x9b   : > { %2653 = vmatmul.msk.f32.gmra.mxu0 %vm525_vm2, %v3241_v60 }
  0x9c   : > { %2618 = vmatmul.msk.f32.gmra.mxu2 %vm525_vm2, %v3239_v59 }
  0x9d   : > { %2601 = vmatmul.msk.f32.gmra.mxu1 %vm525_vm2, %v3241_v60 }
  0x9f   : > { %2636 = vmatmul.msk.f32.gmra.mxu3 %vm525_vm2, %v3084_v19 }
  0xa2   : > { %v710_v2 = vpop.f32.mrf.mxu1 }
  0xa3   : > { %750 = vst.msk [vmem:[#allocation3 + $0x20] sm:$0xff] %vm525_vm2, %v710_v2  ;;  %2654 = vmatmul.msk.f32.gmra.mxu0 %vm525_vm2, %v3257_v3  ;;  %v3336_v2 = vld [vmem:[#allocation2 + $0xc9] sm:$0xff] }
  0xa4   : > { %2619 = vmatmul.msk.f32.gmra.mxu2 %vm525_vm2, %v3255_v1 }
  0xa5   : > { %2602 = vmatmul.msk.f32.gmra.mxu1 %vm525_vm2, %v3257_v3 }
  0xa7   : > { %2637 = vmatmul.msk.f32.gmra.mxu3 %vm525_vm2, %v3100_v24 }
  0xaa   : > { %v713_v9 = vpop.f32.mrf.mxu1 }
  0xab   : > { %751 = vst.msk [vmem:[#allocation3 + $0x28] sm:$0xff] %vm525_vm2, %v713_v9  ;;  %2655 = vmatmul.msk.f32.gmra.mxu0 %vm525_vm2, %v3272_v10 }
  0xac   : > { %2620 = vmatmul.msk.f32.gmra.mxu2 %vm525_vm2, %v3270_v7 }
  0xad   : > { %2603 = vmatmul.msk.f32.gmra.mxu1 %vm525_vm2, %v3272_v10 }
  0xaf   : > { %v722_v11 = vpop.f32.mrf.mxu2  ;;  %2638 = vmatmul.msk.f32.gmra.mxu3 %vm525_vm2, %v3117_v29 }
  0xb0   : > { %754 = vst.msk [vmem:[#allocation3 + $0x40] sm:$0xff] %vm525_vm2, %v722_v11  ;;  %v698_v13 = vpop.f32.mrf.mxu0 }
  0xb1   : > { %746 = vst.msk [vmem:[#allocation3] sm:$0xff] %vm525_vm2, %v698_v13 }
  0xb2   : > { %v716_v16 = vpop.f32.mrf.mxu1  ;;  %v734_v18 = vpop.f32.mrf.mxu3 }
  0xb3   : > { %752 = vst.msk [vmem:[#allocation3 + $0x30] sm:$0xff] %vm525_vm2, %v716_v16  ;;  %2656 = vmatmul.msk.f32.gmra.mxu0 %vm525_vm2, %v3287_v17 }
  0xb4   : > { %2621 = vmatmul.msk.f32.gmra.mxu2 %vm525_vm2, %v3284_v15  ;;  %758 = vst.msk [vmem:[#allocation3 + $0x60] sm:$0xff] %vm525_vm2, %v734_v18 }
  0xb5   : > { %2604 = vmatmul.msk.f32.gmra.mxu1 %vm525_vm2, %v3287_v17 }
  0xb7   : > { %v725_v20 = vpop.f32.mrf.mxu2  ;;  %2639 = vmatmul.msk.f32.gmra.mxu3 %vm525_vm2, %v3128_v33 }
  0xb8   : > { %755 = vst.msk [vmem:[#allocation3 + $0x48] sm:$0xff] %vm525_vm2, %v725_v20  ;;  %v701_v23 = vpop.f32.mrf.mxu0  ;;  %v896_v36 = vld [vmem:[#allocation3] sm:$0xff] }
  0xb9   : > { %747 = vst.msk [vmem:[#allocation3 + $0x8] sm:$0xff] %vm525_vm2, %v701_v23 }
  0xba   : > { %v719_v26 = vpop.f32.mrf.mxu1  ;;  %v737_v32 = vpop.f32.mrf.mxu3 }
  0xbb   : > { %753 = vst.msk [vmem:[#allocation3 + $0x38] sm:$0xff] %vm525_vm2, %v719_v26  ;;  %2657 = vmatmul.msk.f32.gmra.mxu0 %vm525_vm2, %v3303_v30 }
  0xbc   : > { %2622 = vmatmul.msk.f32.gmra.mxu2 %vm525_vm2, %v3300_v25  ;;  %759 = vst.msk [vmem:[#allocation3 + $0x68] sm:$0xff] %vm525_vm2, %v737_v32 }
  0xbd   : > { %2605 = vmatmul.msk.f32.gmra.mxu1 %vm525_vm2, %v3303_v30 }
  0xbf   : > { %v728_v35 = vpop.f32.mrf.mxu2  ;;  %2640 = vmatmul.msk.f32.gmra.mxu3 %vm525_vm2, %v3311_v34 }
  0xc0   : > { %756 = vst.msk [vmem:[#allocation3 + $0x50] sm:$0xff] %vm525_vm2, %v728_v35  ;;  %v704_v37 = vpop.f32.mrf.mxu0  ;;  %v897_v63 = vld [vmem:[#allocation3 + $0x8] sm:$0xff] }
  0xc1   : > { %748 = vst.msk [vmem:[#allocation3 + $0x10] sm:$0xff] %vm525_vm2, %v704_v37 }
  0xc2   : > { %v848_v41 = vpop.f32.mrf.mxu1  ;;  %v740_v57 = vpop.f32.mrf.mxu3 }
  0xc3   : > { %v912_v58 = vadd.f32 %v896_v36, %v848_v41  ;;  %760 = vst.msk [vmem:[#allocation3 + $0x70] sm:$0xff] %vm525_vm2, %v740_v57  ;;  %2658 = vmatmul.msk.f32.gmra.mxu0 %vm525_vm2, %v3318_v38 }
  0xc4   : > { %2623 = vmatmul.msk.f32.gmra.mxu2 %vm525_vm2, %v3320_v39 }
  0xc5   : > { %928 = vst.msk [vmem:[#allocation3] sm:$0xff] %vm525_vm2, %v912_v58  ;;  %2662 = vmatmul.msk.f32.vlgmr.msra.gmra.mxu1 %vm525_vm2, %v3145_v40 }
  0xc7   : > { %v731_v62 = vpop.f32.mrf.mxu2  ;;  %2641 = vmatmul.msk.f32.gmra.mxu3 %vm525_vm2, %v3328_v61 }
  0xc8   : > { %757 = vst.msk [vmem:[#allocation3 + $0x58] sm:$0xff] %vm525_vm2, %v731_v62  ;;  %v707_v0 = vpop.f32.mrf.mxu0  ;;  %v898_v16 = vld [vmem:[#allocation3 + $0x10] sm:$0xff] }
  0xc9   : > { %749 = vst.msk [vmem:[#allocation3 + $0x18] sm:$0xff] %vm525_vm2, %v707_v0 }
  0xca   : > { %v851_v4 = vpop.f32.mrf.mxu1  ;;  %v743_v5 = vpop.f32.mrf.mxu3 }
  0xcb   : > { %v913_v9 = vadd.f32 %v897_v63, %v851_v4  ;;  %761 = vst.msk [vmem:[#allocation3 + $0x78] sm:$0xff] %vm525_vm2, %v743_v5  ;;  %2659 = vmatmul.msk.f32.gmra.mxu0 %vm525_vm2, %v3336_v2  ;;  %v900_v5 = vld [vmem:[#allocation3 + $0x20] sm:$0xff] }
  0xcc   : > { %2680 = vmatmul.msk.f32.vlgmr.msra.gmra.mxu2 %vm525_vm2, %v3040_v53  ;;  %v1078_v40 = vld [vmem:[#allocation3] sm:$0xff] }
  0xcd   : > { %929 = vst.msk [vmem:[#allocation3 + $0x8] sm:$0xff] %vm525_vm2, %v913_v9  ;;  %2663 = vmatmul.msk.f32.gmra.mxu1 %vm525_vm2, %v3153_v42 }
  0xcf   : > { %v1030_v11 = vpop.f32.mrf.mxu2  ;;  %2698 = vmatmul.msk.f32.vlgmr.msra.gmra.mxu3 %vm525_vm2, %v3155_v43 }
  0xd0   : > { %v1094_v13 = vadd.f32 %v1078_v40, %v1030_v11  ;;  %v1394_v18 = vpop.f32.mrf.mxu0  ;;  %v899_v32 = vld [vmem:[#allocation3 + $0x18] sm:$0xff] }
  0xd2   : > { %1110 = vst.msk [vmem:[#allocation3] sm:$0xff] %vm525_vm2, %v1094_v13  ;;  %v854_v20 = vpop.f32.mrf.mxu1  ;;  %v1212_v23 = vpop.f32.mrf.mxu3 }
  0xd3   : > { %v914_v26 = vadd.f32 %v898_v16, %v854_v20  ;;  %2716 = vmatmul.msk.f32.vlgmr.msra.gmra.mxu0 %vm525_vm2, %v3165_v44 }
  0xd4   : > { %2681 = vmatmul.msk.f32.gmra.mxu2 %vm525_vm2, %v3073_v14  ;;  %v1079_v53 = vld [vmem:[#allocation3 + $0x8] sm:$0xff] }
  0xd5   : > { %930 = vst.msk [vmem:[#allocation3 + $0x10] sm:$0xff] %vm525_vm2, %v914_v26  ;;  %2664 = vmatmul.msk.f32.gmra.mxu1 %vm525_vm2, %v3165_v44 }
  0xd7   : > { %v1033_v42 = vpop.f32.mrf.mxu2  ;;  %2699 = vmatmul.msk.f32.gmra.mxu3 %vm525_vm2, %v3167_v45 }
  0xd8   : > { %v1095_v43 = vadd.f32 %v1079_v53, %v1033_v42  ;;  %v1397_v35 = vpop.f32.mrf.mxu0 }
  0xd9   : > { %v1260_v36 = vld [vmem:[#allocation3] sm:$0xff] }
  0xda   : > { %1111 = vst.msk [vmem:[#allocation3 + $0x8] sm:$0xff] %vm525_vm2, %v1095_v43  ;;  %v1276_v37 = vadd.f32 %v1260_v36, %v1212_v23  ;;  %v857_v41 = vpop.f32.mrf.mxu1  ;;  %v1215_v57 = vpop.f32.mrf.mxu3 }
  0xdb   : > { %v915_v14 = vadd.f32 %v899_v32, %v857_v41  ;;  %2717 = vmatmul.msk.f32.gmra.mxu0 %vm525_vm2, %v3177_v46  ;;  %v902_v41 = vld [vmem:[#allocation3 + $0x30] sm:$0xff] }
  0xdc   : > { %1292 = vst.msk [vmem:[#allocation3] sm:$0xff] %vm525_vm2, %v1276_v37  ;;  %2682 = vmatmul.msk.f32.gmra.mxu2 %vm525_vm2, %v3094_v22  ;;  %v1080_v44 = vld [vmem:[#allocation3 + $0x10] sm:$0xff] }
  0xdd   : > { %931 = vst.msk [vmem:[#allocation3 + $0x18] sm:$0xff] %vm525_vm2, %v915_v14  ;;  %2665 = vmatmul.msk.f32.gmra.mxu1 %vm525_vm2, %v3177_v46 }
  0xdf   : > { %v1036_v45 = vpop.f32.mrf.mxu2  ;;  %2700 = vmatmul.msk.f32.gmra.mxu3 %vm525_vm2, %v3179_v47 }
  0xe0   : > { %v1096_v58 = vadd.f32 %v1080_v44, %v1036_v45  ;;  %v1400_v62 = vpop.f32.mrf.mxu0 }
  0xe1   : > { %v1261_v63 = vld [vmem:[#allocation3 + $0x8] sm:$0xff] }
  0xe2   : > { %1112 = vst.msk [vmem:[#allocation3 + $0x10] sm:$0xff] %vm525_vm2, %v1096_v58  ;;  %v1277_v0 = vadd.f32 %v1261_v63, %v1215_v57  ;;  %v860_v4 = vpop.f32.mrf.mxu1  ;;  %v1218_v9 = vpop.f32.mrf.mxu3 }
  0xe3   : > { %v1442_v22 = vld [vmem:[#allocation3] sm:$0xff]  ;;  %v916_v40 = vadd.f32 %v900_v5, %v860_v4  ;;  %2718 = vmatmul.msk.f32.gmra.mxu0 %vm525_vm2, %v3189_v48  ;;  %v903_v4 = vld [vmem:[#allocation3 + $0x38] sm:$0xff] }
  0xe4   : > { %1293 = vst.msk [vmem:[#allocation3 + $0x8] sm:$0xff] %vm525_vm2, %v1277_v0  ;;  %v1458_v46 = vadd.f32 %v1442_v22, %v1394_v18  ;;  %2683 = vmatmul.msk.f32.gmra.mxu2 %vm525_vm2, %v3112_v28  ;;  %v1081_v47 = vld [vmem:[#allocation3 + $0x18] sm:$0xff]  ;;  %v901_v28 = vld [vmem:[#allocation3 + $0x28] sm:$0xff] }
  0xe5   : > { %932 = vst.msk [vmem:[#allocation3 + $0x20] sm:$0xff] %vm525_vm2, %v916_v40  ;;  %2666 = vmatmul.msk.f32.gmra.mxu1 %vm525_vm2, %v3189_v48 }
  0xe6   : > { %1474 = vst.msk [vmem:[#allocation3] sm:$0xff] %vm525_vm2, %v1458_v46 }
  0xe7   : > { %v1039_v11 = vpop.f32.mrf.mxu2  ;;  %2701 = vmatmul.msk.f32.gmra.mxu3 %vm525_vm2, %v3191_v49 }
  0xe8   : > { %v1097_v13 = vadd.f32 %v1081_v47, %v1039_v11  ;;  %v1403_v16 = vpop.f32.mrf.mxu0 }
  0xe9   : > { %v1262_v20 = vld [vmem:[#allocation3 + $0x10] sm:$0xff] }
  0xea   : > { %1113 = vst.msk [vmem:[#allocation3 + $0x18] sm:$0xff] %vm525_vm2, %v1097_v13  ;;  %v1278_v18 = vadd.f32 %v1262_v20, %v1218_v9  ;;  %v863_v23 = vpop.f32.mrf.mxu1  ;;  %v1221_v26 = vpop.f32.mrf.mxu3 }
  0xeb   : > { %v1443_v53 = vld [vmem:[#allocation3 + $0x8] sm:$0xff]  ;;  %v917_v42 = vadd.f32 %v901_v28, %v863_v23  ;;  %2719 = vmatmul.msk.f32.gmra.mxu0 %vm525_vm2, %v3201_v50 }
  0xec   : > { %1294 = vst.msk [vmem:[#allocation3 + $0x10] sm:$0xff] %vm525_vm2, %v1278_v18  ;;  %v1459_v48 = vadd.f32 %v1443_v53, %v1397_v35  ;;  %2684 = vmatmul.msk.f32.gmra.mxu2 %vm525_vm2, %v3068_v12  ;;  %v1082_v49 = vld [vmem:[#allocation3 + $0x20] sm:$0xff] }
  0xed   : > { %933 = vst.msk [vmem:[#allocation3 + $0x28] sm:$0xff] %vm525_vm2, %v917_v42  ;;  %2667 = vmatmul.msk.f32.gmra.mxu1 %vm525_vm2, %v3201_v50 }
  0xee   : > { %1475 = vst.msk [vmem:[#allocation3 + $0x8] sm:$0xff] %vm525_vm2, %v1459_v48  ;;  %v905_v48 = vld [vmem:[#allocation3 + $0x48] sm:$0xff] }
  0xef   : > { %v1042_v43 = vpop.f32.mrf.mxu2  ;;  %2702 = vmatmul.msk.f32.gmra.mxu3 %vm525_vm2, %v3203_v51 }
  0xf0   : > { %v1098_v32 = vadd.f32 %v1082_v49, %v1042_v43  ;;  %v1406_v36 = vpop.f32.mrf.mxu0 }
  0xf1   : > { %v1263_v37 = vld [vmem:[#allocation3 + $0x18] sm:$0xff] }
  0xf2   : > { %1114 = vst.msk [vmem:[#allocation3 + $0x20] sm:$0xff] %vm525_vm2, %v1098_v32  ;;  %v1279_v35 = vadd.f32 %v1263_v37, %v1221_v26  ;;  %v866_v12 = vpop.f32.mrf.mxu1  ;;  %v1224_v57 = vpop.f32.mrf.mxu3 }
  0xf3   : > { %v1444_v14 = vld [vmem:[#allocation3 + $0x10] sm:$0xff]  ;;  %v918_v44 = vadd.f32 %v902_v41, %v866_v12  ;;  %2720 = vmatmul.msk.f32.gmra.mxu0 %vm525_vm2, %v3213_v52 }
  0xf4   : > { %1295 = vst.msk [vmem:[#allocation3 + $0x18] sm:$0xff] %vm525_vm2, %v1279_v35  ;;  %v1460_v50 = vadd.f32 %v1444_v14, %v1400_v62  ;;  %2685 = vmatmul.msk.f32.gmra.mxu2 %vm525_vm2, %v3091_v21  ;;  %v1083_v51 = vld [vmem:[#allocation3 + $0x28] sm:$0xff] }
  0xf5   : > { %934 = vst.msk [vmem:[#allocation3 + $0x30] sm:$0xff] %vm525_vm2, %v918_v44  ;;  %2668 = vmatmul.msk.f32.gmra.mxu1 %vm525_vm2, %v3213_v52 }
  0xf6   : > { %1476 = vst.msk [vmem:[#allocation3 + $0x10] sm:$0xff] %vm525_vm2, %v1460_v50  ;;  %v522_v50 = vstv %s521_s19 }
  0xf7   : > { %v1045_v45 = vpop.f32.mrf.mxu2  ;;  %2703 = vmatmul.msk.f32.gmra.mxu3 %vm525_vm2, %v3215_v54 }
  0xf8   : > { %v1099_v58 = vadd.f32 %v1083_v51, %v1045_v45  ;;  %v1409_v62 = vpop.f32.mrf.mxu0 }
  0xf9   : > { %v1264_v63 = vld [vmem:[#allocation3 + $0x20] sm:$0xff] }
  0xfa   : > { %1115 = vst.msk [vmem:[#allocation3 + $0x28] sm:$0xff] %vm525_vm2, %v1099_v58  ;;  %v1280_v21 = vadd.f32 %v1264_v63, %v1224_v57  ;;  %v869_v0 = vpop.f32.mrf.mxu1  ;;  %v1227_v5 = vpop.f32.mrf.mxu3 }
  0xfb   : > { %v1445_v9 = vld [vmem:[#allocation3 + $0x18] sm:$0xff]  ;;  %v919_v52 = vadd.f32 %v903_v4, %v869_v0  ;;  %2721 = vmatmul.msk.f32.gmra.mxu0 %vm525_vm2, %v3225_v55 }
  0xfc   : > { %1296 = vst.msk [vmem:[#allocation3 + $0x20] sm:$0xff] %vm525_vm2, %v1280_v21  ;;  %v1461_v54 = vadd.f32 %v1445_v9, %v1403_v16  ;;  %2686 = vmatmul.msk.f32.gmra.mxu2 %vm525_vm2, %v3110_v27  ;;  %v1084_v22 = vld [vmem:[#allocation3 + $0x30] sm:$0xff]  ;;  %v904_v16 = vld [vmem:[#allocation3 + $0x40] sm:$0xff]  ;;  %v512_v0 = vld [vmem:[%s3448_s17 + $0x8] sm:$0xff] }
  0xfd   : > { %935 = vst.msk [vmem:[#allocation3 + $0x38] sm:$0xff] %vm525_vm2, %v919_v52  ;;  %2669 = vmatmul.msk.f32.gmra.mxu1 %vm525_vm2, %v3225_v55  ;;  %v514_v4 = vmul.f32 %v512_v0, %v2939_v6 }
  0xfe   : > { %1477 = vst.msk [vmem:[#allocation3 + $0x18] sm:$0xff] %vm525_vm2, %v1461_v54 }
  0xff   : > { %v1048_v40 = vpop.f32.mrf.mxu2  ;;  %2704 = vmatmul.msk.f32.gmra.mxu3 %vm525_vm2, %v3227_v56  ;;  %v516_v9 = vadd.f32 %v514_v4, %v2957_v8 }
 0x100   : > { %v1100_v46 = vadd.f32 %v1084_v22, %v1048_v40  ;;  %v3427_v47 = vpop.f32.mrf.mxu0 }
 0x101   : > { %v1265_v11 = vld [vmem:[#allocation3 + $0x28] sm:$0xff]  ;;  %v518_v22 = vmax.f32 %v516_v9, 0.0 }
 0x102   : > { %1116 = vst.msk [vmem:[#allocation3 + $0x30] sm:$0xff] %vm525_vm2, %v1100_v46  ;;  %v1281_v27 = vadd.f32 %v1265_v11, %v1227_v5  ;;  %v872_v13 = vpop.f32.mrf.mxu1  ;;  %v1230_v20 = vpop.f32.mrf.mxu3 }
 0x103   : > { %v1446_v55 = vld [vmem:[#allocation3 + $0x20] sm:$0xff]  ;;  %v920_v18 = vadd.f32 %v904_v16, %v872_v13  ;;  %2722 = vmatmul.msk.f32.gmra.mxu0 %vm525_vm2, %v3239_v59 }
 0x104   : > { %1297 = vst.msk [vmem:[#allocation3 + $0x28] sm:$0xff] %vm525_vm2, %v1281_v27  ;;  %v1462_v56 = vadd.f32 %v1446_v55, %v1406_v36  ;;  %2687 = vmatmul.msk.f32.gmra.mxu2 %vm525_vm2, %v3123_v31  ;;  %v1085_v23 = vld [vmem:[#allocation3 + $0x38] sm:$0xff] }
 0x105   : > { %936 = vst.msk [vmem:[#allocation3 + $0x40] sm:$0xff] %vm525_vm2, %v920_v18  ;;  %2670 = vmatmul.msk.f32.gmra.mxu1 %vm525_vm2, %v3239_v59 }
 0x106   : > { %1478 = vst.msk [vmem:[#allocation3 + $0x20] sm:$0xff] %vm525_vm2, %v1462_v56 }
 0x107   : > { %v1051_v28 = vpop.f32.mrf.mxu2  ;;  %2705 = vmatmul.msk.f32.gmra.mxu3 %vm525_vm2, %v3241_v60  ;;  %v511_v60 = vld [vmem:[%s3448_s17] sm:$0xff] }
 0x108   : > { %v1101_v26 = vadd.f32 %v1085_v23, %v1051_v28  ;;  %v3443_v53 = vpop.f32.mrf.mxu0  ;;  %v513_v37 = vmul.f32 %v511_v60, %v2939_v6  ;;  %v908_v23 = vld [vmem:[#allocation3 + $0x60] sm:$0xff] }
 0x109   : > { %v1266_v31 = vld [vmem:[#allocation3 + $0x30] sm:$0xff] }
 0x10a   : > { %1117 = vst.msk [vmem:[#allocation3 + $0x38] sm:$0xff] %vm525_vm2, %v1101_v26  ;;  %v1282_v59 = vadd.f32 %v1266_v31, %v1230_v20  ;;  %v875_v42 = vpop.f32.mrf.mxu1  ;;  %v1233_v49 = vpop.f32.mrf.mxu3  ;;  %v515_v12 = vadd.f32 %v513_v37, %v2957_v8  ;;  %v524_v8 = vmul.f32 %v522_v50, %v518_v22 }
 0x10b   : > { %v1447_v43 = vld [vmem:[#allocation3 + $0x28] sm:$0xff]  ;;  %v921_v32 = vadd.f32 %v905_v48, %v875_v42  ;;  %2723 = vmatmul.msk.f32.gmra.mxu0 %vm525_vm2, %v3255_v1 }
 0x10c   : > { %1298 = vst.msk [vmem:[#allocation3 + $0x30] sm:$0xff] %vm525_vm2, %v1282_v59  ;;  %v1463_v36 = vadd.f32 %v1447_v43, %v1409_v62  ;;  %2688 = vmatmul.msk.f32.gmra.mxu2 %vm525_vm2, %v3084_v19  ;;  %v1086_v35 = vld [vmem:[#allocation3 + $0x40] sm:$0xff]  ;;  %v517_v14 = vmax.f32 %v515_v12, 0.0 }
 0x10d   : > { %937 = vst.msk [vmem:[#allocation3 + $0x48] sm:$0xff] %vm525_vm2, %v921_v32  ;;  %2671 = vmatmul.msk.f32.gmra.mxu1 %vm525_vm2, %v3255_v1  ;;  %v906_v1 = vld [vmem:[#allocation3 + $0x50] sm:$0xff] }
 0x10e   : > { %1479 = vst.msk [vmem:[#allocation3 + $0x28] sm:$0xff] %vm525_vm2, %v1463_v36  ;;  %v523_v21 = vmul.f32 %v522_v50, %v517_v14  ;;  %v1504_v14 = vld [vmem:[#allocation2 + $0xc2] sm:$0xff] }
 0x10f   : > { %v1054_v41 = vpop.f32.mrf.mxu2  ;;  %2706 = vmatmul.msk.f32.gmra.mxu3 %vm525_vm2, %v3257_v3  ;;  %530 = vst.msk [vmem:[#allocation2 + $0xe1] sm:$0xff] %vm525_vm2, %v524_v8 }
 0x110   : > { %v1102_v57 = vadd.f32 %v1086_v35, %v1054_v41  ;;  %v1418_v19 = vpop.f32.mrf.mxu0  ;;  %529 = vst.msk [vmem:[#allocation2 + $0xd9] sm:$0xff] %vm525_vm2, %v523_v21 }
 0x111   : > { %v1267_v44 = vld [vmem:[#allocation3 + $0x38] sm:$0xff] }
 0x112   : > { %1118 = vst.msk [vmem:[#allocation3 + $0x40] sm:$0xff] %vm525_vm2, %v1102_v57  ;;  %v1283_v51 = vadd.f32 %v1267_v44, %v1233_v49  ;;  %v878_v45 = vpop.f32.mrf.mxu1  ;;  %v1236_v58 = vpop.f32.mrf.mxu3 }
 0x113   : > { %v1448_v62 = vld [vmem:[#allocation3 + $0x30] sm:$0xff]  ;;  %v922_v63 = vadd.f32 %v906_v1, %v878_v45  ;;  %2724 = vmatmul.msk.f32.gmra.mxu0 %vm525_vm2, %v3270_v7 }
 0x114   : > { %1299 = vst.msk [vmem:[#allocation3 + $0x38] sm:$0xff] %vm525_vm2, %v1283_v51  ;;  %v1464_v3 = vadd.f32 %v1448_v62, %v3427_v47  ;;  %2689 = vmatmul.msk.f32.gmra.mxu2 %vm525_vm2, %v3100_v24  ;;  %v1087_v5 = vld [vmem:[#allocation3 + $0x48] sm:$0xff]  ;;  %v907_v47 = vld [vmem:[#allocation3 + $0x58] sm:$0xff] }
 0x115   : > { %938 = vst.msk [vmem:[#allocation3 + $0x50] sm:$0xff] %vm525_vm2, %v922_v63  ;;  %2672 = vmatmul.msk.f32.gmra.mxu1 %vm525_vm2, %v3270_v7 }
 0x116   : > { %1480 = vst.msk [vmem:[#allocation3 + $0x30] sm:$0xff] %vm525_vm2, %v1464_v3  ;;  %v1505_v3 = vld [vmem:[#allocation2 + $0xca] sm:$0xff] }
 0x117   : > { %v1057_v52 = vpop.f32.mrf.mxu2  ;;  %2707 = vmatmul.msk.f32.gmra.mxu3 %vm525_vm2, %v3272_v10  ;;  %v1687_v63 = vld [vmem:[#allocation2 + $0xd8] sm:$0xff] }
 0x118   : > { %v1103_v54 = vadd.f32 %v1087_v5, %v1057_v52  ;;  %v1421_v24 = vpop.f32.mrf.mxu0 }
 0x119   : > { %v1268_v6 = vld [vmem:[#allocation3 + $0x40] sm:$0xff] }
 0x11a   : > { %1119 = vst.msk [vmem:[#allocation3 + $0x48] sm:$0xff] %vm525_vm2, %v1103_v54  ;;  %v1284_v40 = vadd.f32 %v1268_v6, %v1236_v58  ;;  %v881_v46 = vpop.f32.mrf.mxu1  ;;  %v1239_v7 = vpop.f32.mrf.mxu3 }
 0x11b   : > { %v1449_v11 = vld [vmem:[#allocation3 + $0x38] sm:$0xff]  ;;  %v923_v27 = vadd.f32 %v907_v47, %v881_v46  ;;  %2725 = vmatmul.msk.f32.gmra.mxu0 %vm525_vm2, %v3284_v15  ;;  %v1688_v47 = vld [vmem:[#allocation2 + $0xe0] sm:$0xff] }
 0x11c   : > { %1300 = vst.msk [vmem:[#allocation3 + $0x40] sm:$0xff] %vm525_vm2, %v1284_v40  ;;  %v1465_v10 = vadd.f32 %v1449_v11, %v3443_v53  ;;  %2690 = vmatmul.msk.f32.gmra.mxu2 %vm525_vm2, %v3117_v29  ;;  %v1088_v13 = vld [vmem:[#allocation3 + $0x50] sm:$0xff] }
 0x11d   : > { %939 = vst.msk [vmem:[#allocation3 + $0x58] sm:$0xff] %vm525_vm2, %v923_v27  ;;  %2673 = vmatmul.msk.f32.gmra.mxu1 %vm525_vm2, %v3284_v15  ;;  %v2051_v40 = vld [vmem:[#allocation2 + $0xda] sm:$0xff]  ;;  %v1624_v27 = vld [vmem:[#allocation3] sm:$0xff] }
 0x11e   : > { %1481 = vst.msk [vmem:[#allocation3 + $0x38] sm:$0xff] %vm525_vm2, %v1465_v10 }
 0x11f   : > { %v1060_v16 = vpop.f32.mrf.mxu2  ;;  %2708 = vmatmul.msk.f32.gmra.mxu3 %vm525_vm2, %v3287_v17 }
 0x120   : > { %v1104_v20 = vadd.f32 %v1088_v13, %v1060_v16  ;;  %v1424_v55 = vpop.f32.mrf.mxu0 }
 0x121   : > { %v1269_v18 = vld [vmem:[#allocation3 + $0x48] sm:$0xff] }
 0x122   : > { %1120 = vst.msk [vmem:[#allocation3 + $0x50] sm:$0xff] %vm525_vm2, %v1104_v20  ;;  %v1285_v29 = vadd.f32 %v1269_v18, %v1239_v7  ;;  %v884_v56 = vpop.f32.mrf.mxu1  ;;  %v1242_v28 = vpop.f32.mrf.mxu3  ;;  %v1870_v20 = vld [vmem:[#allocation2 + $0xe1] sm:$0xff] }
 0x123   : > { %v1450_v26 = vld [vmem:[#allocation3 + $0x40] sm:$0xff]  ;;  %v924_v53 = vadd.f32 %v908_v23, %v884_v56  ;;  %2726 = vmatmul.msk.f32.gmra.mxu0 %vm525_vm2, %v3300_v25  ;;  %v2052_v23 = vld [vmem:[#allocation2 + $0xe2] sm:$0xff] }
 0x124   : > { %1301 = vst.msk [vmem:[#allocation3 + $0x48] sm:$0xff] %vm525_vm2, %v1285_v29  ;;  %v1466_v15 = vadd.f32 %v1450_v26, %v1418_v19  ;;  %2691 = vmatmul.msk.f32.gmra.mxu2 %vm525_vm2, %v3128_v33  ;;  %v1089_v17 = vld [vmem:[#allocation3 + $0x58] sm:$0xff]  ;;  %v909_v33 = vld [vmem:[#allocation3 + $0x68] sm:$0xff] }
 0x125   : > { %940 = vst.msk [vmem:[#allocation3 + $0x60] sm:$0xff] %vm525_vm2, %v924_v53  ;;  %2674 = vmatmul.msk.f32.gmra.mxu1 %vm525_vm2, %v3300_v25 }
 0x126   : > { %1482 = vst.msk [vmem:[#allocation3 + $0x40] sm:$0xff] %vm525_vm2, %v1466_v15  ;;  %v1625_v15 = vld [vmem:[#allocation3 + $0x8] sm:$0xff] }
 0x127   : > { %v1063_v31 = vpop.f32.mrf.mxu2  ;;  %2709 = vmatmul.msk.f32.gmra.mxu3 %vm525_vm2, %v3303_v30 }
 0x128   : > { %v1105_v59 = vadd.f32 %v1089_v17, %v1063_v31  ;;  %v1427_v42 = vpop.f32.mrf.mxu0 }
 0x129   : > { %v1270_v48 = vld [vmem:[#allocation3 + $0x50] sm:$0xff] }
 0x12a   : > { %1121 = vst.msk [vmem:[#allocation3 + $0x58] sm:$0xff] %vm525_vm2, %v1105_v59  ;;  %v1286_v49 = vadd.f32 %v1270_v48, %v1242_v28  ;;  %v887_v43 = vpop.f32.mrf.mxu1  ;;  %v1245_v32 = vpop.f32.mrf.mxu3 }
 0x12b   : > { %v1451_v60 = vld [vmem:[#allocation3 + $0x48] sm:$0xff]  ;;  %v925_v36 = vadd.f32 %v909_v33, %v887_v43  ;;  %2727 = vmatmul.msk.f32.gmra.mxu0 %vm525_vm2, %v3320_v39 }
 0x12c   : > { %1302 = vst.msk [vmem:[#allocation3 + $0x50] sm:$0xff] %vm525_vm2, %v1286_v49  ;;  %v1467_v25 = vadd.f32 %v1451_v60, %v1421_v24  ;;  %2692 = vmatmul.msk.f32.gmra.mxu2 %vm525_vm2, %v3311_v34  ;;  %v1090_v30 = vld [vmem:[#allocation3 + $0x60] sm:$0xff]  ;;  %v910_v34 = vld [vmem:[#allocation3 + $0x70] sm:$0xff] }
 0x12d   : > { %941 = vst.msk [vmem:[#allocation3 + $0x68] sm:$0xff] %vm525_vm2, %v925_v36  ;;  %2675 = vmatmul.msk.f32.gmra.mxu1 %vm525_vm2, %v3320_v39 }
 0x12e   : > { %1483 = vst.msk [vmem:[#allocation3 + $0x48] sm:$0xff] %vm525_vm2, %v1467_v25  ;;  %v1626_v25 = vld [vmem:[#allocation3 + $0x10] sm:$0xff] }
 0x12f   : > { %v1066_v37 = vpop.f32.mrf.mxu2  ;;  %2710 = vmatmul.msk.f32.gmra.mxu3 %vm525_vm2, %v3318_v38 }
 0x130   : > { %v1106_v35 = vadd.f32 %v1090_v30, %v1066_v37  ;;  %v1430_v12 = vpop.f32.mrf.mxu0 }
 0x131   : > { %v1271_v41 = vld [vmem:[#allocation3 + $0x58] sm:$0xff] }
 0x132   : > { %1122 = vst.msk [vmem:[#allocation3 + $0x60] sm:$0xff] %vm525_vm2, %v1106_v35  ;;  %v1287_v57 = vadd.f32 %v1271_v41, %v1245_v32  ;;  %v890_v19 = vpop.f32.mrf.mxu1  ;;  %v1248_v44 = vpop.f32.mrf.mxu3 }
 0x133   : > { %v1452_v50 = vld [vmem:[#allocation3 + $0x50] sm:$0xff]  ;;  %v926_v51 = vadd.f32 %v910_v34, %v890_v19  ;;  %2728 = vmatmul.msk.f32.gmra.mxu0 %vm525_vm2, %v1504_v14 }
 0x134   : > { %1303 = vst.msk [vmem:[#allocation3 + $0x58] sm:$0xff] %vm525_vm2, %v1287_v57  ;;  %v1468_v39 = vadd.f32 %v1452_v50, %v1424_v55  ;;  %2693 = vmatmul.msk.f32.gmra.mxu2 %vm525_vm2, %v3328_v61  ;;  %v1091_v38 = vld [vmem:[#allocation3 + $0x68] sm:$0xff]  ;;  %v911_v61 = vld [vmem:[#allocation3 + $0x78] sm:$0xff] }
 0x135   : > { %942 = vst.msk [vmem:[#allocation3 + $0x70] sm:$0xff] %vm525_vm2, %v926_v51  ;;  %2676 = vmatmul.msk.f32.gmra.mxu1 %vm525_vm2, %v1504_v14  ;;  %v1627_v51 = vld [vmem:[#allocation3 + $0x18] sm:$0xff] }
 0x136   : > { %1484 = vst.msk [vmem:[#allocation3 + $0x50] sm:$0xff] %vm525_vm2, %v1468_v39 }
 0x137   : > { %v1069_v45 = vpop.f32.mrf.mxu2  ;;  %2711 = vmatmul.msk.f32.gmra.mxu3 %vm525_vm2, %v3336_v2  ;;  %v1869_v2 = vld [vmem:[#allocation2 + $0xd9] sm:$0xff] }
 0x138   : > { %v1107_v1 = vadd.f32 %v1091_v38, %v1069_v45  ;;  %v1433_v58 = vpop.f32.mrf.mxu0 }
 0x139   : > { %v1272_v62 = vld [vmem:[#allocation3 + $0x60] sm:$0xff] }
 0x13a   : > { %1123 = vst.msk [vmem:[#allocation3 + $0x68] sm:$0xff] %vm525_vm2, %v1107_v1  ;;  %v1288_v21 = vadd.f32 %v1272_v62, %v1248_v44  ;;  %v893_v0 = vpop.f32.mrf.mxu1  ;;  %v1251_v4 = vpop.f32.mrf.mxu3 }
 0x13b   : > { %v1453_v5 = vld [vmem:[#allocation3 + $0x58] sm:$0xff]  ;;  %v927_v9 = vadd.f32 %v911_v61, %v893_v0  ;;  %2729 = vmatmul.msk.f32.gmra.mxu0 %vm525_vm2, %v1505_v3 }
 0x13c   : > { %1304 = vst.msk [vmem:[#allocation3 + $0x60] sm:$0xff] %vm525_vm2, %v1288_v21  ;;  %v1469_v52 = vadd.f32 %v1453_v5, %v1427_v42  ;;  %2694 = vmatmul.msk.f32.gmra.mxu2 %vm525_vm2, %v1687_v63  ;;  %v1092_v54 = vld [vmem:[#allocation3 + $0x70] sm:$0xff] }
 0x13d   : > { %943 = vst.msk [vmem:[#allocation3 + $0x78] sm:$0xff] %vm525_vm2, %v927_v9  ;;  %2677 = vmatmul.msk.f32.gmra.mxu1 %vm525_vm2, %v1505_v3 }
 0x13e   : > { %1485 = vst.msk [vmem:[#allocation3 + $0x58] sm:$0xff] %vm525_vm2, %v1469_v52 }
 0x13f   : > { %v1072_v24 = vpop.f32.mrf.mxu2  ;;  %2712 = vmatmul.msk.f32.gmra.mxu3 %vm525_vm2, %v1869_v2 }
 0x140   : > { %v1108_v22 = vadd.f32 %v1092_v54, %v1072_v24  ;;  %v1436_v6 = vpop.f32.mrf.mxu0 }
 0x141   : > { %v1273_v46 = vld [vmem:[#allocation3 + $0x68] sm:$0xff] }
 0x142   : > { %1124 = vst.msk [vmem:[#allocation3 + $0x70] sm:$0xff] %vm525_vm2, %v1108_v22  ;;  %v1289_v7 = vadd.f32 %v1273_v46, %v1251_v4  ;;  %v1576_v11 = vpop.f32.mrf.mxu1  ;;  %v1254_v8 = vpop.f32.mrf.mxu3  ;;  %v1628_v4 = vld [vmem:[#allocation3 + $0x20] sm:$0xff] }
 0x143   : > { %v1454_v10 = vld [vmem:[#allocation3 + $0x60] sm:$0xff]  ;;  %v1640_v13 = vadd.f32 %v1624_v27, %v1576_v11  ;;  %2730 = vmatmul.msk.f32.gmra.mxu0 %vm525_vm2, %v2051_v40 }
 0x144   : > { %1305 = vst.msk [vmem:[#allocation3 + $0x68] sm:$0xff] %vm525_vm2, %v1289_v7  ;;  %v1470_v16 = vadd.f32 %v1454_v10, %v1430_v12  ;;  %2695 = vmatmul.msk.f32.gmra.mxu2 %vm525_vm2, %v1688_v47  ;;  %v1093_v55 = vld [vmem:[#allocation3 + $0x78] sm:$0xff]  ;;  %v1629_v7 = vld [vmem:[#allocation3 + $0x28] sm:$0xff] }
 0x145   : > { %1656 = vst.msk [vmem:[#allocation3] sm:$0xff] %vm525_vm2, %v1640_v13 }
 0x146   : > { %1486 = vst.msk [vmem:[#allocation3 + $0x60] sm:$0xff] %vm525_vm2, %v1470_v16 }
 0x147   : > { %v1075_v18 = vpop.f32.mrf.mxu2  ;;  %2713 = vmatmul.msk.f32.gmra.mxu3 %vm525_vm2, %v1870_v20 }
 0x148   : > { %v1109_v29 = vadd.f32 %v1093_v55, %v1075_v18  ;;  %v1439_v56 = vpop.f32.mrf.mxu0 }
 0x149   : > { %v1274_v28 = vld [vmem:[#allocation3 + $0x70] sm:$0xff] }
 0x14a   : > { %1125 = vst.msk [vmem:[#allocation3 + $0x78] sm:$0xff] %vm525_vm2, %v1109_v29  ;;  %v1290_v26 = vadd.f32 %v1274_v28, %v1254_v8  ;;  %v1579_v53 = vpop.f32.mrf.mxu1  ;;  %v1257_v17 = vpop.f32.mrf.mxu3  ;;  %v1630_v28 = vld [vmem:[#allocation3 + $0x30] sm:$0xff] }
 0x14b   : > { %v1455_v31 = vld [vmem:[#allocation3 + $0x68] sm:$0xff]  ;;  %v1641_v59 = vadd.f32 %v1625_v15, %v1579_v53  ;;  %2731 = vmatmul.msk.f32.gmra.mxu0 %vm525_vm2, %v2052_v23 }
 0x14c   : > { %1306 = vst.msk [vmem:[#allocation3 + $0x70] sm:$0xff] %vm525_vm2, %v1290_v26  ;;  %v1471_v42 = vadd.f32 %v1455_v31, %v1433_v58  ;;  %v1807_v48 = vld [vmem:[#allocation3] sm:$0xff] }
 0x14d   : > { %1657 = vst.msk [vmem:[#allocation3 + $0x8] sm:$0xff] %vm525_vm2, %v1641_v59 }
 0x14e   : > { %1487 = vst.msk [vmem:[#allocation3 + $0x68] sm:$0xff] %vm525_vm2, %v1471_v42 }
 0x14f   : > { %v1759_v49 = vpop.f32.mrf.mxu2 }
 0x150   : > { %v1823_v43 = vadd.f32 %v1807_v48, %v1759_v49  ;;  %v2123_v33 = vpop.f32.mrf.mxu0 }
 0x151   : > { %v1275_v32 = vld [vmem:[#allocation3 + $0x78] sm:$0xff] }
 0x152   : > { %1839 = vst.msk [vmem:[#allocation3] sm:$0xff] %vm525_vm2, %v1823_v43  ;;  %v1291_v60 = vadd.f32 %v1275_v32, %v1257_v17  ;;  %v1582_v36 = vpop.f32.mrf.mxu1  ;;  %v1941_v30 = vpop.f32.mrf.mxu3 }
 0x153   : > { %v1456_v37 = vld [vmem:[#allocation3 + $0x70] sm:$0xff]  ;;  %v1642_v35 = vadd.f32 %v1626_v25, %v1582_v36 }
 0x154   : > { %1307 = vst.msk [vmem:[#allocation3 + $0x78] sm:$0xff] %vm525_vm2, %v1291_v60  ;;  %v1472_v12 = vadd.f32 %v1456_v37, %v1436_v6  ;;  %v1808_v41 = vld [vmem:[#allocation3 + $0x8] sm:$0xff] }
 0x155   : > { %1658 = vst.msk [vmem:[#allocation3 + $0x10] sm:$0xff] %vm525_vm2, %v1642_v35 }
 0x156   : > { %1488 = vst.msk [vmem:[#allocation3 + $0x70] sm:$0xff] %vm525_vm2, %v1472_v12 }
 0x157   : > { %v1762_v57 = vpop.f32.mrf.mxu2 }
 0x158   : > { %v1824_v19 = vadd.f32 %v1808_v41, %v1762_v57  ;;  %v2126_v34 = vpop.f32.mrf.mxu0  ;;  %v1631_v57 = vld [vmem:[#allocation3 + $0x38] sm:$0xff] }
 0x159   : > { %v1989_v14 = vld [vmem:[#allocation3] sm:$0xff] }
 0x15a   : > { %1840 = vst.msk [vmem:[#allocation3 + $0x8] sm:$0xff] %vm525_vm2, %v1824_v19  ;;  %v2005_v44 = vadd.f32 %v1989_v14, %v1941_v30  ;;  %v1585_v50 = vpop.f32.mrf.mxu1  ;;  %v1944_v39 = vpop.f32.mrf.mxu3 }
 0x15b   : > { %v1457_v38 = vld [vmem:[#allocation3 + $0x78] sm:$0xff]  ;;  %v1643_v45 = vadd.f32 %v1627_v51, %v1585_v50 }
 0x15c   : > { %2021 = vst.msk [vmem:[#allocation3] sm:$0xff] %vm525_vm2, %v2005_v44  ;;  %v1473_v1 = vadd.f32 %v1457_v38, %v1439_v56  ;;  %v1809_v58 = vld [vmem:[#allocation3 + $0x10] sm:$0xff] }
 0x15d   : > { %1659 = vst.msk [vmem:[#allocation3 + $0x18] sm:$0xff] %vm525_vm2, %v1643_v45 }
 0x15e   : > { %1489 = vst.msk [vmem:[#allocation3 + $0x78] sm:$0xff] %vm525_vm2, %v1473_v1 }
 0x15f   : > { %v1765_v62 = vpop.f32.mrf.mxu2 }
 0x160   : > { %v1825_v63 = vadd.f32 %v1809_v58, %v1765_v62  ;;  %v2129_v21 = vpop.f32.mrf.mxu0 }
 0x161   : > { %v1990_v0 = vld [vmem:[#allocation3 + $0x8] sm:$0xff] }
 0x162   : > { %1841 = vst.msk [vmem:[#allocation3 + $0x10] sm:$0xff] %vm525_vm2, %v1825_v63  ;;  %v2006_v61 = vadd.f32 %v1990_v0, %v1944_v39  ;;  %v1588_v3 = vpop.f32.mrf.mxu1  ;;  %v1947_v5 = vpop.f32.mrf.mxu3 }
 0x163   : > { %v2171_v9 = vld [vmem:[#allocation3] sm:$0xff]  ;;  %v1644_v52 = vadd.f32 %v1628_v4, %v1588_v3 }
 0x164   : > { %2022 = vst.msk [vmem:[#allocation3 + $0x8] sm:$0xff] %vm525_vm2, %v2006_v61  ;;  %v2187_v2 = vadd.f32 %v2171_v9, %v2123_v33  ;;  %v1810_v54 = vld [vmem:[#allocation3 + $0x18] sm:$0xff]  ;;  %v1632_v4 = vld [vmem:[#allocation3 + $0x40] sm:$0xff] }
 0x165   : > { %1660 = vst.msk [vmem:[#allocation3 + $0x20] sm:$0xff] %vm525_vm2, %v1644_v52 }
 0x166   : > { %2203 = vst.msk [vmem:[#allocation3] sm:$0xff] %vm525_vm2, %v2187_v2 }
 0x167   : > { %v1768_v24 = vpop.f32.mrf.mxu2 }
 0x168   : > { %v1826_v22 = vadd.f32 %v1810_v54, %v1768_v24  ;;  %v2132_v6 = vpop.f32.mrf.mxu0 }
 0x169   : > { %v1991_v40 = vld [vmem:[#allocation3 + $0x10] sm:$0xff] }
 0x16a   : > { %1842 = vst.msk [vmem:[#allocation3 + $0x18] sm:$0xff] %vm525_vm2, %v1826_v22  ;;  %v2007_v46 = vadd.f32 %v1991_v40, %v1947_v5  ;;  %v1591_v47 = vpop.f32.mrf.mxu1  ;;  %v1950_v11 = vpop.f32.mrf.mxu3 }
 0x16b   : > { %v2172_v27 = vld [vmem:[#allocation3 + $0x8] sm:$0xff]  ;;  %v1645_v8 = vadd.f32 %v1629_v7, %v1591_v47 }
 0x16c   : > { %2023 = vst.msk [vmem:[#allocation3 + $0x10] sm:$0xff] %vm525_vm2, %v2007_v46  ;;  %v2188_v10 = vadd.f32 %v2172_v27, %v2126_v34  ;;  %v1811_v16 = vld [vmem:[#allocation3 + $0x20] sm:$0xff] }
 0x16d   : > { %v2219_v13 = vld [vmem:[#allocation3] sm:$0xff]  ;;  %1661 = vst.msk [vmem:[#allocation3 + $0x28] sm:$0xff] %vm525_vm2, %v1645_v8 }
 0x16e   : > { %2329 = vst.msk [vmem:[%s3568_s22] sm:$0xff] %vm525_vm2, %v2219_v13  ;;  %v2272_v31 = vmul.f32 %v2219_v13, %v2219_v13  ;;  %v2235_v48 = vsel %vm525_vm2, %v2219_v13, 0.0 }
 0x16f   : > { %2204 = vst.msk [vmem:[#allocation3 + $0x8] sm:$0xff] %vm525_vm2, %v2188_v10  ;;  %v1771_v20 = vpop.f32.mrf.mxu2 }
 0x170   : > { %v1827_v55 = vadd.f32 %v1811_v16, %v1771_v20  ;;  %v2135_v18 = vpop.f32.mrf.mxu0  ;;  %v2288_v25 = vsel %vm525_vm2, %v2272_v31, 0.0  ;;  %v1633_v16 = vld [vmem:[#allocation3 + $0x48] sm:$0xff] }
 0x171   : > { %v1992_v29 = vld [vmem:[#allocation3 + $0x18] sm:$0xff] }
 0x172   : > { %1843 = vst.msk [vmem:[#allocation3 + $0x20] sm:$0xff] %vm525_vm2, %v1827_v55  ;;  %v2008_v56 = vadd.f32 %v1992_v29, %v1950_v11  ;;  %v1594_v23 = vpop.f32.mrf.mxu1  ;;  %v1953_v26 = vpop.f32.mrf.mxu3 }
 0x173   : > { %v2173_v53 = vld [vmem:[#allocation3 + $0x10] sm:$0xff]  ;;  %v1646_v15 = vadd.f32 %v1630_v28, %v1594_v23 }
 0x174   : > { %2024 = vst.msk [vmem:[#allocation3 + $0x18] sm:$0xff] %vm525_vm2, %v2008_v56  ;;  %v2189_v17 = vadd.f32 %v2173_v53, %v2129_v21  ;;  %v1812_v59 = vld [vmem:[#allocation3 + $0x28] sm:$0xff] }
 0x175   : > { %1662 = vst.msk [vmem:[#allocation3 + $0x30] sm:$0xff] %vm525_vm2, %v1646_v15 }
 0x176   : > { %v2220_v42 = vld [vmem:[#allocation3 + $0x8] sm:$0xff]  ;;  %2205 = vst.msk [vmem:[#allocation3 + $0x10] sm:$0xff] %vm525_vm2, %v2189_v17 }
 0x177   : > { %v2236_v49 = vsel %vm525_vm2, %v2220_v42, 0.0  ;;  %v2273_v43 = vmul.f32 %v2220_v42, %v2220_v42  ;;  %2330 = vst.msk [vmem:[%s3568_s22 + $0x8] sm:$0xff] %vm525_vm2, %v2220_v42  ;;  %v1774_v33 = vpop.f32.mrf.mxu2 }
 0x178   : > { %v2237_v32 = vadd.f32 %v2236_v49, %v2235_v48  ;;  %v1828_v60 = vadd.f32 %v1812_v59, %v1774_v33  ;;  %v2138_v36 = vpop.f32.mrf.mxu0 }
 0x179   : > { %v2289_v30 = vsel %vm525_vm2, %v2273_v43, 0.0  ;;  %v1993_v37 = vld [vmem:[#allocation3 + $0x20] sm:$0xff]  ;;  %v1634_v43 = vld [vmem:[#allocation3 + $0x50] sm:$0xff] }
 0x17a   : > { %v2290_v35 = vadd.f32 %v2289_v30, %v2288_v25  ;;  %1844 = vst.msk [vmem:[#allocation3 + $0x28] sm:$0xff] %vm525_vm2, %v1828_v60  ;;  %v2009_v12 = vadd.f32 %v1993_v37, %v1953_v26  ;;  %v1597_v41 = vpop.f32.mrf.mxu1  ;;  %v1956_v19 = vpop.f32.mrf.mxu3 }
 0x17b   : > { %v2174_v34 = vld [vmem:[#allocation3 + $0x18] sm:$0xff]  ;;  %v1647_v14 = vadd.f32 %v1631_v57, %v1597_v41 }
 0x17c   : > { %2025 = vst.msk [vmem:[#allocation3 + $0x20] sm:$0xff] %vm525_vm2, %v2009_v12  ;;  %v2190_v44 = vadd.f32 %v2174_v34, %v2132_v6  ;;  %v1813_v51 = vld [vmem:[#allocation3 + $0x30] sm:$0xff]  ;;  %v1635_v34 = vld [vmem:[#allocation3 + $0x58] sm:$0xff] }
 0x17d   : > { %v2221_v50 = vld [vmem:[#allocation3 + $0x10] sm:$0xff]  ;;  %1663 = vst.msk [vmem:[#allocation3 + $0x38] sm:$0xff] %vm525_vm2, %v1647_v14 }
 0x17e   : > { %v2238_v39 = vsel %vm525_vm2, %v2221_v50, 0.0  ;;  %v2274_v38 = vmul.f32 %v2221_v50, %v2221_v50  ;;  %2331 = vst.msk [vmem:[%s3568_s22 + $0x10] sm:$0xff] %vm525_vm2, %v2221_v50 }
 0x17f   : > { %v2239_v45 = vadd.f32 %v2238_v39, %v2237_v32  ;;  %2206 = vst.msk [vmem:[#allocation3 + $0x18] sm:$0xff] %vm525_vm2, %v2190_v44  ;;  %v1777_v1 = vpop.f32.mrf.mxu2 }
 0x180   : > { %v2291_v58 = vsel %vm525_vm2, %v2274_v38, 0.0  ;;  %v1829_v62 = vadd.f32 %v1813_v51, %v1777_v1  ;;  %v2141_v63 = vpop.f32.mrf.mxu0 }
 0x181   : > { %v2292_v21 = vadd.f32 %v2291_v58, %v2290_v35  ;;  %v1994_v0 = vld [vmem:[#allocation3 + $0x28] sm:$0xff] }
 0x182   : > { %1845 = vst.msk [vmem:[#allocation3 + $0x30] sm:$0xff] %vm525_vm2, %v1829_v62  ;;  %v2010_v61 = vadd.f32 %v1994_v0, %v1956_v19  ;;  %v1600_v3 = vpop.f32.mrf.mxu1  ;;  %v1959_v5 = vpop.f32.mrf.mxu3  ;;  %v1636_v0 = vld [vmem:[#allocation3 + $0x60] sm:$0xff] }
 0x183   : > { %v2175_v9 = vld [vmem:[#allocation3 + $0x20] sm:$0xff]  ;;  %v1648_v52 = vadd.f32 %v1632_v4, %v1600_v3 }
 0x184   : > { %2026 = vst.msk [vmem:[#allocation3 + $0x28] sm:$0xff] %vm525_vm2, %v2010_v61  ;;  %v2191_v2 = vadd.f32 %v2175_v9, %v2135_v18  ;;  %v1814_v54 = vld [vmem:[#allocation3 + $0x38] sm:$0xff] }
 0x185   : > { %1664 = vst.msk [vmem:[#allocation3 + $0x40] sm:$0xff] %vm525_vm2, %v1648_v52 }
 0x186   : > { %v2222_v24 = vld [vmem:[#allocation3 + $0x18] sm:$0xff]  ;;  %2207 = vst.msk [vmem:[#allocation3 + $0x20] sm:$0xff] %vm525_vm2, %v2191_v2 }
 0x187   : > { %v2240_v22 = vsel %vm525_vm2, %v2222_v24, 0.0  ;;  %v2275_v6 = vmul.f32 %v2222_v24, %v2222_v24  ;;  %2332 = vst.msk [vmem:[%s3568_s22 + $0x18] sm:$0xff] %vm525_vm2, %v2222_v24  ;;  %v1780_v40 = vpop.f32.mrf.mxu2 }
 0x188   : > { %v2241_v46 = vadd.f32 %v2240_v22, %v2239_v45  ;;  %v1830_v47 = vadd.f32 %v1814_v54, %v1780_v40  ;;  %v2144_v27 = vpop.f32.mrf.mxu0 }
 0x189   : > { %v2293_v7 = vsel %vm525_vm2, %v2275_v6, 0.0  ;;  %v1995_v11 = vld [vmem:[#allocation3 + $0x30] sm:$0xff] }
 0x18a   : > { %v2294_v8 = vadd.f32 %v2293_v7, %v2292_v21  ;;  %1846 = vst.msk [vmem:[#allocation3 + $0x38] sm:$0xff] %vm525_vm2, %v1830_v47  ;;  %v2011_v10 = vadd.f32 %v1995_v11, %v1959_v5  ;;  %v1603_v13 = vpop.f32.mrf.mxu1  ;;  %v1962_v20 = vpop.f32.mrf.mxu3 }
 0x18b   : > { %v2176_v55 = vld [vmem:[#allocation3 + $0x28] sm:$0xff]  ;;  %v1649_v18 = vadd.f32 %v1633_v16, %v1603_v13 }
 0x18c   : > { %2027 = vst.msk [vmem:[#allocation3 + $0x30] sm:$0xff] %vm525_vm2, %v2011_v10  ;;  %v2192_v29 = vadd.f32 %v2176_v55, %v2138_v36  ;;  %v1815_v23 = vld [vmem:[#allocation3 + $0x40] sm:$0xff] }
 0x18d   : > { %v2223_v56 = vld [vmem:[#allocation3 + $0x20] sm:$0xff]  ;;  %1665 = vst.msk [vmem:[#allocation3 + $0x48] sm:$0xff] %vm525_vm2, %v1649_v18 }
 0x18e   : > { %v2242_v28 = vsel %vm525_vm2, %v2223_v56, 0.0  ;;  %v2276_v26 = vmul.f32 %v2223_v56, %v2223_v56  ;;  %2333 = vst.msk [vmem:[%s3568_s22 + $0x20] sm:$0xff] %vm525_vm2, %v2223_v56  ;;  %v1638_v56 = vld [vmem:[#allocation3 + $0x70] sm:$0xff] }
 0x18f   : > { %v3607_v53 = vadd.f32 %v2242_v28, %v2241_v46  ;;  %2208 = vst.msk [vmem:[#allocation3 + $0x28] sm:$0xff] %vm525_vm2, %v2192_v29  ;;  %v1783_v15 = vpop.f32.mrf.mxu2  ;;  %v1637_v46 = vld [vmem:[#allocation3 + $0x68] sm:$0xff] }
 0x190   : > { %v2295_v17 = vsel %vm525_vm2, %v2276_v26, 0.0  ;;  %v1831_v31 = vadd.f32 %v1815_v23, %v1783_v15  ;;  %v2147_v36 = vpop.f32.mrf.mxu0 }
 0x191   : > { %v3611_v59 = vadd.f32 %v2295_v17, %v2294_v8  ;;  %v1996_v42 = vld [vmem:[#allocation3 + $0x38] sm:$0xff] }
 0x192   : > { %1847 = vst.msk [vmem:[#allocation3 + $0x40] sm:$0xff] %vm525_vm2, %v1831_v31  ;;  %v2012_v48 = vadd.f32 %v1996_v42, %v1962_v20  ;;  %v1606_v49 = vpop.f32.mrf.mxu1  ;;  %v1965_v33 = vpop.f32.mrf.mxu3 }
 0x193   : > { %v2177_v32 = vld [vmem:[#allocation3 + $0x30] sm:$0xff]  ;;  %v1650_v60 = vadd.f32 %v1634_v43, %v1606_v49 }
 0x194   : > { %2028 = vst.msk [vmem:[#allocation3 + $0x38] sm:$0xff] %vm525_vm2, %v2012_v48  ;;  %v2193_v25 = vadd.f32 %v2177_v32, %v2141_v63  ;;  %v1816_v30 = vld [vmem:[#allocation3 + $0x48] sm:$0xff]  ;;  %v1639_v32 = vld [vmem:[#allocation3 + $0x78] sm:$0xff] }
 0x195   : > { %1666 = vst.msk [vmem:[#allocation3 + $0x50] sm:$0xff] %vm525_vm2, %v1650_v60 }
 0x196   : > { %v3616_v37 = vld [vmem:[#allocation3 + $0x28] sm:$0xff]  ;;  %2209 = vst.msk [vmem:[#allocation3 + $0x30] sm:$0xff] %vm525_vm2, %v2193_v25 }
 0x197   : > { %2334 = vst.msk [vmem:[%s3568_s22 + $0x28] sm:$0xff] %vm525_vm2, %v3616_v37  ;;  %v1786_v35 = vpop.f32.mrf.mxu2 }
 0x198   : > { %v1832_v12 = vadd.f32 %v1816_v30, %v1786_v35  ;;  %v2150_v45 = vpop.f32.mrf.mxu0 }
 0x199   : > { %v1997_v41 = vld [vmem:[#allocation3 + $0x40] sm:$0xff] }
 0x19a   : > { %1848 = vst.msk [vmem:[#allocation3 + $0x48] sm:$0xff] %vm525_vm2, %v1832_v12  ;;  %v2013_v57 = vadd.f32 %v1997_v41, %v1965_v33  ;;  %v1609_v19 = vpop.f32.mrf.mxu1  ;;  %v1968_v14 = vpop.f32.mrf.mxu3 }
 0x19b   : > { %v2178_v44 = vld [vmem:[#allocation3 + $0x38] sm:$0xff]  ;;  %v1651_v50 = vadd.f32 %v1635_v34, %v1609_v19 }
 0x19c   : > { %2029 = vst.msk [vmem:[#allocation3 + $0x40] sm:$0xff] %vm525_vm2, %v2013_v57  ;;  %v2194_v51 = vadd.f32 %v2178_v44, %v2144_v27  ;;  %v1817_v38 = vld [vmem:[#allocation3 + $0x50] sm:$0xff] }
 0x19d   : > { %v3624_v39 = vld [vmem:[#allocation3 + $0x30] sm:$0xff]  ;;  %1667 = vst.msk [vmem:[#allocation3 + $0x58] sm:$0xff] %vm525_vm2, %v1651_v50 }
 0x19e   : > { %2335 = vst.msk [vmem:[%s3568_s22 + $0x30] sm:$0xff] %vm525_vm2, %v3624_v39 }
 0x19f   : > { %2210 = vst.msk [vmem:[#allocation3 + $0x38] sm:$0xff] %vm525_vm2, %v2194_v51  ;;  %v1789_v1 = vpop.f32.mrf.mxu2 }
 0x1a0   : > { %v1833_v58 = vadd.f32 %v1817_v38, %v1789_v1  ;;  %v2153_v54 = vpop.f32.mrf.mxu0 }
 0x1a1   : > { %v1998_v62 = vld [vmem:[#allocation3 + $0x48] sm:$0xff] }
 0x1a2   : > { %1849 = vst.msk [vmem:[#allocation3 + $0x50] sm:$0xff] %vm525_vm2, %v1833_v58  ;;  %v2014_v63 = vadd.f32 %v1998_v62, %v1968_v14  ;;  %v1612_v21 = vpop.f32.mrf.mxu1  ;;  %v1971_v61 = vpop.f32.mrf.mxu3 }
 0x1a3   : > { %v2179_v3 = vld [vmem:[#allocation3 + $0x40] sm:$0xff]  ;;  %v1652_v4 = vadd.f32 %v1636_v0, %v1612_v21 }
 0x1a4   : > { %2030 = vst.msk [vmem:[#allocation3 + $0x48] sm:$0xff] %vm525_vm2, %v2014_v63  ;;  %v2195_v5 = vadd.f32 %v2179_v3, %v2147_v36  ;;  %v1818_v9 = vld [vmem:[#allocation3 + $0x58] sm:$0xff] }
 0x1a5   : > { %1668 = vst.msk [vmem:[#allocation3 + $0x60] sm:$0xff] %vm525_vm2, %v1652_v4  ;;  %v2277_v4 = vmul.f32 %v3616_v37, %v3616_v37 }
 0x1a6   : > { %v3634_v52 = vld [vmem:[#allocation3 + $0x38] sm:$0xff]  ;;  %2211 = vst.msk [vmem:[#allocation3 + $0x40] sm:$0xff] %vm525_vm2, %v2195_v5 }
 0x1a7   : > { %2336 = vst.msk [vmem:[%s3568_s22 + $0x38] sm:$0xff] %vm525_vm2, %v3634_v52  ;;  %v1792_v2 = vpop.f32.mrf.mxu2 }
 0x1a8   : > { %v1834_v24 = vadd.f32 %v1818_v9, %v1792_v2  ;;  %v2156_v55 = vpop.f32.mrf.mxu0  ;;  %v2244_v2 = vsel %vm525_vm2, %v3616_v37, 0.0 }
 0x1a9   : > { %v1999_v22 = vld [vmem:[#allocation3 + $0x50] sm:$0xff] }
 0x1aa   : > { %1850 = vst.msk [vmem:[#allocation3 + $0x58] sm:$0xff] %vm525_vm2, %v1834_v24  ;;  %v2015_v6 = vadd.f32 %v1999_v22, %v1971_v61  ;;  %v1615_v40 = vpop.f32.mrf.mxu1  ;;  %v1974_v47 = vpop.f32.mrf.mxu3 }
 0x1ab   : > { %v2180_v7 = vld [vmem:[#allocation3 + $0x48] sm:$0xff]  ;;  %v1653_v11 = vadd.f32 %v1637_v46, %v1615_v40  ;;  %v2246_v40 = vsel %vm525_vm2, %v3624_v39, 0.0  ;;  %v2279_v46 = vmul.f32 %v3634_v52, %v3634_v52 }
 0x1ac   : > { %2031 = vst.msk [vmem:[#allocation3 + $0x50] sm:$0xff] %vm525_vm2, %v2015_v6  ;;  %v2196_v27 = vadd.f32 %v2180_v7, %v2150_v45  ;;  %v1819_v10 = vld [vmem:[#allocation3 + $0x60] sm:$0xff]  ;;  %v2297_v6 = vsel %vm525_vm2, %v2277_v4, 0.0  ;;  %v2245_v7 = vadd.f32 %v2244_v2, %v3607_v53 }
 0x1ad   : > { %v3642_v8 = vld [vmem:[#allocation3 + $0x40] sm:$0xff]  ;;  %1669 = vst.msk [vmem:[#allocation3 + $0x68] sm:$0xff] %vm525_vm2, %v1653_v11 }
 0x1ae   : > { %2337 = vst.msk [vmem:[%s3568_s22 + $0x40] sm:$0xff] %vm525_vm2, %v3642_v8  ;;  %v2250_v53 = vsel %vm525_vm2, %v3642_v8, 0.0 }
 0x1af   : > { %2212 = vst.msk [vmem:[#allocation3 + $0x48] sm:$0xff] %vm525_vm2, %v2196_v27  ;;  %v1795_v13 = vpop.f32.mrf.mxu2  ;;  %v2248_v27 = vsel %vm525_vm2, %v3634_v52, 0.0 }
 0x1b0   : > { %v1835_v16 = vadd.f32 %v1819_v10, %v1795_v13  ;;  %v2159_v30 = vpop.f32.mrf.mxu0  ;;  %v2280_v10 = vmul.f32 %v3642_v8, %v3642_v8  ;;  %v2247_v13 = vadd.f32 %v2246_v40, %v2245_v7 }
 0x1b1   : > { %v2000_v20 = vld [vmem:[#allocation3 + $0x58] sm:$0xff] }
 0x1b2   : > { %1851 = vst.msk [vmem:[#allocation3 + $0x60] sm:$0xff] %vm525_vm2, %v1835_v16  ;;  %v2016_v18 = vadd.f32 %v2000_v20, %v1974_v47  ;;  %v1618_v29 = vpop.f32.mrf.mxu1  ;;  %v1977_v23 = vpop.f32.mrf.mxu3  ;;  %v2301_v20 = vsel %vm525_vm2, %v2279_v46, 0.0 }
 0x1b3   : > { %v2181_v28 = vld [vmem:[#allocation3 + $0x50] sm:$0xff]  ;;  %v1654_v26 = vadd.f32 %v1638_v56, %v1618_v29  ;;  %v2303_v29 = vsel %vm525_vm2, %v2280_v10, 0.0 }
 0x1b4   : > { %2032 = vst.msk [vmem:[#allocation3 + $0x58] sm:$0xff] %vm525_vm2, %v2016_v18  ;;  %v2197_v15 = vadd.f32 %v2181_v28, %v2153_v54  ;;  %v1820_v17 = vld [vmem:[#allocation3 + $0x68] sm:$0xff]  ;;  %v2278_v54 = vmul.f32 %v3624_v39, %v3624_v39  ;;  %v2298_v39 = vadd.f32 %v2297_v6, %v3611_v59  ;;  %v2249_v18 = vadd.f32 %v2248_v27, %v2247_v13 }
 0x1b5   : > { %1670 = vst.msk [vmem:[#allocation3 + $0x70] sm:$0xff] %vm525_vm2, %v1654_v26 }
 0x1b6   : > { %v3652_v31 = vld [vmem:[#allocation3 + $0x48] sm:$0xff]  ;;  %2213 = vst.msk [vmem:[#allocation3 + $0x50] sm:$0xff] %vm525_vm2, %v2197_v15  ;;  %v2299_v11 = vsel %vm525_vm2, %v2278_v54, 0.0  ;;  %v2251_v26 = vadd.f32 %v2250_v53, %v2249_v18 }
 0x1b7   : > { %2338 = vst.msk [vmem:[%s3568_s22 + $0x48] sm:$0xff] %vm525_vm2, %v3652_v31  ;;  %v1798_v42 = vpop.f32.mrf.mxu2  ;;  %v2300_v52 = vadd.f32 %v2299_v11, %v2298_v39  ;;  %v2252_v59 = vsel %vm525_vm2, %v3652_v31, 0.0 }
 0x1b8   : > { %v1836_v48 = vadd.f32 %v1820_v17, %v1798_v42  ;;  %v2162_v45 = vpop.f32.mrf.mxu0 }
 0x1b9   : > { %v2001_v49 = vld [vmem:[#allocation3 + $0x60] sm:$0xff]  ;;  %v2302_v28 = vadd.f32 %v2301_v20, %v2300_v52 }
 0x1ba   : > { %1852 = vst.msk [vmem:[#allocation3 + $0x68] sm:$0xff] %vm525_vm2, %v1836_v48  ;;  %v2017_v43 = vadd.f32 %v2001_v49, %v1977_v23  ;;  %v1621_v33 = vpop.f32.mrf.mxu1  ;;  %v1980_v25 = vpop.f32.mrf.mxu3  ;;  %v2253_v49 = vadd.f32 %v2252_v59, %v2251_v26 }
 0x1bb   : > { %v2182_v60 = vld [vmem:[#allocation3 + $0x58] sm:$0xff]  ;;  %v1655_v36 = vadd.f32 %v1639_v32, %v1621_v33  ;;  %v2304_v48 = vadd.f32 %v2303_v29, %v2302_v28 }
 0x1bc   : > { %2033 = vst.msk [vmem:[#allocation3 + $0x60] sm:$0xff] %vm525_vm2, %v2017_v43  ;;  %v2198_v35 = vadd.f32 %v2182_v60, %v2156_v55  ;;  %v1821_v41 = vld [vmem:[#allocation3 + $0x70] sm:$0xff]  ;;  %v2281_v55 = vmul.f32 %v3652_v31, %v3652_v31 }
 0x1bd   : > { %v3660_v12 = vld [vmem:[#allocation3 + $0x50] sm:$0xff]  ;;  %1671 = vst.msk [vmem:[#allocation3 + $0x78] sm:$0xff] %vm525_vm2, %v1655_v36 }
 0x1be   : > { %2339 = vst.msk [vmem:[%s3568_s22 + $0x50] sm:$0xff] %vm525_vm2, %v3660_v12  ;;  %v2282_v56 = vmul.f32 %v3660_v12, %v3660_v12  ;;  %v2305_v8 = vsel %vm525_vm2, %v2281_v55, 0.0  ;;  %v2254_v15 = vsel %vm525_vm2, %v3660_v12, 0.0 }
 0x1bf   : > { %2214 = vst.msk [vmem:[#allocation3 + $0x58] sm:$0xff] %vm525_vm2, %v2198_v35  ;;  %v1801_v57 = vpop.f32.mrf.mxu2  ;;  %v2306_v36 = vadd.f32 %v2305_v8, %v2304_v48 }
 0x1c0   : > { %v1837_v19 = vadd.f32 %v1821_v41, %v1801_v57  ;;  %v2165_v9 = vpop.f32.mrf.mxu0  ;;  %v2307_v33 = vsel %vm525_vm2, %v2282_v56, 0.0 }
 0x1c1   : > { %v2002_v34 = vld [vmem:[#allocation3 + $0x68] sm:$0xff]  ;;  %v2308_v41 = vadd.f32 %v2307_v33, %v2306_v36 }
 0x1c2   : > { %1853 = vst.msk [vmem:[#allocation3 + $0x70] sm:$0xff] %vm525_vm2, %v1837_v19  ;;  %v2018_v14 = vadd.f32 %v2002_v34, %v1980_v25  ;;  %v1983_v38 = vpop.f32.mrf.mxu3  ;;  %v2255_v25 = vadd.f32 %v2254_v15, %v2253_v49 }
 0x1c3   : > { %v2183_v44 = vld [vmem:[#allocation3 + $0x60] sm:$0xff] }
 0x1c4   : > { %2034 = vst.msk [vmem:[#allocation3 + $0x68] sm:$0xff] %vm525_vm2, %v2018_v14  ;;  %v2199_v50 = vadd.f32 %v2183_v44, %v2159_v30  ;;  %v1822_v51 = vld [vmem:[#allocation3 + $0x78] sm:$0xff] }
 0x1c6   : > { %v2230_v1 = vld [vmem:[#allocation3 + $0x58] sm:$0xff]  ;;  %2215 = vst.msk [vmem:[#allocation3 + $0x60] sm:$0xff] %vm525_vm2, %v2199_v50 }
 0x1c7   : > { %2340 = vst.msk [vmem:[%s3568_s22 + $0x58] sm:$0xff] %vm525_vm2, %v2230_v1  ;;  %v1804_v58 = vpop.f32.mrf.mxu2  ;;  %v2283_v17 = vmul.f32 %v2230_v1, %v2230_v1  ;;  %v2256_v31 = vsel %vm525_vm2, %v2230_v1, 0.0 }
 0x1c8   : > { %v1838_v62 = vadd.f32 %v1822_v51, %v1804_v58  ;;  %v2168_v23 = vpop.f32.mrf.mxu0  ;;  %v2257_v57 = vadd.f32 %v2256_v31, %v2255_v25 }
 0x1c9   : > { %v2003_v63 = vld [vmem:[#allocation3 + $0x70] sm:$0xff]  ;;  %v2309_v30 = vsel %vm525_vm2, %v2283_v17, 0.0 }
 0x1ca   : > { %1854 = vst.msk [vmem:[#allocation3 + $0x78] sm:$0xff] %vm525_vm2, %v1838_v62  ;;  %v2019_v21 = vadd.f32 %v2003_v63, %v1983_v38  ;;  %v1986_v5 = vpop.f32.mrf.mxu3  ;;  %v2310_v44 = vadd.f32 %v2309_v30, %v2308_v41 }
 0x1cb   : > { %v2184_v0 = vld [vmem:[#allocation3 + $0x68] sm:$0xff] }
 0x1cc   : > { %2035 = vst.msk [vmem:[#allocation3 + $0x70] sm:$0xff] %vm525_vm2, %v2019_v21  ;;  %v2200_v61 = vadd.f32 %v2184_v0, %v2162_v45 }
 0x1cd   : > { %v2231_v3 = vld [vmem:[#allocation3 + $0x60] sm:$0xff] }
 0x1ce   : > { %2341 = vst.msk [vmem:[%s3568_s22 + $0x60] sm:$0xff] %vm525_vm2, %v2231_v3  ;;  %v2284_v32 = vmul.f32 %v2231_v3, %v2231_v3  ;;  %v2258_v35 = vsel %vm525_vm2, %v2231_v3, 0.0 }
 0x1cf   : > { %2216 = vst.msk [vmem:[#allocation3 + $0x68] sm:$0xff] %vm525_vm2, %v2200_v61  ;;  %v2259_v50 = vadd.f32 %v2258_v35, %v2257_v57 }
 0x1d0   : > { %v2311_v19 = vsel %vm525_vm2, %v2284_v32, 0.0 }
 0x1d1   : > { %v2004_v24 = vld [vmem:[#allocation3 + $0x78] sm:$0xff]  ;;  %v2312_v45 = vadd.f32 %v2311_v19, %v2310_v44 }
 0x1d2   : > { %v2020_v22 = vadd.f32 %v2004_v24, %v1986_v5 }
 0x1d3   : > { %v2185_v47 = vld [vmem:[#allocation3 + $0x70] sm:$0xff] }
 0x1d4   : > { %2036 = vst.msk [vmem:[#allocation3 + $0x78] sm:$0xff] %vm525_vm2, %v2020_v22  ;;  %v2201_v37 = vadd.f32 %v2185_v47, %v2165_v9 }
 0x1d6   : > { %v2232_v16 = vld [vmem:[#allocation3 + $0x68] sm:$0xff]  ;;  %2217 = vst.msk [vmem:[#allocation3 + $0x70] sm:$0xff] %vm525_vm2, %v2201_v37 }
 0x1d7   : > { %2342 = vst.msk [vmem:[%s3568_s22 + $0x68] sm:$0xff] %vm525_vm2, %v2232_v16  ;;  %v2285_v12 = vmul.f32 %v2232_v16, %v2232_v16  ;;  %v2260_v34 = vsel %vm525_vm2, %v2232_v16, 0.0 }
 0x1d8   : > { %v2261_v1 = vadd.f32 %v2260_v34, %v2259_v50 }
 0x1d9   : > { %v2313_v51 = vsel %vm525_vm2, %v2285_v12, 0.0 }
 0x1da   : > { %v2314_v62 = vadd.f32 %v2313_v51, %v2312_v45 }
 0x1db   : > { %v2186_v42 = vld [vmem:[#allocation3 + $0x78] sm:$0xff] }
 0x1dc   : > { %v2202_v43 = vadd.f32 %v2186_v42, %v2168_v23 }
 0x1dd   : > { %v2233_v60 = vld [vmem:[#allocation3 + $0x70] sm:$0xff] }
 0x1de   : > { %2343 = vst.msk [vmem:[%s3568_s22 + $0x70] sm:$0xff] %vm525_vm2, %v2233_v60  ;;  %v2286_v14 = vmul.f32 %v2233_v60, %v2233_v60  ;;  %v2262_v38 = vsel %vm525_vm2, %v2233_v60, 0.0 }
 0x1df   : > { %2218 = vst.msk [vmem:[#allocation3 + $0x78] sm:$0xff] %vm525_vm2, %v2202_v43  ;;  %v2263_v63 = vadd.f32 %v2262_v38, %v2261_v1 }
 0x1e0   : > { %v2315_v58 = vsel %vm525_vm2, %v2286_v14, 0.0 }
 0x1e1   : > { %v2316_v3 = vadd.f32 %v2315_v58, %v2314_v62 }
 0x1e6   : > { %v2234_v21 = vld [vmem:[#allocation3 + $0x78] sm:$0xff] }
 0x1e7   : > { %v2264_v0 = vsel %vm525_vm2, %v2234_v21, 0.0  ;;  %v2287_v61 = vmul.f32 %v2234_v21, %v2234_v21  ;;  %2344 = vst.msk [vmem:[%s3568_s22 + $0x78] sm:$0xff] %vm525_vm2, %v2234_v21 }
 0x1e8   : > { %v2265_v4 = vadd.f32 %v2264_v0, %v2263_v63 }
 0x1e9   : > { %v2317_v5 = vsel %vm525_vm2, %v2287_v61, 0.0 }
 0x1ea   : > { %v2266_v9 = vrot.slane %v2265_v4, 4  ;;  %v2318_v2 = vadd.f32 %v2317_v5, %v2316_v3 }
 0x1ec   : > { %v2267_v54 = vadd.f32 %v2266_v9, %v2265_v4  ;;  %v2319_v24 = vrot.slane %v2318_v2, 4 }
 0x1ee   : > { %v2268_v22 = vrot.slane %v2267_v54, 2  ;;  %v2320_v6 = vadd.f32 %v2319_v24, %v2318_v2 }
 0x1f0   : > { %v2269_v40 = vadd.f32 %v2268_v22, %v2267_v54  ;;  %v2321_v46 = vrot.slane %v2320_v6, 2 }
 0x1f2   : > { %v2270_v47 = vrot.slane %v2269_v40, 1  ;;  %v2322_v7 = vadd.f32 %v2321_v46, %v2320_v6 }
 0x1f4   : > { %v2323_v37 = vrot.slane %v2322_v7, 1  ;;  %v2271_v11 = vadd.f32 %v2270_v47, %v2269_v40 }
 0x1f6   : > { %v2324_v27 = vadd.f32 %v2323_v37, %v2322_v7 }
 0x1f8   : > { %v2326_v10 = vsel %vm2325_vm3, %v2271_v11, %v2324_v27 }
 0x1f9   : > { %2328 = vst.msk [vmem:[%s467_s10] sm:$0x3] %vm2327_vm4, %v2326_v10 }
 0x1fa PF: > { %s18_s28 = sadd.s32 1, %s2818_s28   ;;  %s3758_s24 = smov %s2810_s26 }
 0x1fb   : > { %p15_p13 = scmp.ge.s32.totalorder %s18_s28, 6   ;;  %s3759_s25 = smov %s2814_s27 }
 0x1fc   : > { %s3760_s26 = smov %s3763_s29  ;;  %s3761_s27 = smov %s3767_s30 }
 0x1fd   :  { %17 = sbr.rel (!%p15_p13) target bundleno = 3 (0x3), region = 103 }

</bundles_post_ra>
